<compile_context>
chip_gen: v6e
topology: v6e:2x2x1
jax: 0.10.0
libtpu: 0.0.40
codegen_flags: <defaults>
</compile_context>

<pallas_src>
import functools
import math

import jax
import jax.numpy as jnp
from jax import lax
from jax.experimental import pallas as pl
from jax.experimental.pallas import tpu as pltpu


# Depthwise-conv tap multiplies in bf16 (v6e/v7x have bf16 VPU).  Set False on v5e.
_DEPTHWISE_BF16 = True

_NT = (((1,), (1,)), ((), ()))   # dot_general numbers for A @ B.T (contract last dims)


# ------------------------------ small helpers ------------------------------

def _pick_row_tile(M, cap=512):
    """Row block: whole array when small, else the largest power-of-two divisor <= cap.
    cap=512 keeps the (tm, Dff) f32 FFN intermediate inside v7x/v5e scoped-VMEM defaults and
    gives grid >= 2 for large M so both v7x TensorCores get work."""
    if M <= cap:
        return M
    for tm in (cap, 256, 128, 64, 32, 16, 8):
        if M % tm == 0:
            return tm
    return M


def _sigmoid(x):
    return 1.0 / (1.0 + jnp.exp(-x))


def _layernorm(x, g, b):
    mean = jnp.mean(x, axis=-1, keepdims=True)
    var = jnp.mean((x - mean) ** 2, axis=-1, keepdims=True)
    return (x - mean) * lax.rsqrt(var + 1e-5) * g + b


def _roll_right(x, k, width):
    """Circular right roll of the last axis by static k (0 < k < width), via slice+concat."""
    return jnp.concatenate([x[:, width - k:], x[:, :width - k]], axis=1)


# ------------------------------ fused linear (+bias +act) ------------------------------

def _linear_kernel(x_ref, w_ref, b_ref, o_ref, *, act):
    y = jnp.dot(x_ref[...], w_ref[...], preferred_element_type=jnp.float32) + b_ref[...]
    if act == "relu":
        y = jnp.maximum(y, 0.0)
    elif act == "swish":
        y = y * _sigmoid(y)
    o_ref[...] = y.astype(o_ref.dtype)


def pl_linear(x2d, w, b=None, act="none", out_dtype=jnp.float32):
    M, K = x2d.shape
    N = w.shape[1]
    b2d = jnp.zeros((1, N), jnp.float32) if b is None else b.reshape(1, N).astype(jnp.float32)
    tm = _pick_row_tile(M)
    return pl.pallas_call(
        functools.partial(_linear_kernel, act=act),
        out_shape=jax.ShapeDtypeStruct((M, N), out_dtype),
        grid=(M // tm,),
        in_specs=[pl.BlockSpec((tm, K), lambda i: (i, 0)),
                  pl.BlockSpec((K, N), lambda i: (0, 0)),
                  pl.BlockSpec((1, N), lambda i: (0, 0))],
        out_specs=pl.BlockSpec((tm, N), lambda i: (i, 0)),
        compiler_params=pltpu.CompilerParams(dimension_semantics=("parallel",)),
    )(x2d.astype(jnp.bfloat16), w, b2d)       # bf16 activations: halves HBM->VMEM DMA


# ------------------------------ fused feed-forward module ------------------------------

def _ffn_kernel(x_ref, g_ref, b_ref, w1_ref, b1_ref, w2_ref, b2_ref,
                g2_ref, bln2_ref, o_ref, *, post_ln):
    x = x_ref[...]
    h = _layernorm(x, g_ref[...], b_ref[...])
    h = jnp.dot(h.astype(jnp.bfloat16), w1_ref[...],
                preferred_element_type=jnp.float32) + b1_ref[...]
    h = h * _sigmoid(h)                                        # swish
    h = jnp.dot(h.astype(jnp.bfloat16), w2_ref[...],
                preferred_element_type=jnp.float32) + b2_ref[...]
    y = x + 0.5 * h                                            # half-step residual
    if post_ln:                                                # fused block-final LayerNorm
        y = _layernorm(y, g2_ref[...], bln2_ref[...])
    o_ref[...] = y


def ffn_block(x2d, p, post_ln=None):
    M, D = x2d.shape
    Dff = p["w1"].shape[1]
    if post_ln is None:
        g2, bln2, use_post = p["ln_g2d"], p["ln_b2d"], False   # dummies, unused
    else:
        (g2, bln2), use_post = post_ln, True
    tm = _pick_row_tile(M)
    return pl.pallas_call(
        functools.partial(_ffn_kernel, post_ln=use_post),
        out_shape=jax.ShapeDtypeStruct((M, D), jnp.float32),
        grid=(M // tm,),
        in_specs=[pl.BlockSpec((tm, D), lambda i: (i, 0)),
                  pl.BlockSpec((1, D), lambda i: (0, 0)),
                  pl.BlockSpec((1, D), lambda i: (0, 0)),
                  pl.BlockSpec((D, Dff), lambda i: (0, 0)),
                  pl.BlockSpec((1, Dff), lambda i: (0, 0)),
                  pl.BlockSpec((Dff, D), lambda i: (0, 0)),
                  pl.BlockSpec((1, D), lambda i: (0, 0)),
                  pl.BlockSpec((1, D), lambda i: (0, 0)),
                  pl.BlockSpec((1, D), lambda i: (0, 0))],
        out_specs=pl.BlockSpec((tm, D), lambda i: (i, 0)),
        compiler_params=pltpu.CompilerParams(dimension_semantics=("parallel",)),
    )(x2d, p["ln_g2d"], p["ln_b2d"], p["w1"], p["b1_2d"], p["w2"], p["b2_2d"], g2, bln2)


# ------------------------------ fully fused relative MHSA module ------------------------------
#
# Per batch row, everything (LN, QKV, scores, relative shift, softmax, context, output
# projection, residual) runs in one kernel, so the (H, T, T) scores never leave VMEM.
#
# Relative shift (identical to the reference concat/reshape trick with a T-length pos):
#   P[r, m]      = (q_r + v_bias) . pos_m                               (raw pos score)
#   G[r, c]      = P[r, (c - r - 1) mod T]    (per-row circular right roll by r+1)
#   shifted[r,c] = G[r, c]    if c <= r
#                = 0          if c == r + 1
#                = G[r+1, c]  if c >= r + 2
# The per-row varying roll is realized as a barrel shifter over the bits of (r+1) using
# static-shift lane rolls (slice + concat) selected per row with iota masks.

def _mhsa_kernel(x_ref, pos_ref, g_ref, b_ref, wqkv_ref, bqkv_ref,
                 ub_ref, vb_ref, wo_ref, bo_ref, o_ref, *, num_heads, scale):
    T, D = x_ref.shape[1], x_ref.shape[2]
    dh = D // num_heads
    x = x_ref[0]                                                       # (T, D) f32
    xn = _layernorm(x, g_ref[...], b_ref[...])
    qkv = jnp.dot(xn.astype(jnp.bfloat16), wqkv_ref[...],
                  preferred_element_type=jnp.float32) + bqkv_ref[...]  # fused Q|K|V
    q = qkv[:, :D]
    k16 = qkv[:, D:2 * D].astype(jnp.bfloat16)
    v16 = qkv[:, 2 * D:].astype(jnp.bfloat16)
    pos16 = pos_ref[...].astype(jnp.bfloat16)
    # fold 1/sqrt(D) into the biased queries (moves H*T^2 multiplies down to T*D)
    qu16 = ((q + ub_ref[...]) * scale).astype(jnp.bfloat16)
    qv16 = ((q + vb_ref[...]) * scale).astype(jnp.bfloat16)

    row = lax.broadcasted_iota(jnp.int32, (T, T), 0)
    col = lax.broadcasted_iota(jnp.int32, (T, T), 1)
    shift_amt = row + 1                                                # per-row roll amount

    ctx_heads = []
    for h in range(num_heads):                     # static unroll over heads, all in VMEM
        sl = slice(h * dh, (h + 1) * dh)
        content = lax.dot_general(qu16[:, sl], k16[:, sl], _NT,
                                  preferred_element_type=jnp.float32)
        p2 = lax.dot_general(qv16[:, sl], pos16[:, sl], _NT,
                             preferred_element_type=jnp.float32)
        # barrel shifter: per-row circular right roll of p2 by (r+1) mod T
        g = p2
        bit = 0
        while (1 << bit) <= T:
            k = (1 << bit) % T
            if k:
                rolled = _roll_right(g, k, T)
                g = jnp.where((((shift_amt >> bit) & 1) == 1), rolled, g)
            bit += 1
        g_up = jnp.concatenate([g[1:, :], jnp.zeros((1, T), jnp.float32)], axis=0)
        shifted = jnp.where(col <= row, g,
                            jnp.where(col == row + 1, 0.0, g_up))
        s = content + shifted                                          # already scaled
        m = jnp.max(s, axis=-1, keepdims=True)
        e = jnp.exp(s - m)
        attn = e / jnp.sum(e, axis=-1, keepdims=True)                  # exact softmax
        ctx_heads.append(jnp.dot(attn.astype(jnp.bfloat16), v16[:, sl],
                                 preferred_element_type=jnp.float32))
    ctx = jnp.concatenate(ctx_heads, axis=-1)                          # (T, D)
    # single full-D output projection (keeps the MXU contraction wide), bias + residual
    out = jnp.dot(ctx.astype(jnp.bfloat16), wo_ref[...],
                  preferred_element_type=jnp.float32)
    o_ref[0] = x + out + bo_ref[...]


def mhsa_block(x, pe, p, num_heads):
    B, T, D = x.shape
    pos = pl_linear(pe, p["wpos"], out_dtype=jnp.bfloat16)    # pos projection once, not per batch
    return pl.pallas_call(
        functools.partial(_mhsa_kernel, num_heads=num_heads, scale=1.0 / math.sqrt(D)),
        out_shape=jax.ShapeDtypeStruct((B, T, D), jnp.float32),
        grid=(B,),
        in_specs=[pl.BlockSpec((1, T, D), lambda b: (b, 0, 0)),
                  pl.BlockSpec((T, D), lambda b: (0, 0)),
                  pl.BlockSpec((1, D), lambda b: (0, 0)),
                  pl.BlockSpec((1, D), lambda b: (0, 0)),
                  pl.BlockSpec((D, 3 * D), lambda b: (0, 0)),
                  pl.BlockSpec((1, 3 * D), lambda b: (0, 0)),
                  pl.BlockSpec((1, D), lambda b: (0, 0)),
                  pl.BlockSpec((1, D), lambda b: (0, 0)),
                  pl.BlockSpec((D, D), lambda b: (0, 0)),
                  pl.BlockSpec((1, D), lambda b: (0, 0))],
        out_specs=pl.BlockSpec((1, T, D), lambda b: (b, 0, 0)),
        compiler_params=pltpu.CompilerParams(dimension_semantics=("parallel",)),
    )(x, pos, p["ln_g2d"], p["ln_b2d"], p["wqkv"], p["bqkv2d"],
      p["u2d"], p["v2d"], p["wo"], p["bo2d"])


# ------------------------------ fused convolution module ------------------------------

def _conv_module_kernel(x_ref, g_ref, b_ref, pw1w_ref, pw1b_ref, dw_ref,
                        bns_ref, bnsh_ref, pw2w_ref, pw2b_ref, o_ref, *, pad):
    T, D = x_ref.shape[1], x_ref.shape[2]
    K = dw_ref.shape[0]
    x = x_ref[0]
    h = _layernorm(x, g_ref[...], b_ref[...])
    h = jnp.dot(h.astype(jnp.bfloat16), pw1w_ref[...],
                preferred_element_type=jnp.float32) + pw1b_ref[...]   # pointwise conv D -> 2D
    glu = h[:, :D] * _sigmoid(h[:, D:])                               # GLU over channel dim
    # depthwise conv: hold the 'same'-padded window as a VALUE (no scratch stores needed);
    # tap multiplies in bf16 (VPU), f32 accumulation.  Set _DEPTHWISE_BF16=False on v5e.
    tap_dt = jnp.bfloat16 if _DEPTHWISE_BF16 else jnp.float32
    zpad = jnp.zeros((pad, D), tap_dt)
    padded = jnp.concatenate([zpad, glu.astype(tap_dt), zpad], axis=0)  # (T+K-1, D)
    w = dw_ref[...].astype(tap_dt)
    acc = jnp.zeros((T, D), jnp.float32)
    for k in range(K):                                                # static unroll over taps
        acc = acc + (padded[k:k + T, :] * w[k:k + 1, :]).astype(jnp.float32)
    h = acc * bns_ref[...] + bnsh_ref[...]                            # folded eval BatchNorm1d
    h = h * _sigmoid(h)                                               # swish
    y = jnp.dot(h.astype(jnp.bfloat16), pw2w_ref[...],
                preferred_element_type=jnp.float32) + pw2b_ref[...]   # pointwise conv D -> D
    o_ref[0] = x + y                                                  # residual


def conv_block(x, p, kernel_size):
    B, T, D = x.shape
    K = kernel_size
    pad = (K - 1) // 2
    return pl.pallas_call(
        functools.partial(_conv_module_kernel, pad=pad),
        out_shape=jax.ShapeDtypeStruct((B, T, D), jnp.float32),
        grid=(B,),
        in_specs=[pl.BlockSpec((1, T, D), lambda b: (b, 0, 0)),
                  pl.BlockSpec((1, D), lambda b: (0, 0)),
                  pl.BlockSpec((1, D), lambda b: (0, 0)),
                  pl.BlockSpec((D, 2 * D), lambda b: (0, 0)),
                  pl.BlockSpec((1, 2 * D), lambda b: (0, 0)),
                  pl.BlockSpec((K, D), lambda b: (0, 0)),
                  pl.BlockSpec((1, D), lambda b: (0, 0)),
                  pl.BlockSpec((1, D), lambda b: (0, 0)),
                  pl.BlockSpec((D, D), lambda b: (0, 0)),
                  pl.BlockSpec((1, D), lambda b: (0, 0))],
        out_specs=pl.BlockSpec((1, T, D), lambda b: (b, 0, 0)),
        compiler_params=pltpu.CompilerParams(dimension_semantics=("parallel",)),
    )(x, p["ln_g2d"], p["ln_b2d"], p["pw1_w"], p["pw1_b2d"], p["dw_w"],
      p["bn_scale2d"], p["bn_shift2d"], p["pw2_w"], p["pw2_b2d"])


# ------------------------------ fused classifier + log_softmax ------------------------------

def _fc_logsoftmax_kernel(x_ref, w_ref, o_ref, *, valid_cols):
    y = jnp.dot(x_ref[...], w_ref[...], preferred_element_type=jnp.float32)
    col = lax.broadcasted_iota(jnp.int32, y.shape, 1)
    y = jnp.where(col < valid_cols, y, -1e30)          # mask padded (lane-dense) logit columns
    s = y - jnp.max(y, axis=-1, keepdims=True)
    o_ref[...] = s - jnp.log(jnp.sum(jnp.exp(s), axis=-1, keepdims=True))


def fc_log_softmax(x2d, w_padded, valid_cols):
    M, D = x2d.shape
    Cp = w_padded.shape[1]                              # multiple of 128 -> unmasked stores
    tm = _pick_row_tile(M)
    return pl.pallas_call(
        functools.partial(_fc_logsoftmax_kernel, valid_cols=valid_cols),
        out_shape=jax.ShapeDtypeStruct((M, Cp), jnp.float32),
        grid=(M // tm,),
        in_specs=[pl.BlockSpec((tm, D), lambda i: (i, 0)),
                  pl.BlockSpec((D, Cp), lambda i: (0, 0))],
        out_specs=pl.BlockSpec((tm, Cp), lambda i: (i, 0)),
        compiler_params=pltpu.CompilerParams(dimension_semantics=("parallel",)),
    )(x2d.astype(jnp.bfloat16), w_padded)


# ------------------------------ plain-JAX glue (index remaps only) ------------------------------

def im2col_3x3_s2(x):
    """x: (B, C, H, W) -> (B, Ho, Wo, C*9) patches of a valid 3x3 stride-2 conv."""
    B, C, H, W = x.shape
    Ho = (H - 3) // 2 + 1
    Wo = (W - 3) // 2 + 1
    cols = []
    for di in range(3):
        for dj in range(3):
            cols.append(x[:, :, di:di + 2 * Ho:2, dj:dj + 2 * Wo:2])
    patches = jnp.stack(cols, axis=2)            # (B, C, 9, Ho, Wo)
    patches = patches.transpose(0, 3, 4, 1, 2)   # (B, Ho, Wo, C, 9)
    return patches.reshape(B, Ho, Wo, C * 9)


def positional_encoding(length, d_model):
    pos = jnp.arange(length, dtype=jnp.float32)[:, None]
    div = jnp.exp(jnp.arange(0, d_model, 2, dtype=jnp.float32) * (-jnp.log(10000.0) / d_model))
    pe = jnp.zeros((length, d_model), jnp.float32)
    pe = pe.at[:, 0::2].set(jnp.sin(pos * div))
    pe = pe.at[:, 1::2].set(jnp.cos(pos * div))
    return pe


# ------------------------------ forward pass ------------------------------

def conformer_forward(params, inputs, input_lengths, cfg):
    B, T_in, F_in = inputs.shape
    D = cfg["encoder_dim"]
    H = cfg["num_heads"]
    K = cfg["conv_kernel_size"]
    C = cfg["num_classes"]

    # Conv2dSubsampling: two valid 3x3 stride-2 convs as im2col + fused matmul/ReLU on the MXU
    x = inputs.astype(jnp.float32)[:, None, :, :]                 # (B, 1, T, F) NCHW
    p1 = im2col_3x3_s2(x)
    _, T1, F1, P1 = p1.shape
    h1 = pl_linear(p1.reshape(B * T1 * F1, P1), params["sub_w1"], params["sub_b1"],
                   act="relu", out_dtype=jnp.bfloat16)
    h1 = h1.reshape(B, T1, F1, D).transpose(0, 3, 1, 2)           # (B, D, T1, F1)
    p2 = im2col_3x3_s2(h1)
    _, T2, F2, P2 = p2.shape
    h2 = pl_linear(p2.reshape(B * T2 * F2, P2), params["sub_w2"], params["sub_b2"],
                   act="relu", out_dtype=jnp.bfloat16)
    h2 = h2.reshape(B, T2, F2, D).transpose(0, 1, 3, 2).reshape(B, T2, D * F2)
    output_lengths = (input_lengths >> 2) - 1

    # input projection (dropout = identity)
    x = pl_linear(h2.reshape(B * T2, D * F2), params["proj_w"], params["proj_b"])
    x = x.reshape(B, T2, D)
    T = T2
    pe = positional_encoding(T, D)
    # TODO(synk): for production configs pad T (and D if not a multiple of 128) to lane-dense
    # sizes before the conformer blocks (with key masking in softmax) and slice at the end.

    # Conformer blocks: 4 fused pallas_calls per block (+1 tiny pos-proj matmul)
    for lp in params["layers"]:
        x = ffn_block(x.reshape(B * T, D), lp["ffn1"]).reshape(B, T, D)
        x = mhsa_block(x, pe, lp["mhsa"], H)
        x = conv_block(x, lp["conv"], K)
        x = ffn_block(x.reshape(B * T, D), lp["ffn2"],
                      post_ln=(lp["ln_g2d"], lp["ln_b2d"])).reshape(B, T, D)

    # classifier + log_softmax (fused, lane-dense padded classes), slice padding off outside
    logp = fc_log_softmax(x.reshape(B * T, D), params["fc_w"], C)[:, :C]
    return logp.reshape(B, T, C), output_lengths


# ------------------------------ parameter init / repack ------------------------------

def init_params(key, cfg):
    D = cfg["encoder_dim"]
    H = cfg["num_heads"]
    dh = D // H
    ff = cfg["ff_expansion"]
    K = cfg["conv_kernel_size"]
    F_sub = ((cfg["input_dim"] - 1) // 2 - 1) // 2
    C = cfg["num_classes"]
    keys = iter(jax.random.split(key, 256))

    def lin(in_d, out_d, bias=True):
        s = float(in_d) ** -0.5
        w = jax.random.uniform(next(keys), (in_d, out_d), jnp.float32, -s, s)
        if bias:
            b = jax.random.uniform(next(keys), (out_d,), jnp.float32, -s, s)
            return w, b
        return w

    params = {}
    params["sub_w1"], params["sub_b1"] = lin(1 * 9, D)        # Conv2d(1, D, 3, stride=2)
    params["sub_w2"], params["sub_b2"] = lin(D * 9, D)        # Conv2d(D, D, 3, stride=2)
    params["proj_w"], params["proj_b"] = lin(D * F_sub, D)

    layers = []
    for _ in range(cfg["num_layers"]):
        lp = {}
        for name in ("ffn1", "ffn2"):
            w1, b1 = lin(D, D * ff)
            w2, b2 = lin(D * ff, D)
            lp[name] = {"ln_g": jnp.ones((D,), jnp.float32), "ln_b": jnp.zeros((D,), jnp.float32),
                        "w1": w1, "b1": b1, "w2": w2, "b2": b2}
        wq, bq = lin(D, D)
        wk, bk = lin(D, D)
        wv, bv = lin(D, D)
        wpos = lin(D, D, bias=False)
        wo, bo = lin(D, D)
        lp["mhsa"] = {"ln_g": jnp.ones((D,), jnp.float32), "ln_b": jnp.zeros((D,), jnp.float32),
                      "wq": wq, "bq": bq, "wk": wk, "bk": bk, "wv": wv, "bv": bv,
                      "wpos": wpos,
                      "u_bias": jax.random.uniform(next(keys), (H, dh), jnp.float32, -0.1, 0.1),
                      "v_bias": jax.random.uniform(next(keys), (H, dh), jnp.float32, -0.1, 0.1),
                      "wo": wo, "bo": bo}
        pw1_w, pw1_b = lin(D, 2 * D)
        pw2_w, pw2_b = lin(D, D)
        s = float(K) ** -0.5
        dw = jax.random.uniform(next(keys), (K, D), jnp.float32, -s, s)
        lp["conv"] = {"ln_g": jnp.ones((D,), jnp.float32), "ln_b": jnp.zeros((D,), jnp.float32),
                      "pw1_w": pw1_w, "pw1_b": pw1_b, "dw_w": dw,
                      "bn_g": jnp.ones((D,), jnp.float32), "bn_b": jnp.zeros((D,), jnp.float32),
                      "bn_mean": jnp.zeros((D,), jnp.float32), "bn_var": jnp.ones((D,), jnp.float32),
                      "pw2_w": pw2_w, "pw2_b": pw2_b}
        lp["ln_g"] = jnp.ones((D,), jnp.float32)
        lp["ln_b"] = jnp.zeros((D,), jnp.float32)
        layers.append(lp)
    params["layers"] = layers
    params["fc_w"] = lin(D, C, bias=False)
    return params


def prepare_params(raw, cfg):
    """Repack PyTorch-shaped params for the fused kernels: bf16 MXU weights (f32 accumulation
    stays in-kernel), fused QKV weight, (1, D)-row biases/scales, BatchNorm folded to
    scale+shift, classifier weight zero-padded to a lane-dense multiple of 128 columns."""
    def bf(w):
        return w.astype(jnp.bfloat16)

    def row(v):
        return v.reshape(1, -1).astype(jnp.float32)

    C = raw["fc_w"].shape[1]
    Cp = ((C + 127) // 128) * 128
    fc_w = jnp.pad(raw["fc_w"], ((0, 0), (0, Cp - C)))

    p = {"sub_w1": bf(raw["sub_w1"]), "sub_b1": raw["sub_b1"],
         "sub_w2": bf(raw["sub_w2"]), "sub_b2": raw["sub_b2"],
         "proj_w": bf(raw["proj_w"]), "proj_b": raw["proj_b"],
         "fc_w": bf(fc_w)}
    layers = []
    for lr in raw["layers"]:
        lp = {}
        for name in ("ffn1", "ffn2"):
            q = lr[name]
            lp[name] = {"ln_g2d": row(q["ln_g"]), "ln_b2d": row(q["ln_b"]),
                        "w1": bf(q["w1"]), "b1_2d": row(q["b1"]),
                        "w2": bf(q["w2"]), "b2_2d": row(q["b2"])}
        m = lr["mhsa"]
        lp["mhsa"] = {"ln_g2d": row(m["ln_g"]), "ln_b2d": row(m["ln_b"]),
                      "wqkv": bf(jnp.concatenate([m["wq"], m["wk"], m["wv"]], axis=1)),
                      "bqkv2d": row(jnp.concatenate([m["bq"], m["bk"], m["bv"]], axis=0)),
                      "wpos": bf(m["wpos"]),
                      "u2d": row(m["u_bias"]), "v2d": row(m["v_bias"]),
                      "wo": bf(m["wo"]), "bo2d": row(m["bo"])}
        c = lr["conv"]
        bn_scale = c["bn_g"] * jax.lax.rsqrt(c["bn_var"] + 1e-5)
        bn_shift = c["bn_b"] - c["bn_mean"] * bn_scale
        lp["conv"] = {"ln_g2d": row(c["ln_g"]), "ln_b2d": row(c["ln_b"]),
                      "pw1_w": bf(c["pw1_w"]), "pw1_b2d": row(c["pw1_b"]),
                      "dw_w": c["dw_w"].astype(jnp.float32),
                      "bn_scale2d": row(bn_scale), "bn_shift2d": row(bn_shift),
                      "pw2_w": bf(c["pw2_w"]), "pw2_b2d": row(c["pw2_b"])}
        lp["ln_g2d"] = row(lr["ln_g"])
        lp["ln_b2d"] = row(lr["ln_b"])
        layers.append(lp)
    p["layers"] = layers
    return p


# ------------------------------ main ------------------------------

if __name__ == "__main__":
    cfg = dict(input_dim=16, encoder_dim=32, num_layers=2, num_heads=4,
               ff_expansion=4, conv_expansion=2, conv_kernel_size=31,
               num_classes=10)

    key = jax.random.PRNGKey(0)
    pkey, xkey = jax.random.split(key)
    params = prepare_params(init_params(pkey, cfg), cfg)

    B, T_in = 2, 16
    inputs = jax.random.normal(xkey, (B, T_in, cfg["input_dim"]), jnp.float32)
    input_lengths = jnp.array([16, 12], jnp.int32)

    fwd = jax.jit(functools.partial(conformer_forward, cfg=cfg))
    outputs, out_lens = fwd(params, inputs, input_lengths)
    outputs = jax.block_until_ready(outputs)
    out_lens = jax.block_until_ready(out_lens)

    T_sub = (((T_in - 3) // 2 + 1) - 3) // 2 + 1     # two valid 3x3 stride-2 convs
    assert outputs.shape == (B, T_sub, cfg["num_classes"]), outputs.shape
    assert out_lens.shape == (B,)
    assert bool(jnp.all(jnp.isfinite(outputs)))
    # log_softmax rows should sum (in prob space) to ~1
    assert bool(jnp.allclose(jnp.sum(jnp.exp(outputs), axis=-1), 1.0, atol=1e-4))
    print("KERNEL_OK")
</pallas_src>

<mosaic_0001>
module attributes {stable_mosaic.version = 11 : i64} {
  func.func @_linear_kernel(%arg0: i32, %arg1: memref<98x9xbf16, #tpu.memory_space<vmem>>, %arg2: memref<9x32xbf16, #tpu.memory_space<vmem>>, %arg3: memref<1x32xf32, #tpu.memory_space<vmem>>, %arg4: memref<98x32xbf16, #tpu.memory_space<vmem>>) attributes {dimension_semantics = [#tpu.dimension_semantics<parallel>], iteration_bounds = array<i64: 1>, scalar_prefetch = 0 : i64, scratch_operands = 0 : i64, tpu.core_type = #tpu.core_type<tc>, window_params = [{transform_indices = @transform_0, window_bounds = array<i64: 98, 9>}, {pipeline_mode = #tpu.pipeline_mode<synchronous>, transform_indices = @transform_1, window_bounds = array<i64: 9, 32>}, {pipeline_mode = #tpu.pipeline_mode<synchronous>, transform_indices = @transform_2, window_bounds = array<i64: 1, 32>}, {transform_indices = @transform_3, window_bounds = array<i64: 98, 32>}]} {
    %c0 = arith.constant 0 : index
    %c0_0 = arith.constant 0 : index
    %0 = vector.load %arg1[%c0, %c0_0] : memref<98x9xbf16, #tpu.memory_space<vmem>>, vector<98x9xbf16>
    %c0_1 = arith.constant 0 : index
    %c0_2 = arith.constant 0 : index
    %1 = vector.load %arg2[%c0_1, %c0_2] : memref<9x32xbf16, #tpu.memory_space<vmem>>, vector<9x32xbf16>
    %cst = arith.constant dense<0.000000e+00> : vector<98x32xf32>
    %2 = tpu.matmul %0, %1, %cst {dimension_numbers = #tpu.dot_dimension_numbers<[1], [0], [0], [1], [0, 0, 1, 1], [], []>} : vector<98x9xbf16>, vector<9x32xbf16>, vector<98x32xf32> -> vector<98x32xf32>
    %c0_3 = arith.constant 0 : index
    %c0_4 = arith.constant 0 : index
    %3 = vector.load %arg3[%c0_3, %c0_4] : memref<1x32xf32, #tpu.memory_space<vmem>>, vector<1x32xf32>
    %4 = vector.broadcast %3 : vector<1x32xf32> to vector<98x32xf32>
    %5 = arith.addf %2, %4 : vector<98x32xf32>
    %cst_5 = arith.constant 0.000000e+00 : f32
    %6 = vector.broadcast %cst_5 : f32 to vector<98x32xf32>
    %7 = arith.maximumf %5, %6 : vector<98x32xf32>
    %8 = arith.truncf %7 : vector<98x32xf32> to vector<98x32xbf16>
    %c0_6 = arith.constant 0 : index
    %c0_7 = arith.constant 0 : index
    %9 = vector.load %arg4[%c0_6, %c0_7] : memref<98x32xbf16, #tpu.memory_space<vmem>>, vector<98x32xbf16>
    tpu.vector_store %arg4[%c0_6, %c0_7], %8 {strides = array<i32>} : memref<98x32xbf16, #tpu.memory_space<vmem>>, vector<98x32xbf16>,
    return
  }
  func.func @transform_0(%arg0: i32) -> (i32, i32) {
    %c0_i32 = arith.constant 0 : i32
    %c0_i32_0 = arith.constant 0 : i32
    return %arg0, %c0_i32 : i32, i32
  }
  func.func @transform_1(%arg0: i32) -> (i32, i32) {
    %c0_i32 = arith.constant 0 : i32
    %c0_i32_0 = arith.constant 0 : i32
    %c0_i32_1 = arith.constant 0 : i32
    return %c0_i32, %c0_i32_0 : i32, i32
  }
  func.func @transform_2(%arg0: i32) -> (i32, i32) {
    %c0_i32 = arith.constant 0 : i32
    %c0_i32_0 = arith.constant 0 : i32
    %c0_i32_1 = arith.constant 0 : i32
    return %c0_i32, %c0_i32_0 : i32, i32
  }
  func.func @transform_3(%arg0: i32) -> (i32, i32) {
    %c0_i32 = arith.constant 0 : i32
    %c0_i32_0 = arith.constant 0 : i32
    return %arg0, %c0_i32 : i32, i32
  }
}

module attributes {stable_mosaic.version = 11 : i64} {
  func.func @_linear_kernel(%arg0: i32, %arg1: memref<18x288xbf16, #tpu.memory_space<vmem>>, %arg2: memref<288x32xbf16, #tpu.memory_space<vmem>>, %arg3: memref<1x32xf32, #tpu.memory_space<vmem>>, %arg4: memref<18x32xbf16, #tpu.memory_space<vmem>>) attributes {dimension_semantics = [#tpu.dimension_semantics<parallel>], iteration_bounds = array<i64: 1>, scalar_prefetch = 0 : i64, scratch_operands = 0 : i64, tpu.core_type = #tpu.core_type<tc>, window_params = [{transform_indices = @transform_0, window_bounds = array<i64: 18, 288>}, {pipeline_mode = #tpu.pipeline_mode<synchronous>, transform_indices = @transform_1, window_bounds = array<i64: 288, 32>}, {pipeline_mode = #tpu.pipeline_mode<synchronous>, transform_indices = @transform_2, window_bounds = array<i64: 1, 32>}, {transform_indices = @transform_3, window_bounds = array<i64: 18, 32>}]} {
    %c0 = arith.constant 0 : index
    %c0_0 = arith.constant 0 : index
    %0 = vector.load %arg1[%c0, %c0_0] : memref<18x288xbf16, #tpu.memory_space<vmem>>, vector<18x288xbf16>
    %c0_1 = arith.constant 0 : index
    %c0_2 = arith.constant 0 : index
    %1 = vector.load %arg2[%c0_1, %c0_2] : memref<288x32xbf16, #tpu.memory_space<vmem>>, vector<288x32xbf16>
    %cst = arith.constant dense<0.000000e+00> : vector<18x32xf32>
    %2 = tpu.matmul %0, %1, %cst {dimension_numbers = #tpu.dot_dimension_numbers<[1], [0], [0], [1], [0, 0, 1, 1], [], []>} : vector<18x288xbf16>, vector<288x32xbf16>, vector<18x32xf32> -> vector<18x32xf32>
    %c0_3 = arith.constant 0 : index
    %c0_4 = arith.constant 0 : index
    %3 = vector.load %arg3[%c0_3, %c0_4] : memref<1x32xf32, #tpu.memory_space<vmem>>, vector<1x32xf32>
    %4 = vector.broadcast %3 : vector<1x32xf32> to vector<18x32xf32>
    %5 = arith.addf %2, %4 : vector<18x32xf32>
    %cst_5 = arith.constant 0.000000e+00 : f32
    %6 = vector.broadcast %cst_5 : f32 to vector<18x32xf32>
    %7 = arith.maximumf %5, %6 : vector<18x32xf32>
    %8 = arith.truncf %7 : vector<18x32xf32> to vector<18x32xbf16>
    %c0_6 = arith.constant 0 : index
    %c0_7 = arith.constant 0 : index
    %9 = vector.load %arg4[%c0_6, %c0_7] : memref<18x32xbf16, #tpu.memory_space<vmem>>, vector<18x32xbf16>
    tpu.vector_store %arg4[%c0_6, %c0_7], %8 {strides = array<i32>} : memref<18x32xbf16, #tpu.memory_space<vmem>>, vector<18x32xbf16>,
    return
  }
  func.func @transform_0(%arg0: i32) -> (i32, i32) {
    %c0_i32 = arith.constant 0 : i32
    %c0_i32_0 = arith.constant 0 : i32
    return %arg0, %c0_i32 : i32, i32
  }
  func.func @transform_1(%arg0: i32) -> (i32, i32) {
    %c0_i32 = arith.constant 0 : i32
    %c0_i32_0 = arith.constant 0 : i32
    %c0_i32_1 = arith.constant 0 : i32
    return %c0_i32, %c0_i32_0 : i32, i32
  }
  func.func @transform_2(%arg0: i32) -> (i32, i32) {
    %c0_i32 = arith.constant 0 : i32
    %c0_i32_0 = arith.constant 0 : i32
    %c0_i32_1 = arith.constant 0 : i32
    return %c0_i32, %c0_i32_0 : i32, i32
  }
  func.func @transform_3(%arg0: i32) -> (i32, i32) {
    %c0_i32 = arith.constant 0 : i32
    %c0_i32_0 = arith.constant 0 : i32
    return %arg0, %c0_i32 : i32, i32
  }
}

module attributes {stable_mosaic.version = 11 : i64} {
  func.func @_ffn_kernel(%arg0: i32, %arg1: memref<6x32xf32, #tpu.memory_space<vmem>>, %arg2: memref<1x32xf32, #tpu.memory_space<vmem>>, %arg3: memref<1x32xf32, #tpu.memory_space<vmem>>, %arg4: memref<32x128xbf16, #tpu.memory_space<vmem>>, %arg5: memref<1x128xf32, #tpu.memory_space<vmem>>, %arg6: memref<128x32xbf16, #tpu.memory_space<vmem>>, %arg7: memref<1x32xf32, #tpu.memory_space<vmem>>, %arg8: memref<1x32xf32, #tpu.memory_space<vmem>>, %arg9: memref<1x32xf32, #tpu.memory_space<vmem>>, %arg10: memref<6x32xf32, #tpu.memory_space<vmem>>) attributes {dimension_semantics = [#tpu.dimension_semantics<parallel>], iteration_bounds = array<i64: 1>, scalar_prefetch = 0 : i64, scratch_operands = 0 : i64, tpu.core_type = #tpu.core_type<tc>, window_params = [{transform_indices = @transform_0, window_bounds = array<i64: 6, 32>}, {pipeline_mode = #tpu.pipeline_mode<synchronous>, transform_indices = @transform_1, window_bounds = array<i64: 1, 32>}, {pipeline_mode = #tpu.pipeline_mode<synchronous>, transform_indices = @transform_2, window_bounds = array<i64: 1, 32>}, {pipeline_mode = #tpu.pipeline_mode<synchronous>, transform_indices = @transform_3, window_bounds = array<i64: 32, 128>}, {pipeline_mode = #tpu.pipeline_mode<synchronous>, transform_indices = @transform_4, window_bounds = array<i64: 1, 128>}, {pipeline_mode = #tpu.pipeline_mode<synchronous>, transform_indices = @transform_5, window_bounds = array<i64: 128, 32>}, {pipeline_mode = #tpu.pipeline_mode<synchronous>, transform_indices = @transform_6, window_bounds = array<i64: 1, 32>}, {pipeline_mode = #tpu.pipeline_mode<synchronous>, transform_indices = @transform_7, window_bounds = array<i64: 1, 32>}, {pipeline_mode = #tpu.pipeline_mode<synchronous>, transform_indices = @transform_8, window_bounds = array<i64: 1, 32>}, {transform_indices = @transform_9, window_bounds = array<i64: 6, 32>}]} {
    %c0 = arith.constant 0 : index
    %c0_0 = arith.constant 0 : index
    %0 = vector.load %arg1[%c0, %c0_0] : memref<6x32xf32, #tpu.memory_space<vmem>>, vector<6x32xf32>
    %c0_1 = arith.constant 0 : index
    %c0_2 = arith.constant 0 : index
    %1 = vector.load %arg2[%c0_1, %c0_2] : memref<1x32xf32, #tpu.memory_space<vmem>>, vector<1x32xf32>
    %c0_3 = arith.constant 0 : index
    %c0_4 = arith.constant 0 : index
    %2 = vector.load %arg3[%c0_3, %c0_4] : memref<1x32xf32, #tpu.memory_space<vmem>>, vector<1x32xf32>
    %cst = arith.constant dense<0.000000e+00> : vector<6xf32>
    %3 = vector.multi_reduction <add>, %0, %cst [1] : vector<6x32xf32> to vector<6xf32>
    %4 = vector.shape_cast %3 : vector<6xf32> to vector<6x1xf32>
    %cst_5 = arith.constant 3.200000e+01 : f32
    %5 = vector.broadcast %cst_5 : f32 to vector<6x1xf32>
    %6 = arith.divf %4, %5 : vector<6x1xf32>
    %7 = vector.broadcast %6 : vector<6x1xf32> to vector<6x32xf32>
    %8 = arith.subf %0, %7 : vector<6x32xf32>
    %9 = arith.mulf %8, %8 : vector<6x32xf32>
    %cst_6 = arith.constant dense<0.000000e+00> : vector<6xf32>
    %10 = vector.multi_reduction <add>, %9, %cst_6 [1] : vector<6x32xf32> to vector<6xf32>
    %11 = vector.shape_cast %10 : vector<6xf32> to vector<6x1xf32>
    %cst_7 = arith.constant 3.200000e+01 : f32
    %12 = vector.broadcast %cst_7 : f32 to vector<6x1xf32>
    %13 = arith.divf %11, %12 : vector<6x1xf32>
    %14 = vector.broadcast %6 : vector<6x1xf32> to vector<6x32xf32>
    %15 = arith.subf %0, %14 : vector<6x32xf32>
    %cst_8 = arith.constant 9.99999974E-6 : f32
    %16 = vector.broadcast %cst_8 : f32 to vector<6x1xf32>
    %17 = arith.addf %13, %16 : vector<6x1xf32>
    %18 = math.rsqrt %17 : vector<6x1xf32>
    %19 = vector.broadcast %18 : vector<6x1xf32> to vector<6x32xf32>
    %20 = arith.mulf %15, %19 : vector<6x32xf32>
    %21 = vector.broadcast %1 : vector<1x32xf32> to vector<6x32xf32>
    %22 = arith.mulf %20, %21 : vector<6x32xf32>
    %23 = vector.broadcast %2 : vector<1x32xf32> to vector<6x32xf32>
    %24 = arith.addf %22, %23 : vector<6x32xf32>
    %25 = arith.truncf %24 : vector<6x32xf32> to vector<6x32xbf16>
    %c0_9 = arith.constant 0 : index
    %c0_10 = arith.constant 0 : index
    %26 = vector.load %arg4[%c0_9, %c0_10] : memref<32x128xbf16, #tpu.memory_space<vmem>>, vector<32x128xbf16>
    %cst_11 = arith.constant dense<0.000000e+00> : vector<6x128xf32>
    %27 = tpu.matmul %25, %26, %cst_11 {dimension_numbers = #tpu.dot_dimension_numbers<[1], [0], [0], [1], [0, 0, 1, 1], [], []>} : vector<6x32xbf16>, vector<32x128xbf16>, vector<6x128xf32> -> vector<6x128xf32>
    %c0_12 = arith.constant 0 : index
    %c0_13 = arith.constant 0 : index
    %28 = vector.load %arg5[%c0_12, %c0_13] : memref<1x128xf32, #tpu.memory_space<vmem>>, vector<1x128xf32>
    %29 = vector.broadcast %28 : vector<1x128xf32> to vector<6x128xf32>
    %30 = arith.addf %27, %29 : vector<6x128xf32>
    %cst_14 = arith.constant 0.000000e+00 : f32
    %31 = vector.broadcast %cst_14 : f32 to vector<6x128xf32>
    %32 = arith.subf %31, %30 : vector<6x128xf32>
    %33 = math.exp %32 : vector<6x128xf32>
    %cst_15 = arith.constant 1.000000e+00 : f32
    %34 = vector.broadcast %cst_15 : f32 to vector<6x128xf32>
    %35 = arith.addf %34, %33 : vector<6x128xf32>
    %cst_16 = arith.constant 1.000000e+00 : f32
    %36 = vector.broadcast %cst_16 : f32 to vector<6x128xf32>
    %37 = arith.divf %36, %35 : vector<6x128xf32>
    %38 = arith.mulf %30, %37 : vector<6x128xf32>
    %39 = arith.truncf %38 : vector<6x128xf32> to vector<6x128xbf16>
    %c0_17 = arith.constant 0 : index
    %c0_18 = arith.constant 0 : index
    %40 = vector.load %arg6[%c0_17, %c0_18] : memref<128x32xbf16, #tpu.memory_space<vmem>>, vector<128x32xbf16>
    %cst_19 = arith.constant dense<0.000000e+00> : vector<6x32xf32>
    %41 = tpu.matmul %39, %40, %cst_19 {dimension_numbers = #tpu.dot_dimension_numbers<[1], [0], [0], [1], [0, 0, 1, 1], [], []>} : vector<6x128xbf16>, vector<128x32xbf16>, vector<6x32xf32> -> vector<6x32xf32>
    %c0_20 = arith.constant 0 : index
    %c0_21 = arith.constant 0 : index
    %42 = vector.load %arg7[%c0_20, %c0_21] : memref<1x32xf32, #tpu.memory_space<vmem>>, vector<1x32xf32>
    %43 = vector.broadcast %42 : vector<1x32xf32> to vector<6x32xf32>
    %44 = arith.addf %41, %43 : vector<6x32xf32>
    %cst_22 = arith.constant 5.000000e-01 : f32
    %45 = vector.broadcast %cst_22 : f32 to vector<6x32xf32>
    %46 = arith.mulf %45, %44 : vector<6x32xf32>
    %47 = arith.addf %0, %46 : vector<6x32xf32>
    %c0_23 = arith.constant 0 : index
    %c0_24 = arith.constant 0 : index
    %48 = vector.load %arg10[%c0_23, %c0_24] : memref<6x32xf32, #tpu.memory_space<vmem>>, vector<6x32xf32>
    tpu.vector_store %arg10[%c0_23, %c0_24], %47 {strides = array<i32>} : memref<6x32xf32, #tpu.memory_space<vmem>>, vector<6x32xf32>,
    return
  }
  func.func @transform_0(%arg0: i32) -> (i32, i32) {
    %c0_i32 = arith.constant 0 : i32
    %c0_i32_0 = arith.constant 0 : i32
    return %arg0, %c0_i32 : i32, i32
  }
  func.func @transform_1(%arg0: i32) -> (i32, i32) {
    %c0_i32 = arith.constant 0 : i32
    %c0_i32_0 = arith.constant 0 : i32
    %c0_i32_1 = arith.constant 0 : i32
    return %c0_i32, %c0_i32_0 : i32, i32
  }
  func.func @transform_2(%arg0: i32) -> (i32, i32) {
    %c0_i32 = arith.constant 0 : i32
    %c0_i32_0 = arith.constant 0 : i32
    %c0_i32_1 = arith.constant 0 : i32
    return %c0_i32, %c0_i32_0 : i32, i32
  }
  func.func @transform_3(%arg0: i32) -> (i32, i32) {
    %c0_i32 = arith.constant 0 : i32
    %c0_i32_0 = arith.constant 0 : i32
    %c0_i32_1 = arith.constant 0 : i32
    return %c0_i32, %c0_i32_0 : i32, i32
  }
  func.func @transform_4(%arg0: i32) -> (i32, i32) {
    %c0_i32 = arith.constant 0 : i32
    %c0_i32_0 = arith.constant 0 : i32
    %c0_i32_1 = arith.constant 0 : i32
    return %c0_i32, %c0_i32_0 : i32, i32
  }
  func.func @transform_5(%arg0: i32) -> (i32, i32) {
    %c0_i32 = arith.constant 0 : i32
    %c0_i32_0 = arith.constant 0 : i32
    %c0_i32_1 = arith.constant 0 : i32
    return %c0_i32, %c0_i32_0 : i32, i32
  }
  func.func @transform_6(%arg0: i32) -> (i32, i32) {
    %c0_i32 = arith.constant 0 : i32
    %c0_i32_0 = arith.constant 0 : i32
    %c0_i32_1 = arith.constant 0 : i32
    return %c0_i32, %c0_i32_0 : i32, i32
  }
  func.func @transform_7(%arg0: i32) -> (i32, i32) {
    %c0_i32 = arith.constant 0 : i32
    %c0_i32_0 = arith.constant 0 : i32
    %c0_i32_1 = arith.constant 0 : i32
    return %c0_i32, %c0_i32_0 : i32, i32
  }
  func.func @transform_8(%arg0: i32) -> (i32, i32) {
    %c0_i32 = arith.constant 0 : i32
    %c0_i32_0 = arith.constant 0 : i32
    %c0_i32_1 = arith.constant 0 : i32
    return %c0_i32, %c0_i32_0 : i32, i32
  }
  func.func @transform_9(%arg0: i32) -> (i32, i32) {
    %c0_i32 = arith.constant 0 : i32
    %c0_i32_0 = arith.constant 0 : i32
    return %arg0, %c0_i32 : i32, i32
  }
}

module attributes {stable_mosaic.version = 11 : i64} {
  func.func @_linear_kernel(%arg0: i32, %arg1: memref<6x96xbf16, #tpu.memory_space<vmem>>, %arg2: memref<96x32xbf16, #tpu.memory_space<vmem>>, %arg3: memref<1x32xf32, #tpu.memory_space<vmem>>, %arg4: memref<6x32xf32, #tpu.memory_space<vmem>>) attributes {dimension_semantics = [#tpu.dimension_semantics<parallel>], iteration_bounds = array<i64: 1>, scalar_prefetch = 0 : i64, scratch_operands = 0 : i64, tpu.core_type = #tpu.core_type<tc>, window_params = [{transform_indices = @transform_0, window_bounds = array<i64: 6, 96>}, {pipeline_mode = #tpu.pipeline_mode<synchronous>, transform_indices = @transform_1, window_bounds = array<i64: 96, 32>}, {pipeline_mode = #tpu.pipeline_mode<synchronous>, transform_indices = @transform_2, window_bounds = array<i64: 1, 32>}, {transform_indices = @transform_3, window_bounds = array<i64: 6, 32>}]} {
    %c0 = arith.constant 0 : index
    %c0_0 = arith.constant 0 : index
    %0 = vector.load %arg1[%c0, %c0_0] : memref<6x96xbf16, #tpu.memory_space<vmem>>, vector<6x96xbf16>
    %c0_1 = arith.constant 0 : index
    %c0_2 = arith.constant 0 : index
    %1 = vector.load %arg2[%c0_1, %c0_2] : memref<96x32xbf16, #tpu.memory_space<vmem>>, vector<96x32xbf16>
    %cst = arith.constant dense<0.000000e+00> : vector<6x32xf32>
    %2 = tpu.matmul %0, %1, %cst {dimension_numbers = #tpu.dot_dimension_numbers<[1], [0], [0], [1], [0, 0, 1, 1], [], []>} : vector<6x96xbf16>, vector<96x32xbf16>, vector<6x32xf32> -> vector<6x32xf32>
    %c0_3 = arith.constant 0 : index
    %c0_4 = arith.constant 0 : index
    %3 = vector.load %arg3[%c0_3, %c0_4] : memref<1x32xf32, #tpu.memory_space<vmem>>, vector<1x32xf32>
    %4 = vector.broadcast %3 : vector<1x32xf32> to vector<6x32xf32>
    %5 = arith.addf %2, %4 : vector<6x32xf32>
    %c0_5 = arith.constant 0 : index
    %c0_6 = arith.constant 0 : index
    %6 = vector.load %arg4[%c0_5, %c0_6] : memref<6x32xf32, #tpu.memory_space<vmem>>, vector<6x32xf32>
    tpu.vector_store %arg4[%c0_5, %c0_6], %5 {strides = array<i32>} : memref<6x32xf32, #tpu.memory_space<vmem>>, vector<6x32xf32>,
    return
  }
  func.func @transform_0(%arg0: i32) -> (i32, i32) {
    %c0_i32 = arith.constant 0 : i32
    %c0_i32_0 = arith.constant 0 : i32
    return %arg0, %c0_i32 : i32, i32
  }
  func.func @transform_1(%arg0: i32) -> (i32, i32) {
    %c0_i32 = arith.constant 0 : i32
    %c0_i32_0 = arith.constant 0 : i32
    %c0_i32_1 = arith.constant 0 : i32
    return %c0_i32, %c0_i32_0 : i32, i32
  }
  func.func @transform_2(%arg0: i32) -> (i32, i32) {
    %c0_i32 = arith.constant 0 : i32
    %c0_i32_0 = arith.constant 0 : i32
    %c0_i32_1 = arith.constant 0 : i32
    return %c0_i32, %c0_i32_0 : i32, i32
  }
  func.func @transform_3(%arg0: i32) -> (i32, i32) {
    %c0_i32 = arith.constant 0 : i32
    %c0_i32_0 = arith.constant 0 : i32
    return %arg0, %c0_i32 : i32, i32
  }
}

module attributes {stable_mosaic.version = 11 : i64} {
  func.func @_linear_kernel(%arg0: i32, %arg1: memref<3x32xbf16, #tpu.memory_space<vmem>>, %arg2: memref<32x32xbf16, #tpu.memory_space<vmem>>, %arg3: memref<1x32xf32, #tpu.memory_space<vmem>>, %arg4: memref<3x32xbf16, #tpu.memory_space<vmem>>) attributes {dimension_semantics = [#tpu.dimension_semantics<parallel>], iteration_bounds = array<i64: 1>, scalar_prefetch = 0 : i64, scratch_operands = 0 : i64, tpu.core_type = #tpu.core_type<tc>, window_params = [{transform_indices = @transform_0, window_bounds = array<i64: 3, 32>}, {pipeline_mode = #tpu.pipeline_mode<synchronous>, transform_indices = @transform_1, window_bounds = array<i64: 32, 32>}, {pipeline_mode = #tpu.pipeline_mode<synchronous>, transform_indices = @transform_2, window_bounds = array<i64: 1, 32>}, {transform_indices = @transform_3, window_bounds = array<i64: 3, 32>}]} {
    %c0 = arith.constant 0 : index
    %c0_0 = arith.constant 0 : index
    %0 = vector.load %arg1[%c0, %c0_0] : memref<3x32xbf16, #tpu.memory_space<vmem>>, vector<3x32xbf16>
    %c0_1 = arith.constant 0 : index
    %c0_2 = arith.constant 0 : index
    %1 = vector.load %arg2[%c0_1, %c0_2] : memref<32x32xbf16, #tpu.memory_space<vmem>>, vector<32x32xbf16>
    %cst = arith.constant dense<0.000000e+00> : vector<3x32xf32>
    %2 = tpu.matmul %0, %1, %cst {dimension_numbers = #tpu.dot_dimension_numbers<[1], [0], [0], [1], [0, 0, 1, 1], [], []>} : vector<3x32xbf16>, vector<32x32xbf16>, vector<3x32xf32> -> vector<3x32xf32>
    %c0_3 = arith.constant 0 : index
    %c0_4 = arith.constant 0 : index
    %3 = vector.load %arg3[%c0_3, %c0_4] : memref<1x32xf32, #tpu.memory_space<vmem>>, vector<1x32xf32>
    %4 = vector.broadcast %3 : vector<1x32xf32> to vector<3x32xf32>
    %5 = arith.addf %2, %4 : vector<3x32xf32>
    %6 = arith.truncf %5 : vector<3x32xf32> to vector<3x32xbf16>
    %c0_5 = arith.constant 0 : index
    %c0_6 = arith.constant 0 : index
    %7 = vector.load %arg4[%c0_5, %c0_6] : memref<3x32xbf16, #tpu.memory_space<vmem>>, vector<3x32xbf16>
    tpu.vector_store %arg4[%c0_5, %c0_6], %6 {strides = array<i32>} : memref<3x32xbf16, #tpu.memory_space<vmem>>, vector<3x32xbf16>,
    return
  }
  func.func @transform_0(%arg0: i32) -> (i32, i32) {
    %c0_i32 = arith.constant 0 : i32
    %c0_i32_0 = arith.constant 0 : i32
    return %arg0, %c0_i32 : i32, i32
  }
  func.func @transform_1(%arg0: i32) -> (i32, i32) {
    %c0_i32 = arith.constant 0 : i32
    %c0_i32_0 = arith.constant 0 : i32
    %c0_i32_1 = arith.constant 0 : i32
    return %c0_i32, %c0_i32_0 : i32, i32
  }
  func.func @transform_2(%arg0: i32) -> (i32, i32) {
    %c0_i32 = arith.constant 0 : i32
    %c0_i32_0 = arith.constant 0 : i32
    %c0_i32_1 = arith.constant 0 : i32
    return %c0_i32, %c0_i32_0 : i32, i32
  }
  func.func @transform_3(%arg0: i32) -> (i32, i32) {
    %c0_i32 = arith.constant 0 : i32
    %c0_i32_0 = arith.constant 0 : i32
    return %arg0, %c0_i32 : i32, i32
  }
}

module attributes {stable_mosaic.version = 11 : i64} {
  func.func @_mhsa_kernel(%arg0: i32, %arg1: memref<1x3x32xf32, #tpu.memory_space<vmem>>, %arg2: memref<3x32xbf16, #tpu.memory_space<vmem>>, %arg3: memref<1x32xf32, #tpu.memory_space<vmem>>, %arg4: memref<1x32xf32, #tpu.memory_space<vmem>>, %arg5: memref<32x96xbf16, #tpu.memory_space<vmem>>, %arg6: memref<1x96xf32, #tpu.memory_space<vmem>>, %arg7: memref<1x32xf32, #tpu.memory_space<vmem>>, %arg8: memref<1x32xf32, #tpu.memory_space<vmem>>, %arg9: memref<32x32xbf16, #tpu.memory_space<vmem>>, %arg10: memref<1x32xf32, #tpu.memory_space<vmem>>, %arg11: memref<1x3x32xf32, #tpu.memory_space<vmem>>) attributes {dimension_semantics = [#tpu.dimension_semantics<parallel>], iteration_bounds = array<i64: 2>, scalar_prefetch = 0 : i64, scratch_operands = 0 : i64, tpu.core_type = #tpu.core_type<tc>, window_params = [{transform_indices = @transform_0, window_bounds = array<i64: 1, 3, 32>}, {pipeline_mode = #tpu.pipeline_mode<synchronous>, transform_indices = @transform_1, window_bounds = array<i64: 3, 32>}, {pipeline_mode = #tpu.pipeline_mode<synchronous>, transform_indices = @transform_2, window_bounds = array<i64: 1, 32>}, {pipeline_mode = #tpu.pipeline_mode<synchronous>, transform_indices = @transform_3, window_bounds = array<i64: 1, 32>}, {pipeline_mode = #tpu.pipeline_mode<synchronous>, transform_indices = @transform_4, window_bounds = array<i64: 32, 96>}, {pipeline_mode = #tpu.pipeline_mode<synchronous>, transform_indices = @transform_5, window_bounds = array<i64: 1, 96>}, {pipeline_mode = #tpu.pipeline_mode<synchronous>, transform_indices = @transform_6, window_bounds = array<i64: 1, 32>}, {pipeline_mode = #tpu.pipeline_mode<synchronous>, transform_indices = @transform_7, window_bounds = array<i64: 1, 32>}, {pipeline_mode = #tpu.pipeline_mode<synchronous>, transform_indices = @transform_8, window_bounds = array<i64: 32, 32>}, {pipeline_mode = #tpu.pipeline_mode<synchronous>, transform_indices = @transform_9, window_bounds = array<i64: 1, 32>}, {transform_indices = @transform_10, window_bounds = array<i64: 1, 3, 32>}]} {
    %c0 = arith.constant 0 : index
    %c0_0 = arith.constant 0 : index
    %c0_1 = arith.constant 0 : index
    %0 = vector.load %arg1[%c0, %c0_0, %c0_1] : memref<1x3x32xf32, #tpu.memory_space<vmem>>, vector<1x3x32xf32>
    %1 = vector.shape_cast %0 : vector<1x3x32xf32> to vector<3x32xf32>
    %c0_2 = arith.constant 0 : index
    %c0_3 = arith.constant 0 : index
    %2 = vector.load %arg3[%c0_2, %c0_3] : memref<1x32xf32, #tpu.memory_space<vmem>>, vector<1x32xf32>
    %c0_4 = arith.constant 0 : index
    %c0_5 = arith.constant 0 : index
    %3 = vector.load %arg4[%c0_4, %c0_5] : memref<1x32xf32, #tpu.memory_space<vmem>>, vector<1x32xf32>
    %cst = arith.constant dense<0.000000e+00> : vector<3xf32>
    %4 = vector.multi_reduction <add>, %1, %cst [1] : vector<3x32xf32> to vector<3xf32>
    %5 = vector.shape_cast %4 : vector<3xf32> to vector<3x1xf32>
    %cst_6 = arith.constant 3.200000e+01 : f32
    %6 = vector.broadcast %cst_6 : f32 to vector<3x1xf32>
    %7 = arith.divf %5, %6 : vector<3x1xf32>
    %8 = vector.broadcast %7 : vector<3x1xf32> to vector<3x32xf32>
    %9 = arith.subf %1, %8 : vector<3x32xf32>
    %10 = arith.mulf %9, %9 : vector<3x32xf32>
    %cst_7 = arith.constant dense<0.000000e+00> : vector<3xf32>
    %11 = vector.multi_reduction <add>, %10, %cst_7 [1] : vector<3x32xf32> to vector<3xf32>
    %12 = vector.shape_cast %11 : vector<3xf32> to vector<3x1xf32>
    %cst_8 = arith.constant 3.200000e+01 : f32
    %13 = vector.broadcast %cst_8 : f32 to vector<3x1xf32>
    %14 = arith.divf %12, %13 : vector<3x1xf32>
    %15 = vector.broadcast %7 : vector<3x1xf32> to vector<3x32xf32>
    %16 = arith.subf %1, %15 : vector<3x32xf32>
    %cst_9 = arith.constant 9.99999974E-6 : f32
    %17 = vector.broadcast %cst_9 : f32 to vector<3x1xf32>
    %18 = arith.addf %14, %17 : vector<3x1xf32>
    %19 = math.rsqrt %18 : vector<3x1xf32>
    %20 = vector.broadcast %19 : vector<3x1xf32> to vector<3x32xf32>
    %21 = arith.mulf %16, %20 : vector<3x32xf32>
    %22 = vector.broadcast %2 : vector<1x32xf32> to vector<3x32xf32>
    %23 = arith.mulf %21, %22 : vector<3x32xf32>
    %24 = vector.broadcast %3 : vector<1x32xf32> to vector<3x32xf32>
    %25 = arith.addf %23, %24 : vector<3x32xf32>
    %26 = arith.truncf %25 : vector<3x32xf32> to vector<3x32xbf16>
    %c0_10 = arith.constant 0 : index
    %c0_11 = arith.constant 0 : index
    %27 = vector.load %arg5[%c0_10, %c0_11] : memref<32x96xbf16, #tpu.memory_space<vmem>>, vector<32x96xbf16>
    %cst_12 = arith.constant dense<0.000000e+00> : vector<3x96xf32>
    %28 = tpu.matmul %26, %27, %cst_12 {dimension_numbers = #tpu.dot_dimension_numbers<[1], [0], [0], [1], [0, 0, 1, 1], [], []>} : vector<3x32xbf16>, vector<32x96xbf16>, vector<3x96xf32> -> vector<3x96xf32>
    %c0_13 = arith.constant 0 : index
    %c0_14 = arith.constant 0 : index
    %29 = vector.load %arg6[%c0_13, %c0_14] : memref<1x96xf32, #tpu.memory_space<vmem>>, vector<1x96xf32>
    %30 = vector.broadcast %29 : vector<1x96xf32> to vector<3x96xf32>
    %31 = arith.addf %28, %30 : vector<3x96xf32>
    %32 = vector.extract_strided_slice %31 {offsets = [0, 0], sizes = [3, 32], strides = [1, 1]} : vector<3x96xf32> to vector<3x32xf32>
    %33 = vector.extract_strided_slice %31 {offsets = [0, 32], sizes = [3, 32], strides = [1, 1]} : vector<3x96xf32> to vector<3x32xf32>
    %34 = arith.truncf %33 : vector<3x32xf32> to vector<3x32xbf16>
    %35 = vector.extract_strided_slice %31 {offsets = [0, 64], sizes = [3, 32], strides = [1, 1]} : vector<3x96xf32> to vector<3x32xf32>
    %36 = arith.truncf %35 : vector<3x32xf32> to vector<3x32xbf16>
    %c0_15 = arith.constant 0 : index
    %c0_16 = arith.constant 0 : index
    %37 = vector.load %arg2[%c0_15, %c0_16] : memref<3x32xbf16, #tpu.memory_space<vmem>>, vector<3x32xbf16>
    %c0_17 = arith.constant 0 : index
    %c0_18 = arith.constant 0 : index
    %38 = vector.load %arg7[%c0_17, %c0_18] : memref<1x32xf32, #tpu.memory_space<vmem>>, vector<1x32xf32>
    %39 = vector.broadcast %38 : vector<1x32xf32> to vector<3x32xf32>
    %40 = arith.addf %32, %39 : vector<3x32xf32>
    %cst_19 = arith.constant 0.176776692 : f32
    %41 = vector.broadcast %cst_19 : f32 to vector<3x32xf32>
    %42 = arith.mulf %40, %41 : vector<3x32xf32>
    %43 = arith.truncf %42 : vector<3x32xf32> to vector<3x32xbf16>
    %c0_20 = arith.constant 0 : index
    %c0_21 = arith.constant 0 : index
    %44 = vector.load %arg8[%c0_20, %c0_21] : memref<1x32xf32, #tpu.memory_space<vmem>>, vector<1x32xf32>
    %45 = vector.broadcast %44 : vector<1x32xf32> to vector<3x32xf32>
    %46 = arith.addf %32, %45 : vector<3x32xf32>
    %cst_22 = arith.constant 0.176776692 : f32
    %47 = vector.broadcast %cst_22 : f32 to vector<3x32xf32>
    %48 = arith.mulf %46, %47 : vector<3x32xf32>
    %49 = arith.truncf %48 : vector<3x32xf32> to vector<3x32xbf16>
    %50 = tpu.iota {dimensions = array<i32: 0>} : vector<3x3xi32>
    %51 = tpu.iota {dimensions = array<i32: 1>} : vector<3x3xi32>
    %c1_i32 = arith.constant 1 : i32
    %52 = vector.broadcast %c1_i32 : i32 to vector<3x3xi32>
    %53 = arith.addi %50, %52 : vector<3x3xi32>
    %54 = vector.extract_strided_slice %43 {offsets = [0, 0], sizes = [3, 8], strides = [1, 1]} : vector<3x32xbf16> to vector<3x8xbf16>
    %55 = vector.extract_strided_slice %34 {offsets = [0, 0], sizes = [3, 8], strides = [1, 1]} : vector<3x32xbf16> to vector<3x8xbf16>
    %cst_23 = arith.constant dense<0.000000e+00> : vector<3x3xf32>
    %56 = tpu.matmul %54, %55, %cst_23 {dimension_numbers = #tpu.dot_dimension_numbers<[1], [1], [0], [0], [0, 0, 1, 0], [], []>} : vector<3x8xbf16>, vector<3x8xbf16>, vector<3x3xf32> -> vector<3x3xf32>
    %57 = vector.extract_strided_slice %49 {offsets = [0, 0], sizes = [3, 8], strides = [1, 1]} : vector<3x32xbf16> to vector<3x8xbf16>
    %58 = vector.extract_strided_slice %37 {offsets = [0, 0], sizes = [3, 8], strides = [1, 1]} : vector<3x32xbf16> to vector<3x8xbf16>
    %cst_24 = arith.constant dense<0.000000e+00> : vector<3x3xf32>
    %59 = tpu.matmul %57, %58, %cst_24 {dimension_numbers = #tpu.dot_dimension_numbers<[1], [1], [0], [0], [0, 0, 1, 0], [], []>} : vector<3x8xbf16>, vector<3x8xbf16>, vector<3x3xf32> -> vector<3x3xf32>
    %60 = vector.extract_strided_slice %59 {offsets = [0, 2], sizes = [3, 1], strides = [1, 1]} : vector<3x3xf32> to vector<3x1xf32>
    %61 = vector.extract_strided_slice %59 {offsets = [0, 0], sizes = [3, 2], strides = [1, 1]} : vector<3x3xf32> to vector<3x2xf32>
    %62 = tpu.concatenate %60, %61 in 1 : vector<3x1xf32>, vector<3x2xf32> -> vector<3x3xf32>
    %c0_i32 = arith.constant 0 : i32
    %63 = vector.broadcast %c0_i32 : i32 to vector<3x3xi32>
    %64 = arith.shrsi %53, %63 : vector<3x3xi32>
    %c1_i32_25 = arith.constant 1 : i32
    %65 = vector.broadcast %c1_i32_25 : i32 to vector<3x3xi32>
    %66 = arith.andi %64, %65 : vector<3x3xi32>
    %c1_i32_26 = arith.constant 1 : i32
    %67 = vector.broadcast %c1_i32_26 : i32 to vector<3x3xi32>
    %68 = arith.cmpi eq, %66, %67 : vector<3x3xi32>
    %69 = arith.select %68, %62, %59 : vector<3x3xi1>, vector<3x3xf32>
    %70 = vector.extract_strided_slice %69 {offsets = [0, 1], sizes = [3, 2], strides = [1, 1]} : vector<3x3xf32> to vector<3x2xf32>
    %71 = vector.extract_strided_slice %69 {offsets = [0, 0], sizes = [3, 1], strides = [1, 1]} : vector<3x3xf32> to vector<3x1xf32>
    %72 = tpu.concatenate %70, %71 in 1 : vector<3x2xf32>, vector<3x1xf32> -> vector<3x3xf32>
    %c1_i32_27 = arith.constant 1 : i32
    %73 = vector.broadcast %c1_i32_27 : i32 to vector<3x3xi32>
    %74 = arith.shrsi %53, %73 : vector<3x3xi32>
    %c1_i32_28 = arith.constant 1 : i32
    %75 = vector.broadcast %c1_i32_28 : i32 to vector<3x3xi32>
    %76 = arith.andi %74, %75 : vector<3x3xi32>
    %c1_i32_29 = arith.constant 1 : i32
    %77 = vector.broadcast %c1_i32_29 : i32 to vector<3x3xi32>
    %78 = arith.cmpi eq, %76, %77 : vector<3x3xi32>
    %79 = arith.select %78, %72, %69 : vector<3x3xi1>, vector<3x3xf32>
    %80 = vector.extract_strided_slice %79 {offsets = [1, 0], sizes = [2, 3], strides = [1, 1]} : vector<3x3xf32> to vector<2x3xf32>
    %cst_30 = arith.constant 0.000000e+00 : f32
    %81 = vector.broadcast %cst_30 : f32 to vector<1x3xf32>
    %82 = tpu.concatenate %80, %81 in 0 : vector<2x3xf32>, vector<1x3xf32> -> vector<3x3xf32>
    %83 = arith.cmpi sle, %51, %50 : vector<3x3xi32>
    %c1_i32_31 = arith.constant 1 : i32
    %84 = vector.broadcast %c1_i32_31 : i32 to vector<3x3xi32>
    %85 = arith.addi %50, %84 : vector<3x3xi32>
    %86 = arith.cmpi eq, %51, %85 : vector<3x3xi32>
    %cst_32 = arith.constant 0.000000e+00 : f32
    %87 = vector.broadcast %cst_32 : f32 to vector<3x3xf32>
    %88 = arith.select %86, %87, %82 : vector<3x3xi1>, vector<3x3xf32>
    %89 = arith.select %83, %79, %88 : vector<3x3xi1>, vector<3x3xf32>
    %90 = arith.addf %56, %89 : vector<3x3xf32>
    %cst_33 = arith.constant dense<0xFF800000> : vector<3xf32>
    %91 = vector.multi_reduction <maximumf>, %90, %cst_33 [1] : vector<3x3xf32> to vector<3xf32>
    %92 = vector.shape_cast %91 : vector<3xf32> to vector<3x1xf32>
    %93 = vector.broadcast %92 : vector<3x1xf32> to vector<3x3xf32>
    %94 = arith.subf %90, %93 : vector<3x3xf32>
    %95 = math.exp %94 : vector<3x3xf32>
    %cst_34 = arith.constant dense<0.000000e+00> : vector<3xf32>
    %96 = vector.multi_reduction <add>, %95, %cst_34 [1] : vector<3x3xf32> to vector<3xf32>
    %97 = vector.shape_cast %96 : vector<3xf32> to vector<3x1xf32>
    %98 = vector.broadcast %97 : vector<3x1xf32> to vector<3x3xf32>
    %99 = arith.divf %95, %98 : vector<3x3xf32>
    %100 = arith.truncf %99 : vector<3x3xf32> to vector<3x3xbf16>
    %101 = vector.extract_strided_slice %36 {offsets = [0, 0], sizes = [3, 8], strides = [1, 1]} : vector<3x32xbf16> to vector<3x8xbf16>
    %cst_35 = arith.constant dense<0.000000e+00> : vector<3x8xf32>
    %102 = tpu.matmul %100, %101, %cst_35 {dimension_numbers = #tpu.dot_dimension_numbers<[1], [0], [0], [1], [0, 0, 1, 1], [], []>} : vector<3x3xbf16>, vector<3x8xbf16>, vector<3x8xf32> -> vector<3x8xf32>
    %103 = vector.extract_strided_slice %43 {offsets = [0, 8], sizes = [3, 8], strides = [1, 1]} : vector<3x32xbf16> to vector<3x8xbf16>
    %104 = vector.extract_strided_slice %34 {offsets = [0, 8], sizes = [3, 8], strides = [1, 1]} : vector<3x32xbf16> to vector<3x8xbf16>
    %cst_36 = arith.constant dense<0.000000e+00> : vector<3x3xf32>
    %105 = tpu.matmul %103, %104, %cst_36 {dimension_numbers = #tpu.dot_dimension_numbers<[1], [1], [0], [0], [0, 0, 1, 0], [], []>} : vector<3x8xbf16>, vector<3x8xbf16>, vector<3x3xf32> -> vector<3x3xf32>
    %106 = vector.extract_strided_slice %49 {offsets = [0, 8], sizes = [3, 8], strides = [1, 1]} : vector<3x32xbf16> to vector<3x8xbf16>
    %107 = vector.extract_strided_slice %37 {offsets = [0, 8], sizes = [3, 8], strides = [1, 1]} : vector<3x32xbf16> to vector<3x8xbf16>
    %cst_37 = arith.constant dense<0.000000e+00> : vector<3x3xf32>
    %108 = tpu.matmul %106, %107, %cst_37 {dimension_numbers = #tpu.dot_dimension_numbers<[1], [1], [0], [0], [0, 0, 1, 0], [], []>} : vector<3x8xbf16>, vector<3x8xbf16>, vector<3x3xf32> -> vector<3x3xf32>
    %109 = vector.extract_strided_slice %108 {offsets = [0, 2], sizes = [3, 1], strides = [1, 1]} : vector<3x3xf32> to vector<3x1xf32>
    %110 = vector.extract_strided_slice %108 {offsets = [0, 0], sizes = [3, 2], strides = [1, 1]} : vector<3x3xf32> to vector<3x2xf32>
    %111 = tpu.concatenate %109, %110 in 1 : vector<3x1xf32>, vector<3x2xf32> -> vector<3x3xf32>
    %c0_i32_38 = arith.constant 0 : i32
    %112 = vector.broadcast %c0_i32_38 : i32 to vector<3x3xi32>
    %113 = arith.shrsi %53, %112 : vector<3x3xi32>
    %c1_i32_39 = arith.constant 1 : i32
    %114 = vector.broadcast %c1_i32_39 : i32 to vector<3x3xi32>
    %115 = arith.andi %113, %114 : vector<3x3xi32>
    %c1_i32_40 = arith.constant 1 : i32
    %116 = vector.broadcast %c1_i32_40 : i32 to vector<3x3xi32>
    %117 = arith.cmpi eq, %115, %116 : vector<3x3xi32>
    %118 = arith.select %117, %111, %108 : vector<3x3xi1>, vector<3x3xf32>
    %119 = vector.extract_strided_slice %118 {offsets = [0, 1], sizes = [3, 2], strides = [1, 1]} : vector<3x3xf32> to vector<3x2xf32>
    %120 = vector.extract_strided_slice %118 {offsets = [0, 0], sizes = [3, 1], strides = [1, 1]} : vector<3x3xf32> to vector<3x1xf32>
    %121 = tpu.concatenate %119, %120 in 1 : vector<3x2xf32>, vector<3x1xf32> -> vector<3x3xf32>
    %c1_i32_41 = arith.constant 1 : i32
    %122 = vector.broadcast %c1_i32_41 : i32 to vector<3x3xi32>
    %123 = arith.shrsi %53, %122 : vector<3x3xi32>
    %c1_i32_42 = arith.constant 1 : i32
    %124 = vector.broadcast %c1_i32_42 : i32 to vector<3x3xi32>
    %125 = arith.andi %123, %124 : vector<3x3xi32>
    %c1_i32_43 = arith.constant 1 : i32
    %126 = vector.broadcast %c1_i32_43 : i32 to vector<3x3xi32>
    %127 = arith.cmpi eq, %125, %126 : vector<3x3xi32>
    %128 = arith.select %127, %121, %118 : vector<3x3xi1>, vector<3x3xf32>
    %129 = vector.extract_strided_slice %128 {offsets = [1, 0], sizes = [2, 3], strides = [1, 1]} : vector<3x3xf32> to vector<2x3xf32>
    %cst_44 = arith.constant 0.000000e+00 : f32
    %130 = vector.broadcast %cst_44 : f32 to vector<1x3xf32>
    %131 = tpu.concatenate %129, %130 in 0 : vector<2x3xf32>, vector<1x3xf32> -> vector<3x3xf32>
    %132 = arith.cmpi sle, %51, %50 : vector<3x3xi32>
    %c1_i32_45 = arith.constant 1 : i32
    %133 = vector.broadcast %c1_i32_45 : i32 to vector<3x3xi32>
    %134 = arith.addi %50, %133 : vector<3x3xi32>
    %135 = arith.cmpi eq, %51, %134 : vector<3x3xi32>
    %cst_46 = arith.constant 0.000000e+00 : f32
    %136 = vector.broadcast %cst_46 : f32 to vector<3x3xf32>
    %137 = arith.select %135, %136, %131 : vector<3x3xi1>, vector<3x3xf32>
    %138 = arith.select %132, %128, %137 : vector<3x3xi1>, vector<3x3xf32>
    %139 = arith.addf %105, %138 : vector<3x3xf32>
    %cst_47 = arith.constant dense<0xFF800000> : vector<3xf32>
    %140 = vector.multi_reduction <maximumf>, %139, %cst_47 [1] : vector<3x3xf32> to vector<3xf32>
    %141 = vector.shape_cast %140 : vector<3xf32> to vector<3x1xf32>
    %142 = vector.broadcast %141 : vector<3x1xf32> to vector<3x3xf32>
    %143 = arith.subf %139, %142 : vector<3x3xf32>
    %144 = math.exp %143 : vector<3x3xf32>
    %cst_48 = arith.constant dense<0.000000e+00> : vector<3xf32>
    %145 = vector.multi_reduction <add>, %144, %cst_48 [1] : vector<3x3xf32> to vector<3xf32>
    %146 = vector.shape_cast %145 : vector<3xf32> to vector<3x1xf32>
    %147 = vector.broadcast %146 : vector<3x1xf32> to vector<3x3xf32>
    %148 = arith.divf %144, %147 : vector<3x3xf32>
    %149 = arith.truncf %148 : vector<3x3xf32> to vector<3x3xbf16>
    %150 = vector.extract_strided_slice %36 {offsets = [0, 8], sizes = [3, 8], strides = [1, 1]} : vector<3x32xbf16> to vector<3x8xbf16>
    %cst_49 = arith.constant dense<0.000000e+00> : vector<3x8xf32>
    %151 = tpu.matmul %149, %150, %cst_49 {dimension_numbers = #tpu.dot_dimension_numbers<[1], [0], [0], [1], [0, 0, 1, 1], [], []>} : vector<3x3xbf16>, vector<3x8xbf16>, vector<3x8xf32> -> vector<3x8xf32>
    %152 = vector.extract_strided_slice %43 {offsets = [0, 16], sizes = [3, 8], strides = [1, 1]} : vector<3x32xbf16> to vector<3x8xbf16>
    %153 = vector.extract_strided_slice %34 {offsets = [0, 16], sizes = [3, 8], strides = [1, 1]} : vector<3x32xbf16> to vector<3x8xbf16>
    %cst_50 = arith.constant dense<0.000000e+00> : vector<3x3xf32>
    %154 = tpu.matmul %152, %153, %cst_50 {dimension_numbers = #tpu.dot_dimension_numbers<[1], [1], [0], [0], [0, 0, 1, 0], [], []>} : vector<3x8xbf16>, vector<3x8xbf16>, vector<3x3xf32> -> vector<3x3xf32>
    %155 = vector.extract_strided_slice %49 {offsets = [0, 16], sizes = [3, 8], strides = [1, 1]} : vector<3x32xbf16> to vector<3x8xbf16>
    %156 = vector.extract_strided_slice %37 {offsets = [0, 16], sizes = [3, 8], strides = [1, 1]} : vector<3x32xbf16> to vector<3x8xbf16>
    %cst_51 = arith.constant dense<0.000000e+00> : vector<3x3xf32>
    %157 = tpu.matmul %155, %156, %cst_51 {dimension_numbers = #tpu.dot_dimension_numbers<[1], [1], [0], [0], [0, 0, 1, 0], [], []>} : vector<3x8xbf16>, vector<3x8xbf16>, vector<3x3xf32> -> vector<3x3xf32>
    %158 = vector.extract_strided_slice %157 {offsets = [0, 2], sizes = [3, 1], strides = [1, 1]} : vector<3x3xf32> to vector<3x1xf32>
    %159 = vector.extract_strided_slice %157 {offsets = [0, 0], sizes = [3, 2], strides = [1, 1]} : vector<3x3xf32> to vector<3x2xf32>
    %160 = tpu.concatenate %158, %159 in 1 : vector<3x1xf32>, vector<3x2xf32> -> vector<3x3xf32>
    %c0_i32_52 = arith.constant 0 : i32
    %161 = vector.broadcast %c0_i32_52 : i32 to vector<3x3xi32>
    %162 = arith.shrsi %53, %161 : vector<3x3xi32>
    %c1_i32_53 = arith.constant 1 : i32
    %163 = vector.broadcast %c1_i32_53 : i32 to vector<3x3xi32>
    %164 = arith.andi %162, %163 : vector<3x3xi32>
    %c1_i32_54 = arith.constant 1 : i32
    %165 = vector.broadcast %c1_i32_54 : i32 to vector<3x3xi32>
    %166 = arith.cmpi eq, %164, %165 : vector<3x3xi32>
    %167 = arith.select %166, %160, %157 : vector<3x3xi1>, vector<3x3xf32>
    %168 = vector.extract_strided_slice %167 {offsets = [0, 1], sizes = [3, 2], strides = [1, 1]} : vector<3x3xf32> to vector<3x2xf32>
    %169 = vector.extract_strided_slice %167 {offsets = [0, 0], sizes = [3, 1], strides = [1, 1]} : vector<3x3xf32> to vector<3x1xf32>
    %170 = tpu.concatenate %168, %169 in 1 : vector<3x2xf32>, vector<3x1xf32> -> vector<3x3xf32>
    %c1_i32_55 = arith.constant 1 : i32
    %171 = vector.broadcast %c1_i32_55 : i32 to vector<3x3xi32>
    %172 = arith.shrsi %53, %171 : vector<3x3xi32>
    %c1_i32_56 = arith.constant 1 : i32
    %173 = vector.broadcast %c1_i32_56 : i32 to vector<3x3xi32>
    %174 = arith.andi %172, %173 : vector<3x3xi32>
    %c1_i32_57 = arith.constant 1 : i32
    %175 = vector.broadcast %c1_i32_57 : i32 to vector<3x3xi32>
    %176 = arith.cmpi eq, %174, %175 : vector<3x3xi32>
    %177 = arith.select %176, %170, %167 : vector<3x3xi1>, vector<3x3xf32>
    %178 = vector.extract_strided_slice %177 {offsets = [1, 0], sizes = [2, 3], strides = [1, 1]} : vector<3x3xf32> to vector<2x3xf32>
    %cst_58 = arith.constant 0.000000e+00 : f32
    %179 = vector.broadcast %cst_58 : f32 to vector<1x3xf32>
    %180 = tpu.concatenate %178, %179 in 0 : vector<2x3xf32>, vector<1x3xf32> -> vector<3x3xf32>
    %181 = arith.cmpi sle, %51, %50 : vector<3x3xi32>
    %c1_i32_59 = arith.constant 1 : i32
    %182 = vector.broadcast %c1_i32_59 : i32 to vector<3x3xi32>
    %183 = arith.addi %50, %182 : vector<3x3xi32>
    %184 = arith.cmpi eq, %51, %183 : vector<3x3xi32>
    %cst_60 = arith.constant 0.000000e+00 : f32
    %185 = vector.broadcast %cst_60 : f32 to vector<3x3xf32>
    %186 = arith.select %184, %185, %180 : vector<3x3xi1>, vector<3x3xf32>
    %187 = arith.select %181, %177, %186 : vector<3x3xi1>, vector<3x3xf32>
    %188 = arith.addf %154, %187 : vector<3x3xf32>
    %cst_61 = arith.constant dense<0xFF800000> : vector<3xf32>
    %189 = vector.multi_reduction <maximumf>, %188, %cst_61 [1] : vector<3x3xf32> to vector<3xf32>
    %190 = vector.shape_cast %189 : vector<3xf32> to vector<3x1xf32>
    %191 = vector.broadcast %190 : vector<3x1xf32> to vector<3x3xf32>
    %192 = arith.subf %188, %191 : vector<3x3xf32>
    %193 = math.exp %192 : vector<3x3xf32>
    %cst_62 = arith.constant dense<0.000000e+00> : vector<3xf32>
    %194 = vector.multi_reduction <add>, %193, %cst_62 [1] : vector<3x3xf32> to vector<3xf32>
    %195 = vector.shape_cast %194 : vector<3xf32> to vector<3x1xf32>
    %196 = vector.broadcast %195 : vector<3x1xf32> to vector<3x3xf32>
    %197 = arith.divf %193, %196 : vector<3x3xf32>
    %198 = arith.truncf %197 : vector<3x3xf32> to vector<3x3xbf16>
    %199 = vector.extract_strided_slice %36 {offsets = [0, 16], sizes = [3, 8], strides = [1, 1]} : vector<3x32xbf16> to vector<3x8xbf16>
    %cst_63 = arith.constant dense<0.000000e+00> : vector<3x8xf32>
    %200 = tpu.matmul %198, %199, %cst_63 {dimension_numbers = #tpu.dot_dimension_numbers<[1], [0], [0], [1], [0, 0, 1, 1], [], []>} : vector<3x3xbf16>, vector<3x8xbf16>, vector<3x8xf32> -> vector<3x8xf32>
    %201 = vector.extract_strided_slice %43 {offsets = [0, 24], sizes = [3, 8], strides = [1, 1]} : vector<3x32xbf16> to vector<3x8xbf16>
    %202 = vector.extract_strided_slice %34 {offsets = [0, 24], sizes = [3, 8], strides = [1, 1]} : vector<3x32xbf16> to vector<3x8xbf16>
    %cst_64 = arith.constant dense<0.000000e+00> : vector<3x3xf32>
    %203 = tpu.matmul %201, %202, %cst_64 {dimension_numbers = #tpu.dot_dimension_numbers<[1], [1], [0], [0], [0, 0, 1, 0], [], []>} : vector<3x8xbf16>, vector<3x8xbf16>, vector<3x3xf32> -> vector<3x3xf32>
    %204 = vector.extract_strided_slice %49 {offsets = [0, 24], sizes = [3, 8], strides = [1, 1]} : vector<3x32xbf16> to vector<3x8xbf16>
    %205 = vector.extract_strided_slice %37 {offsets = [0, 24], sizes = [3, 8], strides = [1, 1]} : vector<3x32xbf16> to vector<3x8xbf16>
    %cst_65 = arith.constant dense<0.000000e+00> : vector<3x3xf32>
    %206 = tpu.matmul %204, %205, %cst_65 {dimension_numbers = #tpu.dot_dimension_numbers<[1], [1], [0], [0], [0, 0, 1, 0], [], []>} : vector<3x8xbf16>, vector<3x8xbf16>, vector<3x3xf32> -> vector<3x3xf32>
    %207 = vector.extract_strided_slice %206 {offsets = [0, 2], sizes = [3, 1], strides = [1, 1]} : vector<3x3xf32> to vector<3x1xf32>
    %208 = vector.extract_strided_slice %206 {offsets = [0, 0], sizes = [3, 2], strides = [1, 1]} : vector<3x3xf32> to vector<3x2xf32>
    %209 = tpu.concatenate %207, %208 in 1 : vector<3x1xf32>, vector<3x2xf32> -> vector<3x3xf32>
    %c0_i32_66 = arith.constant 0 : i32
    %210 = vector.broadcast %c0_i32_66 : i32 to vector<3x3xi32>
    %211 = arith.shrsi %53, %210 : vector<3x3xi32>
    %c1_i32_67 = arith.constant 1 : i32
    %212 = vector.broadcast %c1_i32_67 : i32 to vector<3x3xi32>
    %213 = arith.andi %211, %212 : vector<3x3xi32>
    %c1_i32_68 = arith.constant 1 : i32
    %214 = vector.broadcast %c1_i32_68 : i32 to vector<3x3xi32>
    %215 = arith.cmpi eq, %213, %214 : vector<3x3xi32>
    %216 = arith.select %215, %209, %206 : vector<3x3xi1>, vector<3x3xf32>
    %217 = vector.extract_strided_slice %216 {offsets = [0, 1], sizes = [3, 2], strides = [1, 1]} : vector<3x3xf32> to vector<3x2xf32>
    %218 = vector.extract_strided_slice %216 {offsets = [0, 0], sizes = [3, 1], strides = [1, 1]} : vector<3x3xf32> to vector<3x1xf32>
    %219 = tpu.concatenate %217, %218 in 1 : vector<3x2xf32>, vector<3x1xf32> -> vector<3x3xf32>
    %c1_i32_69 = arith.constant 1 : i32
    %220 = vector.broadcast %c1_i32_69 : i32 to vector<3x3xi32>
    %221 = arith.shrsi %53, %220 : vector<3x3xi32>
    %c1_i32_70 = arith.constant 1 : i32
    %222 = vector.broadcast %c1_i32_70 : i32 to vector<3x3xi32>
    %223 = arith.andi %221, %222 : vector<3x3xi32>
    %c1_i32_71 = arith.constant 1 : i32
    %224 = vector.broadcast %c1_i32_71 : i32 to vector<3x3xi32>
    %225 = arith.cmpi eq, %223, %224 : vector<3x3xi32>
    %226 = arith.select %225, %219, %216 : vector<3x3xi1>, vector<3x3xf32>
    %227 = vector.extract_strided_slice %226 {offsets = [1, 0], sizes = [2, 3], strides = [1, 1]} : vector<3x3xf32> to vector<2x3xf32>
    %cst_72 = arith.constant 0.000000e+00 : f32
    %228 = vector.broadcast %cst_72 : f32 to vector<1x3xf32>
    %229 = tpu.concatenate %227, %228 in 0 : vector<2x3xf32>, vector<1x3xf32> -> vector<3x3xf32>
    %230 = arith.cmpi sle, %51, %50 : vector<3x3xi32>
    %c1_i32_73 = arith.constant 1 : i32
    %231 = vector.broadcast %c1_i32_73 : i32 to vector<3x3xi32>
    %232 = arith.addi %50, %231 : vector<3x3xi32>
    %233 = arith.cmpi eq, %51, %232 : vector<3x3xi32>
    %cst_74 = arith.constant 0.000000e+00 : f32
    %234 = vector.broadcast %cst_74 : f32 to vector<3x3xf32>
    %235 = arith.select %233, %234, %229 : vector<3x3xi1>, vector<3x3xf32>
    %236 = arith.select %230, %226, %235 : vector<3x3xi1>, vector<3x3xf32>
    %237 = arith.addf %203, %236 : vector<3x3xf32>
    %cst_75 = arith.constant dense<0xFF800000> : vector<3xf32>
    %238 = vector.multi_reduction <maximumf>, %237, %cst_75 [1] : vector<3x3xf32> to vector<3xf32>
    %239 = vector.shape_cast %238 : vector<3xf32> to vector<3x1xf32>
    %240 = vector.broadcast %239 : vector<3x1xf32> to vector<3x3xf32>
    %241 = arith.subf %237, %240 : vector<3x3xf32>
    %242 = math.exp %241 : vector<3x3xf32>
    %cst_76 = arith.constant dense<0.000000e+00> : vector<3xf32>
    %243 = vector.multi_reduction <add>, %242, %cst_76 [1] : vector<3x3xf32> to vector<3xf32>
    %244 = vector.shape_cast %243 : vector<3xf32> to vector<3x1xf32>
    %245 = vector.broadcast %244 : vector<3x1xf32> to vector<3x3xf32>
    %246 = arith.divf %242, %245 : vector<3x3xf32>
    %247 = arith.truncf %246 : vector<3x3xf32> to vector<3x3xbf16>
    %248 = vector.extract_strided_slice %36 {offsets = [0, 24], sizes = [3, 8], strides = [1, 1]} : vector<3x32xbf16> to vector<3x8xbf16>
    %cst_77 = arith.constant dense<0.000000e+00> : vector<3x8xf32>
    %249 = tpu.matmul %247, %248, %cst_77 {dimension_numbers = #tpu.dot_dimension_numbers<[1], [0], [0], [1], [0, 0, 1, 1], [], []>} : vector<3x3xbf16>, vector<3x8xbf16>, vector<3x8xf32> -> vector<3x8xf32>
    %250 = tpu.concatenate %102, %151, %200, %249 in 1 : vector<3x8xf32>, vector<3x8xf32>, vector<3x8xf32>, vector<3x8xf32> -> vector<3x32xf32>
    %251 = arith.truncf %250 : vector<3x32xf32> to vector<3x32xbf16>
    %c0_78 = arith.constant 0 : index
    %c0_79 = arith.constant 0 : index
    %252 = vector.load %arg9[%c0_78, %c0_79] : memref<32x32xbf16, #tpu.memory_space<vmem>>, vector<32x32xbf16>
    %cst_80 = arith.constant dense<0.000000e+00> : vector<3x32xf32>
    %253 = tpu.matmul %251, %252, %cst_80 {dimension_numbers = #tpu.dot_dimension_numbers<[1], [0], [0], [1], [0, 0, 1, 1], [], []>} : vector<3x32xbf16>, vector<32x32xbf16>, vector<3x32xf32> -> vector<3x32xf32>
    %254 = arith.addf %1, %253 : vector<3x32xf32>
    %c0_81 = arith.constant 0 : index
    %c0_82 = arith.constant 0 : index
    %255 = vector.load %arg10[%c0_81, %c0_82] : memref<1x32xf32, #tpu.memory_space<vmem>>, vector<1x32xf32>
    %256 = vector.broadcast %255 : vector<1x32xf32> to vector<3x32xf32>
    %257 = arith.addf %254, %256 : vector<3x32xf32>
    %c0_83 = arith.constant 0 : index
    %c0_84 = arith.constant 0 : index
    %c0_85 = arith.constant 0 : index
    %258 = vector.load %arg11[%c0_83, %c0_84, %c0_85] : memref<1x3x32xf32, #tpu.memory_space<vmem>>, vector<1x3x32xf32>
    %259 = vector.shape_cast %258 : vector<1x3x32xf32> to vector<3x32xf32>
    %260 = vector.shape_cast %257 : vector<3x32xf32> to vector<1x3x32xf32>
    tpu.vector_store %arg11[%c0_83, %c0_84, %c0_85], %260 {strides = array<i32>} : memref<1x3x32xf32, #tpu.memory_space<vmem>>, vector<1x3x32xf32>,
    return
  }
  func.func @transform_0(%arg0: i32) -> (i32, i32, i32) {
    %c0_i32 = arith.constant 0 : i32
    %c0_i32_0 = arith.constant 0 : i32
    %c0_i32_1 = arith.constant 0 : i32
    return %arg0, %c0_i32, %c0_i32_0 : i32, i32, i32
  }
  func.func @transform_1(%arg0: i32) -> (i32, i32) {
    %c0_i32 = arith.constant 0 : i32
    %c0_i32_0 = arith.constant 0 : i32
    %c0_i32_1 = arith.constant 0 : i32
    return %c0_i32, %c0_i32_0 : i32, i32
  }
  func.func @transform_2(%arg0: i32) -> (i32, i32) {
    %c0_i32 = arith.constant 0 : i32
    %c0_i32_0 = arith.constant 0 : i32
    %c0_i32_1 = arith.constant 0 : i32
    return %c0_i32, %c0_i32_0 : i32, i32
  }
  func.func @transform_3(%arg0: i32) -> (i32, i32) {
    %c0_i32 = arith.constant 0 : i32
    %c0_i32_0 = arith.constant 0 : i32
    %c0_i32_1 = arith.constant 0 : i32
    return %c0_i32, %c0_i32_0 : i32, i32
  }
  func.func @transform_4(%arg0: i32) -> (i32, i32) {
    %c0_i32 = arith.constant 0 : i32
    %c0_i32_0 = arith.constant 0 : i32
    %c0_i32_1 = arith.constant 0 : i32
    return %c0_i32, %c0_i32_0 : i32, i32
  }
  func.func @transform_5(%arg0: i32) -> (i32, i32) {
    %c0_i32 = arith.constant 0 : i32
    %c0_i32_0 = arith.constant 0 : i32
    %c0_i32_1 = arith.constant 0 : i32
    return %c0_i32, %c0_i32_0 : i32, i32
  }
  func.func @transform_6(%arg0: i32) -> (i32, i32) {
    %c0_i32 = arith.constant 0 : i32
    %c0_i32_0 = arith.constant 0 : i32
    %c0_i32_1 = arith.constant 0 : i32
    return %c0_i32, %c0_i32_0 : i32, i32
  }
  func.func @transform_7(%arg0: i32) -> (i32, i32) {
    %c0_i32 = arith.constant 0 : i32
    %c0_i32_0 = arith.constant 0 : i32
    %c0_i32_1 = arith.constant 0 : i32
    return %c0_i32, %c0_i32_0 : i32, i32
  }
  func.func @transform_8(%arg0: i32) -> (i32, i32) {
    %c0_i32 = arith.constant 0 : i32
    %c0_i32_0 = arith.constant 0 : i32
    %c0_i32_1 = arith.constant 0 : i32
    return %c0_i32, %c0_i32_0 : i32, i32
  }
  func.func @transform_9(%arg0: i32) -> (i32, i32) {
    %c0_i32 = arith.constant 0 : i32
    %c0_i32_0 = arith.constant 0 : i32
    %c0_i32_1 = arith.constant 0 : i32
    return %c0_i32, %c0_i32_0 : i32, i32
  }
  func.func @transform_10(%arg0: i32) -> (i32, i32, i32) {
    %c0_i32 = arith.constant 0 : i32
    %c0_i32_0 = arith.constant 0 : i32
    %c0_i32_1 = arith.constant 0 : i32
    return %arg0, %c0_i32, %c0_i32_0 : i32, i32, i32
  }
}

module attributes {stable_mosaic.version = 11 : i64} {
  func.func @_conv_module_kernel(%arg0: i32, %arg1: memref<1x3x32xf32, #tpu.memory_space<vmem>>, %arg2: memref<1x32xf32, #tpu.memory_space<vmem>>, %arg3: memref<1x32xf32, #tpu.memory_space<vmem>>, %arg4: memref<32x64xbf16, #tpu.memory_space<vmem>>, %arg5: memref<1x64xf32, #tpu.memory_space<vmem>>, %arg6: memref<31x32xf32, #tpu.memory_space<vmem>>, %arg7: memref<1x32xf32, #tpu.memory_space<vmem>>, %arg8: memref<1x32xf32, #tpu.memory_space<vmem>>, %arg9: memref<32x32xbf16, #tpu.memory_space<vmem>>, %arg10: memref<1x32xf32, #tpu.memory_space<vmem>>, %arg11: memref<1x3x32xf32, #tpu.memory_space<vmem>>) attributes {dimension_semantics = [#tpu.dimension_semantics<parallel>], iteration_bounds = array<i64: 2>, scalar_prefetch = 0 : i64, scratch_operands = 0 : i64, tpu.core_type = #tpu.core_type<tc>, window_params = [{transform_indices = @transform_0, window_bounds = array<i64: 1, 3, 32>}, {pipeline_mode = #tpu.pipeline_mode<synchronous>, transform_indices = @transform_1, window_bounds = array<i64: 1, 32>}, {pipeline_mode = #tpu.pipeline_mode<synchronous>, transform_indices = @transform_2, window_bounds = array<i64: 1, 32>}, {pipeline_mode = #tpu.pipeline_mode<synchronous>, transform_indices = @transform_3, window_bounds = array<i64: 32, 64>}, {pipeline_mode = #tpu.pipeline_mode<synchronous>, transform_indices = @transform_4, window_bounds = array<i64: 1, 64>}, {pipeline_mode = #tpu.pipeline_mode<synchronous>, transform_indices = @transform_5, window_bounds = array<i64: 31, 32>}, {pipeline_mode = #tpu.pipeline_mode<synchronous>, transform_indices = @transform_6, window_bounds = array<i64: 1, 32>}, {pipeline_mode = #tpu.pipeline_mode<synchronous>, transform_indices = @transform_7, window_bounds = array<i64: 1, 32>}, {pipeline_mode = #tpu.pipeline_mode<synchronous>, transform_indices = @transform_8, window_bounds = array<i64: 32, 32>}, {pipeline_mode = #tpu.pipeline_mode<synchronous>, transform_indices = @transform_9, window_bounds = array<i64: 1, 32>}, {transform_indices = @transform_10, window_bounds = array<i64: 1, 3, 32>}]} {
    %c0 = arith.constant 0 : index
    %c0_0 = arith.constant 0 : index
    %c0_1 = arith.constant 0 : index
    %0 = vector.load %arg1[%c0, %c0_0, %c0_1] : memref<1x3x32xf32, #tpu.memory_space<vmem>>, vector<1x3x32xf32>
    %1 = vector.shape_cast %0 : vector<1x3x32xf32> to vector<3x32xf32>
    %c0_2 = arith.constant 0 : index
    %c0_3 = arith.constant 0 : index
    %2 = vector.load %arg2[%c0_2, %c0_3] : memref<1x32xf32, #tpu.memory_space<vmem>>, vector<1x32xf32>
    %c0_4 = arith.constant 0 : index
    %c0_5 = arith.constant 0 : index
    %3 = vector.load %arg3[%c0_4, %c0_5] : memref<1x32xf32, #tpu.memory_space<vmem>>, vector<1x32xf32>
    %cst = arith.constant dense<0.000000e+00> : vector<3xf32>
    %4 = vector.multi_reduction <add>, %1, %cst [1] : vector<3x32xf32> to vector<3xf32>
    %5 = vector.shape_cast %4 : vector<3xf32> to vector<3x1xf32>
    %cst_6 = arith.constant 3.200000e+01 : f32
    %6 = vector.broadcast %cst_6 : f32 to vector<3x1xf32>
    %7 = arith.divf %5, %6 : vector<3x1xf32>
    %8 = vector.broadcast %7 : vector<3x1xf32> to vector<3x32xf32>
    %9 = arith.subf %1, %8 : vector<3x32xf32>
    %10 = arith.mulf %9, %9 : vector<3x32xf32>
    %cst_7 = arith.constant dense<0.000000e+00> : vector<3xf32>
    %11 = vector.multi_reduction <add>, %10, %cst_7 [1] : vector<3x32xf32> to vector<3xf32>
    %12 = vector.shape_cast %11 : vector<3xf32> to vector<3x1xf32>
    %cst_8 = arith.constant 3.200000e+01 : f32
    %13 = vector.broadcast %cst_8 : f32 to vector<3x1xf32>
    %14 = arith.divf %12, %13 : vector<3x1xf32>
    %15 = vector.broadcast %7 : vector<3x1xf32> to vector<3x32xf32>
    %16 = arith.subf %1, %15 : vector<3x32xf32>
    %cst_9 = arith.constant 9.99999974E-6 : f32
    %17 = vector.broadcast %cst_9 : f32 to vector<3x1xf32>
    %18 = arith.addf %14, %17 : vector<3x1xf32>
    %19 = math.rsqrt %18 : vector<3x1xf32>
    %20 = vector.broadcast %19 : vector<3x1xf32> to vector<3x32xf32>
    %21 = arith.mulf %16, %20 : vector<3x32xf32>
    %22 = vector.broadcast %2 : vector<1x32xf32> to vector<3x32xf32>
    %23 = arith.mulf %21, %22 : vector<3x32xf32>
    %24 = vector.broadcast %3 : vector<1x32xf32> to vector<3x32xf32>
    %25 = arith.addf %23, %24 : vector<3x32xf32>
    %26 = arith.truncf %25 : vector<3x32xf32> to vector<3x32xbf16>
    %c0_10 = arith.constant 0 : index
    %c0_11 = arith.constant 0 : index
    %27 = vector.load %arg4[%c0_10, %c0_11] : memref<32x64xbf16, #tpu.memory_space<vmem>>, vector<32x64xbf16>
    %cst_12 = arith.constant dense<0.000000e+00> : vector<3x64xf32>
    %28 = tpu.matmul %26, %27, %cst_12 {dimension_numbers = #tpu.dot_dimension_numbers<[1], [0], [0], [1], [0, 0, 1, 1], [], []>} : vector<3x32xbf16>, vector<32x64xbf16>, vector<3x64xf32> -> vector<3x64xf32>
    %c0_13 = arith.constant 0 : index
    %c0_14 = arith.constant 0 : index
    %29 = vector.load %arg5[%c0_13, %c0_14] : memref<1x64xf32, #tpu.memory_space<vmem>>, vector<1x64xf32>
    %30 = vector.broadcast %29 : vector<1x64xf32> to vector<3x64xf32>
    %31 = arith.addf %28, %30 : vector<3x64xf32>
    %32 = vector.extract_strided_slice %31 {offsets = [0, 0], sizes = [3, 32], strides = [1, 1]} : vector<3x64xf32> to vector<3x32xf32>
    %33 = vector.extract_strided_slice %31 {offsets = [0, 32], sizes = [3, 32], strides = [1, 1]} : vector<3x64xf32> to vector<3x32xf32>
    %cst_15 = arith.constant 0.000000e+00 : f32
    %34 = vector.broadcast %cst_15 : f32 to vector<3x32xf32>
    %35 = arith.subf %34, %33 : vector<3x32xf32>
    %36 = math.exp %35 : vector<3x32xf32>
    %cst_16 = arith.constant 1.000000e+00 : f32
    %37 = vector.broadcast %cst_16 : f32 to vector<3x32xf32>
    %38 = arith.addf %37, %36 : vector<3x32xf32>
    %cst_17 = arith.constant 1.000000e+00 : f32
    %39 = vector.broadcast %cst_17 : f32 to vector<3x32xf32>
    %40 = arith.divf %39, %38 : vector<3x32xf32>
    %41 = arith.mulf %32, %40 : vector<3x32xf32>
    %cst_18 = arith.constant 0.000000e+00 : bf16
    %42 = vector.broadcast %cst_18 : bf16 to vector<15x32xbf16>
    %43 = arith.truncf %41 : vector<3x32xf32> to vector<3x32xbf16>
    %44 = tpu.concatenate %42, %43, %42 in 0 : vector<15x32xbf16>, vector<3x32xbf16>, vector<15x32xbf16> -> vector<33x32xbf16>
    %c0_19 = arith.constant 0 : index
    %c0_20 = arith.constant 0 : index
    %45 = vector.load %arg6[%c0_19, %c0_20] : memref<31x32xf32, #tpu.memory_space<vmem>>, vector<31x32xf32>
    %46 = arith.truncf %45 : vector<31x32xf32> to vector<31x32xbf16>
    %cst_21 = arith.constant 0.000000e+00 : f32
    %47 = vector.broadcast %cst_21 : f32 to vector<3x32xf32>
    %48 = vector.extract_strided_slice %44 {offsets = [0, 0], sizes = [3, 32], strides = [1, 1]} : vector<33x32xbf16> to vector<3x32xbf16>
    %49 = vector.extract_strided_slice %46 {offsets = [0, 0], sizes = [1, 32], strides = [1, 1]} : vector<31x32xbf16> to vector<1x32xbf16>
    %50 = vector.broadcast %49 : vector<1x32xbf16> to vector<3x32xbf16>
    %51 = arith.mulf %48, %50 : vector<3x32xbf16>
    %52 = arith.extf %51 : vector<3x32xbf16> to vector<3x32xf32>
    %53 = arith.addf %47, %52 : vector<3x32xf32>
    %54 = vector.extract_strided_slice %44 {offsets = [1, 0], sizes = [3, 32], strides = [1, 1]} : vector<33x32xbf16> to vector<3x32xbf16>
    %55 = vector.extract_strided_slice %46 {offsets = [1, 0], sizes = [1, 32], strides = [1, 1]} : vector<31x32xbf16> to vector<1x32xbf16>
    %56 = vector.broadcast %55 : vector<1x32xbf16> to vector<3x32xbf16>
    %57 = arith.mulf %54, %56 : vector<3x32xbf16>
    %58 = arith.extf %57 : vector<3x32xbf16> to vector<3x32xf32>
    %59 = arith.addf %53, %58 : vector<3x32xf32>
    %60 = vector.extract_strided_slice %44 {offsets = [2, 0], sizes = [3, 32], strides = [1, 1]} : vector<33x32xbf16> to vector<3x32xbf16>
    %61 = vector.extract_strided_slice %46 {offsets = [2, 0], sizes = [1, 32], strides = [1, 1]} : vector<31x32xbf16> to vector<1x32xbf16>
    %62 = vector.broadcast %61 : vector<1x32xbf16> to vector<3x32xbf16>
    %63 = arith.mulf %60, %62 : vector<3x32xbf16>
    %64 = arith.extf %63 : vector<3x32xbf16> to vector<3x32xf32>
    %65 = arith.addf %59, %64 : vector<3x32xf32>
    %66 = vector.extract_strided_slice %44 {offsets = [3, 0], sizes = [3, 32], strides = [1, 1]} : vector<33x32xbf16> to vector<3x32xbf16>
    %67 = vector.extract_strided_slice %46 {offsets = [3, 0], sizes = [1, 32], strides = [1, 1]} : vector<31x32xbf16> to vector<1x32xbf16>
    %68 = vector.broadcast %67 : vector<1x32xbf16> to vector<3x32xbf16>
    %69 = arith.mulf %66, %68 : vector<3x32xbf16>
    %70 = arith.extf %69 : vector<3x32xbf16> to vector<3x32xf32>
    %71 = arith.addf %65, %70 : vector<3x32xf32>
    %72 = vector.extract_strided_slice %44 {offsets = [4, 0], sizes = [3, 32], strides = [1, 1]} : vector<33x32xbf16> to vector<3x32xbf16>
    %73 = vector.extract_strided_slice %46 {offsets = [4, 0], sizes = [1, 32], strides = [1, 1]} : vector<31x32xbf16> to vector<1x32xbf16>
    %74 = vector.broadcast %73 : vector<1x32xbf16> to vector<3x32xbf16>
    %75 = arith.mulf %72, %74 : vector<3x32xbf16>
    %76 = arith.extf %75 : vector<3x32xbf16> to vector<3x32xf32>
    %77 = arith.addf %71, %76 : vector<3x32xf32>
    %78 = vector.extract_strided_slice %44 {offsets = [5, 0], sizes = [3, 32], strides = [1, 1]} : vector<33x32xbf16> to vector<3x32xbf16>
    %79 = vector.extract_strided_slice %46 {offsets = [5, 0], sizes = [1, 32], strides = [1, 1]} : vector<31x32xbf16> to vector<1x32xbf16>
    %80 = vector.broadcast %79 : vector<1x32xbf16> to vector<3x32xbf16>
    %81 = arith.mulf %78, %80 : vector<3x32xbf16>
    %82 = arith.extf %81 : vector<3x32xbf16> to vector<3x32xf32>
    %83 = arith.addf %77, %82 : vector<3x32xf32>
    %84 = vector.extract_strided_slice %44 {offsets = [6, 0], sizes = [3, 32], strides = [1, 1]} : vector<33x32xbf16> to vector<3x32xbf16>
    %85 = vector.extract_strided_slice %46 {offsets = [6, 0], sizes = [1, 32], strides = [1, 1]} : vector<31x32xbf16> to vector<1x32xbf16>
    %86 = vector.broadcast %85 : vector<1x32xbf16> to vector<3x32xbf16>
    %87 = arith.mulf %84, %86 : vector<3x32xbf16>
    %88 = arith.extf %87 : vector<3x32xbf16> to vector<3x32xf32>
    %89 = arith.addf %83, %88 : vector<3x32xf32>
    %90 = vector.extract_strided_slice %44 {offsets = [7, 0], sizes = [3, 32], strides = [1, 1]} : vector<33x32xbf16> to vector<3x32xbf16>
    %91 = vector.extract_strided_slice %46 {offsets = [7, 0], sizes = [1, 32], strides = [1, 1]} : vector<31x32xbf16> to vector<1x32xbf16>
    %92 = vector.broadcast %91 : vector<1x32xbf16> to vector<3x32xbf16>
    %93 = arith.mulf %90, %92 : vector<3x32xbf16>
    %94 = arith.extf %93 : vector<3x32xbf16> to vector<3x32xf32>
    %95 = arith.addf %89, %94 : vector<3x32xf32>
    %96 = vector.extract_strided_slice %44 {offsets = [8, 0], sizes = [3, 32], strides = [1, 1]} : vector<33x32xbf16> to vector<3x32xbf16>
    %97 = vector.extract_strided_slice %46 {offsets = [8, 0], sizes = [1, 32], strides = [1, 1]} : vector<31x32xbf16> to vector<1x32xbf16>
    %98 = vector.broadcast %97 : vector<1x32xbf16> to vector<3x32xbf16>
    %99 = arith.mulf %96, %98 : vector<3x32xbf16>
    %100 = arith.extf %99 : vector<3x32xbf16> to vector<3x32xf32>
    %101 = arith.addf %95, %100 : vector<3x32xf32>
    %102 = vector.extract_strided_slice %44 {offsets = [9, 0], sizes = [3, 32], strides = [1, 1]} : vector<33x32xbf16> to vector<3x32xbf16>
    %103 = vector.extract_strided_slice %46 {offsets = [9, 0], sizes = [1, 32], strides = [1, 1]} : vector<31x32xbf16> to vector<1x32xbf16>
    %104 = vector.broadcast %103 : vector<1x32xbf16> to vector<3x32xbf16>
    %105 = arith.mulf %102, %104 : vector<3x32xbf16>
    %106 = arith.extf %105 : vector<3x32xbf16> to vector<3x32xf32>
    %107 = arith.addf %101, %106 : vector<3x32xf32>
    %108 = vector.extract_strided_slice %44 {offsets = [10, 0], sizes = [3, 32], strides = [1, 1]} : vector<33x32xbf16> to vector<3x32xbf16>
    %109 = vector.extract_strided_slice %46 {offsets = [10, 0], sizes = [1, 32], strides = [1, 1]} : vector<31x32xbf16> to vector<1x32xbf16>
    %110 = vector.broadcast %109 : vector<1x32xbf16> to vector<3x32xbf16>
    %111 = arith.mulf %108, %110 : vector<3x32xbf16>
    %112 = arith.extf %111 : vector<3x32xbf16> to vector<3x32xf32>
    %113 = arith.addf %107, %112 : vector<3x32xf32>
    %114 = vector.extract_strided_slice %44 {offsets = [11, 0], sizes = [3, 32], strides = [1, 1]} : vector<33x32xbf16> to vector<3x32xbf16>
    %115 = vector.extract_strided_slice %46 {offsets = [11, 0], sizes = [1, 32], strides = [1, 1]} : vector<31x32xbf16> to vector<1x32xbf16>
    %116 = vector.broadcast %115 : vector<1x32xbf16> to vector<3x32xbf16>
    %117 = arith.mulf %114, %116 : vector<3x32xbf16>
    %118 = arith.extf %117 : vector<3x32xbf16> to vector<3x32xf32>
    %119 = arith.addf %113, %118 : vector<3x32xf32>
    %120 = vector.extract_strided_slice %44 {offsets = [12, 0], sizes = [3, 32], strides = [1, 1]} : vector<33x32xbf16> to vector<3x32xbf16>
    %121 = vector.extract_strided_slice %46 {offsets = [12, 0], sizes = [1, 32], strides = [1, 1]} : vector<31x32xbf16> to vector<1x32xbf16>
    %122 = vector.broadcast %121 : vector<1x32xbf16> to vector<3x32xbf16>
    %123 = arith.mulf %120, %122 : vector<3x32xbf16>
    %124 = arith.extf %123 : vector<3x32xbf16> to vector<3x32xf32>
    %125 = arith.addf %119, %124 : vector<3x32xf32>
    %126 = vector.extract_strided_slice %44 {offsets = [13, 0], sizes = [3, 32], strides = [1, 1]} : vector<33x32xbf16> to vector<3x32xbf16>
    %127 = vector.extract_strided_slice %46 {offsets = [13, 0], sizes = [1, 32], strides = [1, 1]} : vector<31x32xbf16> to vector<1x32xbf16>
    %128 = vector.broadcast %127 : vector<1x32xbf16> to vector<3x32xbf16>
    %129 = arith.mulf %126, %128 : vector<3x32xbf16>
    %130 = arith.extf %129 : vector<3x32xbf16> to vector<3x32xf32>
    %131 = arith.addf %125, %130 : vector<3x32xf32>
    %132 = vector.extract_strided_slice %44 {offsets = [14, 0], sizes = [3, 32], strides = [1, 1]} : vector<33x32xbf16> to vector<3x32xbf16>
    %133 = vector.extract_strided_slice %46 {offsets = [14, 0], sizes = [1, 32], strides = [1, 1]} : vector<31x32xbf16> to vector<1x32xbf16>
    %134 = vector.broadcast %133 : vector<1x32xbf16> to vector<3x32xbf16>
    %135 = arith.mulf %132, %134 : vector<3x32xbf16>
    %136 = arith.extf %135 : vector<3x32xbf16> to vector<3x32xf32>
    %137 = arith.addf %131, %136 : vector<3x32xf32>
    %138 = vector.extract_strided_slice %44 {offsets = [15, 0], sizes = [3, 32], strides = [1, 1]} : vector<33x32xbf16> to vector<3x32xbf16>
    %139 = vector.extract_strided_slice %46 {offsets = [15, 0], sizes = [1, 32], strides = [1, 1]} : vector<31x32xbf16> to vector<1x32xbf16>
    %140 = vector.broadcast %139 : vector<1x32xbf16> to vector<3x32xbf16>
    %141 = arith.mulf %138, %140 : vector<3x32xbf16>
    %142 = arith.extf %141 : vector<3x32xbf16> to vector<3x32xf32>
    %143 = arith.addf %137, %142 : vector<3x32xf32>
    %144 = vector.extract_strided_slice %44 {offsets = [16, 0], sizes = [3, 32], strides = [1, 1]} : vector<33x32xbf16> to vector<3x32xbf16>
    %145 = vector.extract_strided_slice %46 {offsets = [16, 0], sizes = [1, 32], strides = [1, 1]} : vector<31x32xbf16> to vector<1x32xbf16>
    %146 = vector.broadcast %145 : vector<1x32xbf16> to vector<3x32xbf16>
    %147 = arith.mulf %144, %146 : vector<3x32xbf16>
    %148 = arith.extf %147 : vector<3x32xbf16> to vector<3x32xf32>
    %149 = arith.addf %143, %148 : vector<3x32xf32>
    %150 = vector.extract_strided_slice %44 {offsets = [17, 0], sizes = [3, 32], strides = [1, 1]} : vector<33x32xbf16> to vector<3x32xbf16>
    %151 = vector.extract_strided_slice %46 {offsets = [17, 0], sizes = [1, 32], strides = [1, 1]} : vector<31x32xbf16> to vector<1x32xbf16>
    %152 = vector.broadcast %151 : vector<1x32xbf16> to vector<3x32xbf16>
    %153 = arith.mulf %150, %152 : vector<3x32xbf16>
    %154 = arith.extf %153 : vector<3x32xbf16> to vector<3x32xf32>
    %155 = arith.addf %149, %154 : vector<3x32xf32>
    %156 = vector.extract_strided_slice %44 {offsets = [18, 0], sizes = [3, 32], strides = [1, 1]} : vector<33x32xbf16> to vector<3x32xbf16>
    %157 = vector.extract_strided_slice %46 {offsets = [18, 0], sizes = [1, 32], strides = [1, 1]} : vector<31x32xbf16> to vector<1x32xbf16>
    %158 = vector.broadcast %157 : vector<1x32xbf16> to vector<3x32xbf16>
    %159 = arith.mulf %156, %158 : vector<3x32xbf16>
    %160 = arith.extf %159 : vector<3x32xbf16> to vector<3x32xf32>
    %161 = arith.addf %155, %160 : vector<3x32xf32>
    %162 = vector.extract_strided_slice %44 {offsets = [19, 0], sizes = [3, 32], strides = [1, 1]} : vector<33x32xbf16> to vector<3x32xbf16>
    %163 = vector.extract_strided_slice %46 {offsets = [19, 0], sizes = [1, 32], strides = [1, 1]} : vector<31x32xbf16> to vector<1x32xbf16>
    %164 = vector.broadcast %163 : vector<1x32xbf16> to vector<3x32xbf16>
    %165 = arith.mulf %162, %164 : vector<3x32xbf16>
    %166 = arith.extf %165 : vector<3x32xbf16> to vector<3x32xf32>
    %167 = arith.addf %161, %166 : vector<3x32xf32>
    %168 = vector.extract_strided_slice %44 {offsets = [20, 0], sizes = [3, 32], strides = [1, 1]} : vector<33x32xbf16> to vector<3x32xbf16>
    %169 = vector.extract_strided_slice %46 {offsets = [20, 0], sizes = [1, 32], strides = [1, 1]} : vector<31x32xbf16> to vector<1x32xbf16>
    %170 = vector.broadcast %169 : vector<1x32xbf16> to vector<3x32xbf16>
    %171 = arith.mulf %168, %170 : vector<3x32xbf16>
    %172 = arith.extf %171 : vector<3x32xbf16> to vector<3x32xf32>
    %173 = arith.addf %167, %172 : vector<3x32xf32>
    %174 = vector.extract_strided_slice %44 {offsets = [21, 0], sizes = [3, 32], strides = [1, 1]} : vector<33x32xbf16> to vector<3x32xbf16>
    %175 = vector.extract_strided_slice %46 {offsets = [21, 0], sizes = [1, 32], strides = [1, 1]} : vector<31x32xbf16> to vector<1x32xbf16>
    %176 = vector.broadcast %175 : vector<1x32xbf16> to vector<3x32xbf16>
    %177 = arith.mulf %174, %176 : vector<3x32xbf16>
    %178 = arith.extf %177 : vector<3x32xbf16> to vector<3x32xf32>
    %179 = arith.addf %173, %178 : vector<3x32xf32>
    %180 = vector.extract_strided_slice %44 {offsets = [22, 0], sizes = [3, 32], strides = [1, 1]} : vector<33x32xbf16> to vector<3x32xbf16>
    %181 = vector.extract_strided_slice %46 {offsets = [22, 0], sizes = [1, 32], strides = [1, 1]} : vector<31x32xbf16> to vector<1x32xbf16>
    %182 = vector.broadcast %181 : vector<1x32xbf16> to vector<3x32xbf16>
    %183 = arith.mulf %180, %182 : vector<3x32xbf16>
    %184 = arith.extf %183 : vector<3x32xbf16> to vector<3x32xf32>
    %185 = arith.addf %179, %184 : vector<3x32xf32>
    %186 = vector.extract_strided_slice %44 {offsets = [23, 0], sizes = [3, 32], strides = [1, 1]} : vector<33x32xbf16> to vector<3x32xbf16>
    %187 = vector.extract_strided_slice %46 {offsets = [23, 0], sizes = [1, 32], strides = [1, 1]} : vector<31x32xbf16> to vector<1x32xbf16>
    %188 = vector.broadcast %187 : vector<1x32xbf16> to vector<3x32xbf16>
    %189 = arith.mulf %186, %188 : vector<3x32xbf16>
    %190 = arith.extf %189 : vector<3x32xbf16> to vector<3x32xf32>
    %191 = arith.addf %185, %190 : vector<3x32xf32>
    %192 = vector.extract_strided_slice %44 {offsets = [24, 0], sizes = [3, 32], strides = [1, 1]} : vector<33x32xbf16> to vector<3x32xbf16>
    %193 = vector.extract_strided_slice %46 {offsets = [24, 0], sizes = [1, 32], strides = [1, 1]} : vector<31x32xbf16> to vector<1x32xbf16>
    %194 = vector.broadcast %193 : vector<1x32xbf16> to vector<3x32xbf16>
    %195 = arith.mulf %192, %194 : vector<3x32xbf16>
    %196 = arith.extf %195 : vector<3x32xbf16> to vector<3x32xf32>
    %197 = arith.addf %191, %196 : vector<3x32xf32>
    %198 = vector.extract_strided_slice %44 {offsets = [25, 0], sizes = [3, 32], strides = [1, 1]} : vector<33x32xbf16> to vector<3x32xbf16>
    %199 = vector.extract_strided_slice %46 {offsets = [25, 0], sizes = [1, 32], strides = [1, 1]} : vector<31x32xbf16> to vector<1x32xbf16>
    %200 = vector.broadcast %199 : vector<1x32xbf16> to vector<3x32xbf16>
    %201 = arith.mulf %198, %200 : vector<3x32xbf16>
    %202 = arith.extf %201 : vector<3x32xbf16> to vector<3x32xf32>
    %203 = arith.addf %197, %202 : vector<3x32xf32>
    %204 = vector.extract_strided_slice %44 {offsets = [26, 0], sizes = [3, 32], strides = [1, 1]} : vector<33x32xbf16> to vector<3x32xbf16>
    %205 = vector.extract_strided_slice %46 {offsets = [26, 0], sizes = [1, 32], strides = [1, 1]} : vector<31x32xbf16> to vector<1x32xbf16>
    %206 = vector.broadcast %205 : vector<1x32xbf16> to vector<3x32xbf16>
    %207 = arith.mulf %204, %206 : vector<3x32xbf16>
    %208 = arith.extf %207 : vector<3x32xbf16> to vector<3x32xf32>
    %209 = arith.addf %203, %208 : vector<3x32xf32>
    %210 = vector.extract_strided_slice %44 {offsets = [27, 0], sizes = [3, 32], strides = [1, 1]} : vector<33x32xbf16> to vector<3x32xbf16>
    %211 = vector.extract_strided_slice %46 {offsets = [27, 0], sizes = [1, 32], strides = [1, 1]} : vector<31x32xbf16> to vector<1x32xbf16>
    %212 = vector.broadcast %211 : vector<1x32xbf16> to vector<3x32xbf16>
    %213 = arith.mulf %210, %212 : vector<3x32xbf16>
    %214 = arith.extf %213 : vector<3x32xbf16> to vector<3x32xf32>
    %215 = arith.addf %209, %214 : vector<3x32xf32>
    %216 = vector.extract_strided_slice %44 {offsets = [28, 0], sizes = [3, 32], strides = [1, 1]} : vector<33x32xbf16> to vector<3x32xbf16>
    %217 = vector.extract_strided_slice %46 {offsets = [28, 0], sizes = [1, 32], strides = [1, 1]} : vector<31x32xbf16> to vector<1x32xbf16>
    %218 = vector.broadcast %217 : vector<1x32xbf16> to vector<3x32xbf16>
    %219 = arith.mulf %216, %218 : vector<3x32xbf16>
    %220 = arith.extf %219 : vector<3x32xbf16> to vector<3x32xf32>
    %221 = arith.addf %215, %220 : vector<3x32xf32>
    %222 = vector.extract_strided_slice %44 {offsets = [29, 0], sizes = [3, 32], strides = [1, 1]} : vector<33x32xbf16> to vector<3x32xbf16>
    %223 = vector.extract_strided_slice %46 {offsets = [29, 0], sizes = [1, 32], strides = [1, 1]} : vector<31x32xbf16> to vector<1x32xbf16>
    %224 = vector.broadcast %223 : vector<1x32xbf16> to vector<3x32xbf16>
    %225 = arith.mulf %222, %224 : vector<3x32xbf16>
    %226 = arith.extf %225 : vector<3x32xbf16> to vector<3x32xf32>
    %227 = arith.addf %221, %226 : vector<3x32xf32>
    %228 = vector.extract_strided_slice %44 {offsets = [30, 0], sizes = [3, 32], strides = [1, 1]} : vector<33x32xbf16> to vector<3x32xbf16>
    %229 = vector.extract_strided_slice %46 {offsets = [30, 0], sizes = [1, 32], strides = [1, 1]} : vector<31x32xbf16> to vector<1x32xbf16>
    %230 = vector.broadcast %229 : vector<1x32xbf16> to vector<3x32xbf16>
    %231 = arith.mulf %228, %230 : vector<3x32xbf16>
    %232 = arith.extf %231 : vector<3x32xbf16> to vector<3x32xf32>
    %233 = arith.addf %227, %232 : vector<3x32xf32>
    %c0_22 = arith.constant 0 : index
    %c0_23 = arith.constant 0 : index
    %234 = vector.load %arg7[%c0_22, %c0_23] : memref<1x32xf32, #tpu.memory_space<vmem>>, vector<1x32xf32>
    %235 = vector.broadcast %234 : vector<1x32xf32> to vector<3x32xf32>
    %236 = arith.mulf %233, %235 : vector<3x32xf32>
    %c0_24 = arith.constant 0 : index
    %c0_25 = arith.constant 0 : index
    %237 = vector.load %arg8[%c0_24, %c0_25] : memref<1x32xf32, #tpu.memory_space<vmem>>, vector<1x32xf32>
    %238 = vector.broadcast %237 : vector<1x32xf32> to vector<3x32xf32>
    %239 = arith.addf %236, %238 : vector<3x32xf32>
    %cst_26 = arith.constant 0.000000e+00 : f32
    %240 = vector.broadcast %cst_26 : f32 to vector<3x32xf32>
    %241 = arith.subf %240, %239 : vector<3x32xf32>
    %242 = math.exp %241 : vector<3x32xf32>
    %cst_27 = arith.constant 1.000000e+00 : f32
    %243 = vector.broadcast %cst_27 : f32 to vector<3x32xf32>
    %244 = arith.addf %243, %242 : vector<3x32xf32>
    %cst_28 = arith.constant 1.000000e+00 : f32
    %245 = vector.broadcast %cst_28 : f32 to vector<3x32xf32>
    %246 = arith.divf %245, %244 : vector<3x32xf32>
    %247 = arith.mulf %239, %246 : vector<3x32xf32>
    %248 = arith.truncf %247 : vector<3x32xf32> to vector<3x32xbf16>
    %c0_29 = arith.constant 0 : index
    %c0_30 = arith.constant 0 : index
    %249 = vector.load %arg9[%c0_29, %c0_30] : memref<32x32xbf16, #tpu.memory_space<vmem>>, vector<32x32xbf16>
    %cst_31 = arith.constant dense<0.000000e+00> : vector<3x32xf32>
    %250 = tpu.matmul %248, %249, %cst_31 {dimension_numbers = #tpu.dot_dimension_numbers<[1], [0], [0], [1], [0, 0, 1, 1], [], []>} : vector<3x32xbf16>, vector<32x32xbf16>, vector<3x32xf32> -> vector<3x32xf32>
    %c0_32 = arith.constant 0 : index
    %c0_33 = arith.constant 0 : index
    %251 = vector.load %arg10[%c0_32, %c0_33] : memref<1x32xf32, #tpu.memory_space<vmem>>, vector<1x32xf32>
    %252 = vector.broadcast %251 : vector<1x32xf32> to vector<3x32xf32>
    %253 = arith.addf %250, %252 : vector<3x32xf32>
    %254 = arith.addf %1, %253 : vector<3x32xf32>
    %c0_34 = arith.constant 0 : index
    %c0_35 = arith.constant 0 : index
    %c0_36 = arith.constant 0 : index
    %255 = vector.load %arg11[%c0_34, %c0_35, %c0_36] : memref<1x3x32xf32, #tpu.memory_space<vmem>>, vector<1x3x32xf32>
    %256 = vector.shape_cast %255 : vector<1x3x32xf32> to vector<3x32xf32>
    %257 = vector.shape_cast %254 : vector<3x32xf32> to vector<1x3x32xf32>
    tpu.vector_store %arg11[%c0_34, %c0_35, %c0_36], %257 {strides = array<i32>} : memref<1x3x32xf32, #tpu.memory_space<vmem>>, vector<1x3x32xf32>,
    return
  }
  func.func @transform_0(%arg0: i32) -> (i32, i32, i32) {
    %c0_i32 = arith.constant 0 : i32
    %c0_i32_0 = arith.constant 0 : i32
    %c0_i32_1 = arith.constant 0 : i32
    return %arg0, %c0_i32, %c0_i32_0 : i32, i32, i32
  }
  func.func @transform_1(%arg0: i32) -> (i32, i32) {
    %c0_i32 = arith.constant 0 : i32
    %c0_i32_0 = arith.constant 0 : i32
    %c0_i32_1 = arith.constant 0 : i32
    return %c0_i32, %c0_i32_0 : i32, i32
  }
  func.func @transform_2(%arg0: i32) -> (i32, i32) {
    %c0_i32 = arith.constant 0 : i32
    %c0_i32_0 = arith.constant 0 : i32
    %c0_i32_1 = arith.constant 0 : i32
    return %c0_i32, %c0_i32_0 : i32, i32
  }
  func.func @transform_3(%arg0: i32) -> (i32, i32) {
    %c0_i32 = arith.constant 0 : i32
    %c0_i32_0 = arith.constant 0 : i32
    %c0_i32_1 = arith.constant 0 : i32
    return %c0_i32, %c0_i32_0 : i32, i32
  }
  func.func @transform_4(%arg0: i32) -> (i32, i32) {
    %c0_i32 = arith.constant 0 : i32
    %c0_i32_0 = arith.constant 0 : i32
    %c0_i32_1 = arith.constant 0 : i32
    return %c0_i32, %c0_i32_0 : i32, i32
  }
  func.func @transform_5(%arg0: i32) -> (i32, i32) {
    %c0_i32 = arith.constant 0 : i32
    %c0_i32_0 = arith.constant 0 : i32
    %c0_i32_1 = arith.constant 0 : i32
    return %c0_i32, %c0_i32_0 : i32, i32
  }
  func.func @transform_6(%arg0: i32) -> (i32, i32) {
    %c0_i32 = arith.constant 0 : i32
    %c0_i32_0 = arith.constant 0 : i32
    %c0_i32_1 = arith.constant 0 : i32
    return %c0_i32, %c0_i32_0 : i32, i32
  }
  func.func @transform_7(%arg0: i32) -> (i32, i32) {
    %c0_i32 = arith.constant 0 : i32
    %c0_i32_0 = arith.constant 0 : i32
    %c0_i32_1 = arith.constant 0 : i32
    return %c0_i32, %c0_i32_0 : i32, i32
  }
  func.func @transform_8(%arg0: i32) -> (i32, i32) {
    %c0_i32 = arith.constant 0 : i32
    %c0_i32_0 = arith.constant 0 : i32
    %c0_i32_1 = arith.constant 0 : i32
    return %c0_i32, %c0_i32_0 : i32, i32
  }
  func.func @transform_9(%arg0: i32) -> (i32, i32) {
    %c0_i32 = arith.constant 0 : i32
    %c0_i32_0 = arith.constant 0 : i32
    %c0_i32_1 = arith.constant 0 : i32
    return %c0_i32, %c0_i32_0 : i32, i32
  }
  func.func @transform_10(%arg0: i32) -> (i32, i32, i32) {
    %c0_i32 = arith.constant 0 : i32
    %c0_i32_0 = arith.constant 0 : i32
    %c0_i32_1 = arith.constant 0 : i32
    return %arg0, %c0_i32, %c0_i32_0 : i32, i32, i32
  }
}

module attributes {stable_mosaic.version = 11 : i64} {
  func.func @_ffn_kernel(%arg0: i32, %arg1: memref<6x32xf32, #tpu.memory_space<vmem>>, %arg2: memref<1x32xf32, #tpu.memory_space<vmem>>, %arg3: memref<1x32xf32, #tpu.memory_space<vmem>>, %arg4: memref<32x128xbf16, #tpu.memory_space<vmem>>, %arg5: memref<1x128xf32, #tpu.memory_space<vmem>>, %arg6: memref<128x32xbf16, #tpu.memory_space<vmem>>, %arg7: memref<1x32xf32, #tpu.memory_space<vmem>>, %arg8: memref<1x32xf32, #tpu.memory_space<vmem>>, %arg9: memref<1x32xf32, #tpu.memory_space<vmem>>, %arg10: memref<6x32xf32, #tpu.memory_space<vmem>>) attributes {dimension_semantics = [#tpu.dimension_semantics<parallel>], iteration_bounds = array<i64: 1>, scalar_prefetch = 0 : i64, scratch_operands = 0 : i64, tpu.core_type = #tpu.core_type<tc>, window_params = [{transform_indices = @transform_0, window_bounds = array<i64: 6, 32>}, {pipeline_mode = #tpu.pipeline_mode<synchronous>, transform_indices = @transform_1, window_bounds = array<i64: 1, 32>}, {pipeline_mode = #tpu.pipeline_mode<synchronous>, transform_indices = @transform_2, window_bounds = array<i64: 1, 32>}, {pipeline_mode = #tpu.pipeline_mode<synchronous>, transform_indices = @transform_3, window_bounds = array<i64: 32, 128>}, {pipeline_mode = #tpu.pipeline_mode<synchronous>, transform_indices = @transform_4, window_bounds = array<i64: 1, 128>}, {pipeline_mode = #tpu.pipeline_mode<synchronous>, transform_indices = @transform_5, window_bounds = array<i64: 128, 32>}, {pipeline_mode = #tpu.pipeline_mode<synchronous>, transform_indices = @transform_6, window_bounds = array<i64: 1, 32>}, {pipeline_mode = #tpu.pipeline_mode<synchronous>, transform_indices = @transform_7, window_bounds = array<i64: 1, 32>}, {pipeline_mode = #tpu.pipeline_mode<synchronous>, transform_indices = @transform_8, window_bounds = array<i64: 1, 32>}, {transform_indices = @transform_9, window_bounds = array<i64: 6, 32>}]} {
    %c0 = arith.constant 0 : index
    %c0_0 = arith.constant 0 : index
    %0 = vector.load %arg1[%c0, %c0_0] : memref<6x32xf32, #tpu.memory_space<vmem>>, vector<6x32xf32>
    %c0_1 = arith.constant 0 : index
    %c0_2 = arith.constant 0 : index
    %1 = vector.load %arg2[%c0_1, %c0_2] : memref<1x32xf32, #tpu.memory_space<vmem>>, vector<1x32xf32>
    %c0_3 = arith.constant 0 : index
    %c0_4 = arith.constant 0 : index
    %2 = vector.load %arg3[%c0_3, %c0_4] : memref<1x32xf32, #tpu.memory_space<vmem>>, vector<1x32xf32>
    %cst = arith.constant dense<0.000000e+00> : vector<6xf32>
    %3 = vector.multi_reduction <add>, %0, %cst [1] : vector<6x32xf32> to vector<6xf32>
    %4 = vector.shape_cast %3 : vector<6xf32> to vector<6x1xf32>
    %cst_5 = arith.constant 3.200000e+01 : f32
    %5 = vector.broadcast %cst_5 : f32 to vector<6x1xf32>
    %6 = arith.divf %4, %5 : vector<6x1xf32>
    %7 = vector.broadcast %6 : vector<6x1xf32> to vector<6x32xf32>
    %8 = arith.subf %0, %7 : vector<6x32xf32>
    %9 = arith.mulf %8, %8 : vector<6x32xf32>
    %cst_6 = arith.constant dense<0.000000e+00> : vector<6xf32>
    %10 = vector.multi_reduction <add>, %9, %cst_6 [1] : vector<6x32xf32> to vector<6xf32>
    %11 = vector.shape_cast %10 : vector<6xf32> to vector<6x1xf32>
    %cst_7 = arith.constant 3.200000e+01 : f32
    %12 = vector.broadcast %cst_7 : f32 to vector<6x1xf32>
    %13 = arith.divf %11, %12 : vector<6x1xf32>
    %14 = vector.broadcast %6 : vector<6x1xf32> to vector<6x32xf32>
    %15 = arith.subf %0, %14 : vector<6x32xf32>
    %cst_8 = arith.constant 9.99999974E-6 : f32
    %16 = vector.broadcast %cst_8 : f32 to vector<6x1xf32>
    %17 = arith.addf %13, %16 : vector<6x1xf32>
    %18 = math.rsqrt %17 : vector<6x1xf32>
    %19 = vector.broadcast %18 : vector<6x1xf32> to vector<6x32xf32>
    %20 = arith.mulf %15, %19 : vector<6x32xf32>
    %21 = vector.broadcast %1 : vector<1x32xf32> to vector<6x32xf32>
    %22 = arith.mulf %20, %21 : vector<6x32xf32>
    %23 = vector.broadcast %2 : vector<1x32xf32> to vector<6x32xf32>
    %24 = arith.addf %22, %23 : vector<6x32xf32>
    %25 = arith.truncf %24 : vector<6x32xf32> to vector<6x32xbf16>
    %c0_9 = arith.constant 0 : index
    %c0_10 = arith.constant 0 : index
    %26 = vector.load %arg4[%c0_9, %c0_10] : memref<32x128xbf16, #tpu.memory_space<vmem>>, vector<32x128xbf16>
    %cst_11 = arith.constant dense<0.000000e+00> : vector<6x128xf32>
    %27 = tpu.matmul %25, %26, %cst_11 {dimension_numbers = #tpu.dot_dimension_numbers<[1], [0], [0], [1], [0, 0, 1, 1], [], []>} : vector<6x32xbf16>, vector<32x128xbf16>, vector<6x128xf32> -> vector<6x128xf32>
    %c0_12 = arith.constant 0 : index
    %c0_13 = arith.constant 0 : index
    %28 = vector.load %arg5[%c0_12, %c0_13] : memref<1x128xf32, #tpu.memory_space<vmem>>, vector<1x128xf32>
    %29 = vector.broadcast %28 : vector<1x128xf32> to vector<6x128xf32>
    %30 = arith.addf %27, %29 : vector<6x128xf32>
    %cst_14 = arith.constant 0.000000e+00 : f32
    %31 = vector.broadcast %cst_14 : f32 to vector<6x128xf32>
    %32 = arith.subf %31, %30 : vector<6x128xf32>
    %33 = math.exp %32 : vector<6x128xf32>
    %cst_15 = arith.constant 1.000000e+00 : f32
    %34 = vector.broadcast %cst_15 : f32 to vector<6x128xf32>
    %35 = arith.addf %34, %33 : vector<6x128xf32>
    %cst_16 = arith.constant 1.000000e+00 : f32
    %36 = vector.broadcast %cst_16 : f32 to vector<6x128xf32>
    %37 = arith.divf %36, %35 : vector<6x128xf32>
    %38 = arith.mulf %30, %37 : vector<6x128xf32>
    %39 = arith.truncf %38 : vector<6x128xf32> to vector<6x128xbf16>
    %c0_17 = arith.constant 0 : index
    %c0_18 = arith.constant 0 : index
    %40 = vector.load %arg6[%c0_17, %c0_18] : memref<128x32xbf16, #tpu.memory_space<vmem>>, vector<128x32xbf16>
    %cst_19 = arith.constant dense<0.000000e+00> : vector<6x32xf32>
    %41 = tpu.matmul %39, %40, %cst_19 {dimension_numbers = #tpu.dot_dimension_numbers<[1], [0], [0], [1], [0, 0, 1, 1], [], []>} : vector<6x128xbf16>, vector<128x32xbf16>, vector<6x32xf32> -> vector<6x32xf32>
    %c0_20 = arith.constant 0 : index
    %c0_21 = arith.constant 0 : index
    %42 = vector.load %arg7[%c0_20, %c0_21] : memref<1x32xf32, #tpu.memory_space<vmem>>, vector<1x32xf32>
    %43 = vector.broadcast %42 : vector<1x32xf32> to vector<6x32xf32>
    %44 = arith.addf %41, %43 : vector<6x32xf32>
    %cst_22 = arith.constant 5.000000e-01 : f32
    %45 = vector.broadcast %cst_22 : f32 to vector<6x32xf32>
    %46 = arith.mulf %45, %44 : vector<6x32xf32>
    %47 = arith.addf %0, %46 : vector<6x32xf32>
    %c0_23 = arith.constant 0 : index
    %c0_24 = arith.constant 0 : index
    %48 = vector.load %arg8[%c0_23, %c0_24] : memref<1x32xf32, #tpu.memory_space<vmem>>, vector<1x32xf32>
    %c0_25 = arith.constant 0 : index
    %c0_26 = arith.constant 0 : index
    %49 = vector.load %arg9[%c0_25, %c0_26] : memref<1x32xf32, #tpu.memory_space<vmem>>, vector<1x32xf32>
    %cst_27 = arith.constant dense<0.000000e+00> : vector<6xf32>
    %50 = vector.multi_reduction <add>, %47, %cst_27 [1] : vector<6x32xf32> to vector<6xf32>
    %51 = vector.shape_cast %50 : vector<6xf32> to vector<6x1xf32>
    %cst_28 = arith.constant 3.200000e+01 : f32
    %52 = vector.broadcast %cst_28 : f32 to vector<6x1xf32>
    %53 = arith.divf %51, %52 : vector<6x1xf32>
    %54 = vector.broadcast %53 : vector<6x1xf32> to vector<6x32xf32>
    %55 = arith.subf %47, %54 : vector<6x32xf32>
    %56 = arith.mulf %55, %55 : vector<6x32xf32>
    %cst_29 = arith.constant dense<0.000000e+00> : vector<6xf32>
    %57 = vector.multi_reduction <add>, %56, %cst_29 [1] : vector<6x32xf32> to vector<6xf32>
    %58 = vector.shape_cast %57 : vector<6xf32> to vector<6x1xf32>
    %cst_30 = arith.constant 3.200000e+01 : f32
    %59 = vector.broadcast %cst_30 : f32 to vector<6x1xf32>
    %60 = arith.divf %58, %59 : vector<6x1xf32>
    %61 = vector.broadcast %53 : vector<6x1xf32> to vector<6x32xf32>
    %62 = arith.subf %47, %61 : vector<6x32xf32>
    %cst_31 = arith.constant 9.99999974E-6 : f32
    %63 = vector.broadcast %cst_31 : f32 to vector<6x1xf32>
    %64 = arith.addf %60, %63 : vector<6x1xf32>
    %65 = math.rsqrt %64 : vector<6x1xf32>
    %66 = vector.broadcast %65 : vector<6x1xf32> to vector<6x32xf32>
    %67 = arith.mulf %62, %66 : vector<6x32xf32>
    %68 = vector.broadcast %48 : vector<1x32xf32> to vector<6x32xf32>
    %69 = arith.mulf %67, %68 : vector<6x32xf32>
    %70 = vector.broadcast %49 : vector<1x32xf32> to vector<6x32xf32>
    %71 = arith.addf %69, %70 : vector<6x32xf32>
    %c0_32 = arith.constant 0 : index
    %c0_33 = arith.constant 0 : index
    %72 = vector.load %arg10[%c0_32, %c0_33] : memref<6x32xf32, #tpu.memory_space<vmem>>, vector<6x32xf32>
    tpu.vector_store %arg10[%c0_32, %c0_33], %71 {strides = array<i32>} : memref<6x32xf32, #tpu.memory_space<vmem>>, vector<6x32xf32>,
    return
  }
  func.func @transform_0(%arg0: i32) -> (i32, i32) {
    %c0_i32 = arith.constant 0 : i32
    %c0_i32_0 = arith.constant 0 : i32
    return %arg0, %c0_i32 : i32, i32
  }
  func.func @transform_1(%arg0: i32) -> (i32, i32) {
    %c0_i32 = arith.constant 0 : i32
    %c0_i32_0 = arith.constant 0 : i32
    %c0_i32_1 = arith.constant 0 : i32
    return %c0_i32, %c0_i32_0 : i32, i32
  }
  func.func @transform_2(%arg0: i32) -> (i32, i32) {
    %c0_i32 = arith.constant 0 : i32
    %c0_i32_0 = arith.constant 0 : i32
    %c0_i32_1 = arith.constant 0 : i32
    return %c0_i32, %c0_i32_0 : i32, i32
  }
  func.func @transform_3(%arg0: i32) -> (i32, i32) {
    %c0_i32 = arith.constant 0 : i32
    %c0_i32_0 = arith.constant 0 : i32
    %c0_i32_1 = arith.constant 0 : i32
    return %c0_i32, %c0_i32_0 : i32, i32
  }
  func.func @transform_4(%arg0: i32) -> (i32, i32) {
    %c0_i32 = arith.constant 0 : i32
    %c0_i32_0 = arith.constant 0 : i32
    %c0_i32_1 = arith.constant 0 : i32
    return %c0_i32, %c0_i32_0 : i32, i32
  }
  func.func @transform_5(%arg0: i32) -> (i32, i32) {
    %c0_i32 = arith.constant 0 : i32
    %c0_i32_0 = arith.constant 0 : i32
    %c0_i32_1 = arith.constant 0 : i32
    return %c0_i32, %c0_i32_0 : i32, i32
  }
  func.func @transform_6(%arg0: i32) -> (i32, i32) {
    %c0_i32 = arith.constant 0 : i32
    %c0_i32_0 = arith.constant 0 : i32
    %c0_i32_1 = arith.constant 0 : i32
    return %c0_i32, %c0_i32_0 : i32, i32
  }
  func.func @transform_7(%arg0: i32) -> (i32, i32) {
    %c0_i32 = arith.constant 0 : i32
    %c0_i32_0 = arith.constant 0 : i32
    %c0_i32_1 = arith.constant 0 : i32
    return %c0_i32, %c0_i32_0 : i32, i32
  }
  func.func @transform_8(%arg0: i32) -> (i32, i32) {
    %c0_i32 = arith.constant 0 : i32
    %c0_i32_0 = arith.constant 0 : i32
    %c0_i32_1 = arith.constant 0 : i32
    return %c0_i32, %c0_i32_0 : i32, i32
  }
  func.func @transform_9(%arg0: i32) -> (i32, i32) {
    %c0_i32 = arith.constant 0 : i32
    %c0_i32_0 = arith.constant 0 : i32
    return %arg0, %c0_i32 : i32, i32
  }
}

module attributes {stable_mosaic.version = 11 : i64} {
  func.func @_fc_logsoftmax_kernel(%arg0: i32, %arg1: memref<6x32xbf16, #tpu.memory_space<vmem>>, %arg2: memref<32x128xbf16, #tpu.memory_space<vmem>>, %arg3: memref<6x128xf32, #tpu.memory_space<vmem>>) attributes {dimension_semantics = [#tpu.dimension_semantics<parallel>], iteration_bounds = array<i64: 1>, scalar_prefetch = 0 : i64, scratch_operands = 0 : i64, tpu.core_type = #tpu.core_type<tc>, window_params = [{transform_indices = @transform_0, window_bounds = array<i64: 6, 32>}, {pipeline_mode = #tpu.pipeline_mode<synchronous>, transform_indices = @transform_1, window_bounds = array<i64: 32, 128>}, {transform_indices = @transform_2, window_bounds = array<i64: 6, 128>}]} {
    %c0 = arith.constant 0 : index
    %c0_0 = arith.constant 0 : index
    %0 = vector.load %arg1[%c0, %c0_0] : memref<6x32xbf16, #tpu.memory_space<vmem>>, vector<6x32xbf16>
    %c0_1 = arith.constant 0 : index
    %c0_2 = arith.constant 0 : index
    %1 = vector.load %arg2[%c0_1, %c0_2] : memref<32x128xbf16, #tpu.memory_space<vmem>>, vector<32x128xbf16>
    %cst = arith.constant dense<0.000000e+00> : vector<6x128xf32>
    %2 = tpu.matmul %0, %1, %cst {dimension_numbers = #tpu.dot_dimension_numbers<[1], [0], [0], [1], [0, 0, 1, 1], [], []>} : vector<6x32xbf16>, vector<32x128xbf16>, vector<6x128xf32> -> vector<6x128xf32>
    %3 = tpu.iota {dimensions = array<i32: 1>} : vector<6x128xi32>
    %c10_i32 = arith.constant 10 : i32
    %4 = vector.broadcast %c10_i32 : i32 to vector<6x128xi32>
    %5 = arith.cmpi slt, %3, %4 : vector<6x128xi32>
    %cst_3 = arith.constant -1.000000e+30 : f32
    %6 = vector.broadcast %cst_3 : f32 to vector<6x128xf32>
    %7 = arith.select %5, %2, %6 : vector<6x128xi1>, vector<6x128xf32>
    %cst_4 = arith.constant dense<0xFF800000> : vector<6xf32>
    %8 = vector.multi_reduction <maximumf>, %7, %cst_4 [1] : vector<6x128xf32> to vector<6xf32>
    %9 = vector.shape_cast %8 : vector<6xf32> to vector<6x1xf32>
    %10 = vector.broadcast %9 : vector<6x1xf32> to vector<6x128xf32>
    %11 = arith.subf %7, %10 : vector<6x128xf32>
    %12 = math.exp %11 : vector<6x128xf32>
    %cst_5 = arith.constant dense<0.000000e+00> : vector<6xf32>
    %13 = vector.multi_reduction <add>, %12, %cst_5 [1] : vector<6x128xf32> to vector<6xf32>
    %14 = vector.shape_cast %13 : vector<6xf32> to vector<6x1xf32>
    %15 = math.log %14 : vector<6x1xf32>
    %16 = vector.broadcast %15 : vector<6x1xf32> to vector<6x128xf32>
    %17 = arith.subf %11, %16 : vector<6x128xf32>
    %c0_6 = arith.constant 0 : index
    %c0_7 = arith.constant 0 : index
    %18 = vector.load %arg3[%c0_6, %c0_7] : memref<6x128xf32, #tpu.memory_space<vmem>>, vector<6x128xf32>
    tpu.vector_store %arg3[%c0_6, %c0_7], %17 {strides = array<i32>} : memref<6x128xf32, #tpu.memory_space<vmem>>, vector<6x128xf32>,
    return
  }
  func.func @transform_0(%arg0: i32) -> (i32, i32) {
    %c0_i32 = arith.constant 0 : i32
    %c0_i32_0 = arith.constant 0 : i32
    return %arg0, %c0_i32 : i32, i32
  }
  func.func @transform_1(%arg0: i32) -> (i32, i32) {
    %c0_i32 = arith.constant 0 : i32
    %c0_i32_0 = arith.constant 0 : i32
    %c0_i32_1 = arith.constant 0 : i32
    return %c0_i32, %c0_i32_0 : i32, i32
  }
  func.func @transform_2(%arg0: i32) -> (i32, i32) {
    %c0_i32 = arith.constant 0 : i32
    %c0_i32_0 = arith.constant 0 : i32
    return %arg0, %c0_i32 : i32, i32
  }
}

</mosaic_0001>

<bundles_post_ra>
// kernel: conformer_forward.14
= control target key start
LH: loop header
LB: loop body
LE: loop exit
PB: predicated region body
PF: predicated region fallthrough
CT: control target
= control target key end

     0   :  { %vm97_vm0 = vcmask 1043456   ;;  %vm98_vm1 = vcmask 1044480   ;;  %v370_v0 = vmov 0.0   ;;  %v371_v2 = vmov 65535   ;;  %s500_s1 = inlined_call_operand.vmem [shape: bf16[9,32], index: 1, kind: input, shape index: {}]   ;;  %s501_s0 = inlined_call_operand.vmem [shape: bf16[98,9], index: 0, kind: input, shape index: {}]   ;;  %s502_s2 = inlined_call_operand.vmem [shape: f32[1,32], index: 2, kind: input, shape index: {}]   ;;  %s503_s3 = inlined_call_operand.vmem [shape: bf16[98,32], index: 3, kind: output, shape index: {}]  }
   0x1   :  { %327 = vmatprep.subr.bf16.mxu0 %v370_v0  ;;  %v362_v1 = vld [vmem:[%s500_s1] sm:$0x1f]   ;;  %357 = vmatprep.subr.bf16.mxu1 %v370_v0  ;;  %v99_v3 = vsel %vm97_vm0, 4294967295, %v371_v2  ;;  %vm372_vm2 = vmmov 0   ;;  %vm75_vm3 = vcmask 72704   ;;  %v365_v8 = vld [vmem:[%s501_s0 + $0x8] sm:$0xff]  }
   0x2   :  { %v100_v4 = vsel %vm98_vm1, %v99_v3, 0  ;;  %329 = vmatprep.mubr.msk.bf16.mxu0 %vm372_vm2, %v370_v0  ;;  %v363_v5 = vld [vmem:[%s501_s0] sm:$0xff]   ;;  %345 = vmatprep.mubr.msk.bf16.mxu1 %vm372_vm2, %v370_v0  ;;  %v366_v9 = vld [vmem:[%s501_s0 + $0x28] sm:$0xff]   ;;  %v367_v10 = vld [vmem:[%s501_s0 + $0x10] sm:$0xff]   ;;  %vm258_vm4 = vcmask 257024   ;;  %vm271_vm5 = vcmask 253952  }
   0x3   :  { %v102_v6 = vand.u32 %v362_v1, %v100_v4  ;;  %v364_v7 = vld [vmem:[%s501_s0 + $0x20] sm:$0xff]   ;;  %v368_v11 = vld [vmem:[%s501_s0 + $0x30] ss:$0 sps:$4 sm:$0x11]   ;;  %v369_v12 = vld [vmem:[%s501_s0 + $0x18] sm:$0xff]  }
   0x4   :  { %v434_v13 = vld [vmem:[%s502_s2] ss:$0 sm:$0xff] }
   0x5   :  { %328 = vmatpush3.bf16.msra.mxu0 %v102_v6  ;;  %358 = vmatpush3.bf16.msra.mxu1 %v102_v6 }
   0x8   :  { %330 = vmatmul.mubr.msk.bf16.vlgmr.msra.gmra.mxu0 %vm75_vm3, %v363_v5  ;;  %346 = vmatmul.mubr.msk.bf16.vlgmr.msra.gmra.mxu1 %vm75_vm3, %v364_v7 }
   0x9   :  { %333 = vmatprep.mubr.msk.bf16.mxu0 %vm372_vm2, %v370_v0  ;;  %349 = vmatprep.mubr.msk.bf16.mxu1 %vm372_vm2, %v370_v0 }
  0x10   :  { %334 = vmatmul.mubr.msk.bf16.gmra.mxu0 %vm75_vm3, %v365_v8  ;;  %350 = vmatmul.mubr.msk.bf16.gmra.mxu1 %vm75_vm3, %v366_v9 }
  0x11   :  { %337 = vmatprep.mubr.msk.bf16.mxu0 %vm372_vm2, %v370_v0  ;;  %353 = vmatprep.mubr.msk.bf16.mxu1 %vm372_vm2, %v370_v0 }
  0x18   :  { %338 = vmatmul.mubr.msk.bf16.gmra.mxu0 %vm75_vm3, %v367_v10  ;;  %354 = vmatmul.mubr.msk.bf16.gmra.mxu1 %vm75_vm3, %v368_v11 }
  0x19   :  { %341 = vmatprep.mubr.msk.bf16.mxu0 %vm372_vm2, %v370_v0 }
  0x20   :  { %342 = vmatmul.mubr.msk.bf16.gmra.mxu0 %vm75_vm3, %v369_v12 }
  0xc8   :  { %v138_v14 = vpop.f32.mrf.mxu0  ;;  %v170_v15 = vpop.f32.mrf.mxu1 }
  0xc9   :  { %v139_v16 = vadd.f32 %v434_v13, %v138_v14  ;;  %v171_v17 = vadd.f32 %v434_v13, %v170_v15 }
  0xca   :  { %v331_v18 = vpop.f32.mrf.mxu0  ;;  %v347_v19 = vpop.f32.mrf.mxu1 }
  0xcb   :  { %v192_v20 = vmax.f32 %v139_v16, 0.0  ;;  %v200_v21 = vmax.f32 %v171_v17, 0.0 }
  0xcc   :  { %v141_v22 = vpop.f32.mrf.mxu0  ;;  %v173_v23 = vpop.f32.mrf.mxu1 }
  0xcd   :  { %v306_v24 = vpack.c.bf16 %v192_v20, %v192_v20  ;;  %v142_v25 = vadd.f32 %v434_v13, %v141_v22  ;;  %v314_v26 = vpack.c.bf16 %v200_v21, %v200_v21  ;;  %v174_v27 = vadd.f32 %v434_v13, %v173_v23 }
  0xce   :  { %v332_v28 = vpop.f32.mrf.mxu0  ;;  %v348_v29 = vpop.f32.mrf.mxu1 }
  0xcf   :  { %259 = vst.msk [vmem:[%s503_s3] sm:$0xf] %vm258_vm4, %v306_v24  ;;  %v193_v30 = vmax.f32 %v142_v25, 0.0  ;;  %267 = vst.msk [vmem:[%s503_s3 + $0x20] sm:$0xf] %vm258_vm4, %v314_v26  ;;  %v201_v31 = vmax.f32 %v174_v27, 0.0 }
  0xd0   :  { %v146_v32 = vpop.f32.mrf.mxu0  ;;  %v178_v33 = vpop.f32.mrf.mxu1 }
  0xd1   :  { %v307_v34 = vpack.c.bf16 %v193_v30, %v193_v30  ;;  %v147_v35 = vadd.f32 %v434_v13, %v146_v32  ;;  %v315_v36 = vpack.c.bf16 %v201_v31, %v201_v31  ;;  %v179_v37 = vadd.f32 %v434_v13, %v178_v33 }
  0xd2   :  { %v335_v38 = vpop.f32.mrf.mxu0  ;;  %v351_v39 = vpop.f32.mrf.mxu1 }
  0xd3   :  { %260 = vst.msk [vmem:[%s503_s3 + $0x4] sm:$0xf] %vm258_vm4, %v307_v34  ;;  %v194_v40 = vmax.f32 %v147_v35, 0.0  ;;  %268 = vst.msk [vmem:[%s503_s3 + $0x24] sm:$0xf] %vm258_vm4, %v315_v36  ;;  %v202_v41 = vmax.f32 %v179_v37, 0.0 }
  0xd4   :  { %v149_v42 = vpop.f32.mrf.mxu0  ;;  %v181_v43 = vpop.f32.mrf.mxu1 }
  0xd5   :  { %v308_v44 = vpack.c.bf16 %v194_v40, %v194_v40  ;;  %v150_v45 = vadd.f32 %v434_v13, %v149_v42  ;;  %v316_v46 = vpack.c.bf16 %v202_v41, %v202_v41  ;;  %v182_v47 = vadd.f32 %v434_v13, %v181_v43 }
  0xd6   :  { %v336_v48 = vpop.f32.mrf.mxu0  ;;  %v352_v49 = vpop.f32.mrf.mxu1 }
  0xd7   :  { %261 = vst.msk [vmem:[%s503_s3 + $0x8] sm:$0xf] %vm258_vm4, %v308_v44  ;;  %v195_v50 = vmax.f32 %v150_v45, 0.0  ;;  %269 = vst.msk [vmem:[%s503_s3 + $0x28] sm:$0xf] %vm258_vm4, %v316_v46  ;;  %v203_v51 = vmax.f32 %v182_v47, 0.0 }
  0xd8   :  { %v154_v52 = vpop.f32.mrf.mxu0  ;;  %v186_v53 = vpop.f32.mrf.mxu1 }
  0xd9   :  { %v309_v54 = vpack.c.bf16 %v195_v50, %v195_v50  ;;  %v155_v55 = vadd.f32 %v434_v13, %v154_v52  ;;  %v317_v56 = vpack.c.bf16 %v203_v51, %v203_v51  ;;  %v187_v57 = vadd.f32 %v434_v13, %v186_v53 }
  0xda   :  { %v339_v58 = vpop.f32.mrf.mxu0  ;;  %v355_v59 = vpop.f32.mrf.mxu1 }
  0xdb   :  { %262 = vst.msk [vmem:[%s503_s3 + $0xc] sm:$0xf] %vm258_vm4, %v309_v54  ;;  %v196_v60 = vmax.f32 %v155_v55, 0.0  ;;  %270 = vst.msk [vmem:[%s503_s3 + $0x2c] sm:$0xf] %vm258_vm4, %v317_v56  ;;  %v204_v61 = vmax.f32 %v187_v57, 0.0 }
  0xdc   :  { %v157_v62 = vpop.f32.mrf.mxu0  ;;  %v189_v63 = vpop.f32.mrf.mxu1 }
  0xdd   :  { %v310_v0 = vpack.c.bf16 %v196_v60, %v196_v60  ;;  %v158_v1 = vadd.f32 %v434_v13, %v157_v62  ;;  %v318_v2 = vpack.c.bf16 %v204_v61, %v204_v61 }
  0xde   :  { %v340_v3 = vpop.f32.mrf.mxu0  ;;  %v356_v4 = vpop.f32.mrf.mxu1 }
  0xdf   :  { %263 = vst.msk [vmem:[%s503_s3 + $0x10] sm:$0xf] %vm258_vm4, %v310_v0  ;;  %v197_v5 = vmax.f32 %v158_v1, 0.0 }
  0xe0   :  { %272 = vst.msk [vmem:[%s503_s3 + $0x30] sm:$0x1] %vm271_vm5, %v318_v2  ;;  %v162_v6 = vpop.f32.mrf.mxu0 }
  0xe1   :  { %v311_v7 = vpack.c.bf16 %v197_v5, %v197_v5  ;;  %v163_v8 = vadd.f32 %v434_v13, %v162_v6 }
  0xe2   :  { %v343_v9 = vpop.f32.mrf.mxu0 }
  0xe3   :  { %264 = vst.msk [vmem:[%s503_s3 + $0x14] sm:$0xf] %vm258_vm4, %v311_v7  ;;  %v198_v10 = vmax.f32 %v163_v8, 0.0 }
  0xe4   :  { %v165_v11 = vpop.f32.mrf.mxu0 }
  0xe5   :  { %v312_v12 = vpack.c.bf16 %v198_v10, %v198_v10  ;;  %v166_v14 = vadd.f32 %v434_v13, %v165_v11 }
  0xe6   :  { %v344_v15 = vpop.f32.mrf.mxu0 }
  0xe7   :  { %265 = vst.msk [vmem:[%s503_s3 + $0x18] sm:$0xf] %vm258_vm4, %v312_v12  ;;  %v199_v16 = vmax.f32 %v166_v14, 0.0 }
  0xe9   :  { %v313_v17 = vpack.c.bf16 %v199_v16, %v199_v16 }
  0xeb   :  { %266 = vst.msk [vmem:[%s503_s3 + $0x1c] sm:$0xf] %vm258_vm4, %v313_v17 }

// kernel: conformer_forward.15
= control target key start
LH: loop header
LB: loop body
LE: loop exit
PB: predicated region body
PF: predicated region fallthrough
CT: control target
= control target key end

     0   :  { %vm197_vm0 = vcmask 261120   ;;  %vm316_vm1 = vcmask 257024   ;;  %vm319_vm2 = vcmask 253952   ;;  %s524_s1 = inlined_call_operand.vmem [shape: bf16[288,32], index: 1, kind: input, shape index: {}]   ;;  %s525_s0 = inlined_call_operand.vmem [shape: bf16[18,288], index: 0, kind: input, shape index: {}]   ;;  %s526_s2 = inlined_call_operand.vmem [shape: f32[1,32], index: 2, kind: input, shape index: {}]   ;;  %s527_s3 = inlined_call_operand.vmem [shape: bf16[18,32], index: 3, kind: output, shape index: {}]  }
   0x1   :  { %v398_v0 = vld [vmem:[%s524_s1 + $0x78] sm:$0xff]   ;;  %v400_v2 = vld [vmem:[%s524_s1 + $0x70] sm:$0xff]   ;;  %v402_v4 = vld [vmem:[%s524_s1 + $0x68] sm:$0xff]  }
   0x2   :  { %v399_v1 = vld [vmem:[%s524_s1 + $0x38] sm:$0xff]   ;;  %358 = vmatprep.subr.bf16.mxu0 %v398_v0  ;;  %v401_v3 = vld [vmem:[%s524_s1 + $0x30] sm:$0xff]   ;;  %v403_v5 = vld [vmem:[%s524_s1 + $0x28] sm:$0xff]  }
   0x3   :  { %359 = vmatpush3.bf16.msra.mxu0 %v399_v1  ;;  %v404_v6 = vld [vmem:[%s524_s1 + $0x60] sm:$0xff]   ;;  %v406_v8 = vld [vmem:[%s524_s1 + $0x58] sm:$0xff]   ;;  %v412_v9 = vld [vmem:[%s524_s1 + $0x88] sm:$0xff]  }
   0x4   :  { %360 = vmatprep.subr.bf16.mxu0 %v400_v2  ;;  %v405_v7 = vld [vmem:[%s524_s1 + $0x20] sm:$0xff]   ;;  %v407_v10 = vld [vmem:[%s524_s1 + $0x18] sm:$0xff]   ;;  %v408_v11 = vld [vmem:[%s524_s1 + $0x50] sm:$0xff]   ;;  %390 = vmatprep.subr.bf16.mxu1 %v412_v9 }
   0x5   :  { %391 = vmatpush3.bf16.msra.mxu1 %v412_v9  ;;  %v415_v12 = vld [vmem:[%s524_s1 + $0x80] sm:$0xff]   ;;  %v409_v13 = vld [vmem:[%s524_s1 + $0x10] sm:$0xff]   ;;  %v410_v15 = vld [vmem:[%s524_s1 + $0x48] sm:$0xff]  }
   0x6   :  { %392 = vmatprep.subr.bf16.mxu1 %v415_v12  ;;  %v418_v14 = vld [vmem:[%s525_s0 + $0x4] ss:$12 sps:$4 sm:$0xff]   ;;  %v419_v16 = vld [vmem:[%s525_s0 + $0x8] ss:$12 sps:$4 sm:$0xff]   ;;  %v19_v21 = vld [vmem:[%s525_s0 + $0x18] sm:$0x11] }
   0x7   :  { %361 = vmatpush3.bf16.msra.mxu0 %v401_v3  ;;  %236 = vmatprep.mubr.bf16.mxu0 %v418_v14  ;;  %v420_v17 = vld [vmem:[%s525_s0 + $0x20] ss:$0 sps:$4 sm:$0x11]   ;;  %v411_v18 = vld [vmem:[%s524_s1 + $0x8] sm:$0xff]   ;;  %v330_v23 = vcombine.high %v19_v21, %v19_v21  ;;  %v329_v24 = vcombine.low %v19_v21, %v19_v21 }
   0x8   :  { %362 = vmatprep.subr.bf16.mxu0 %v402_v4  ;;  %394 = vmatprep.mubr.msk.bf16.mxu1 %vm197_vm0, %v419_v16  ;;  %v413_v19 = vld [vmem:[%s524_s1 + $0x40] sm:$0xff]  }
   0x9   :  { %393 = vmatpush3.bf16.msra.mxu1 %v415_v12  ;;  %v414_v20 = vld [vmem:[%s524_s1] sm:$0xff]  }
   0xa   :  { %v416_v22 = vld [vmem:[%s525_s0] ss:$12 sps:$4 sm:$0xff]  }
   0xb   :  { %363 = vmatpush3.bf16.msra.mxu0 %v403_v5  ;;  %v325_v30 = vld [vmem:[%s526_s2] ss:$0 sm:$0xff] }
   0xc   :  { %364 = vmatprep.subr.bf16.mxu0 %v404_v6  ;;  %395 = vmatmul.mubr.msk.bf16.vlgmr.msra.gmra.mxu1 %vm197_vm0, %v420_v17 }
   0xf   :  { %365 = vmatpush3.bf16.msra.mxu0 %v405_v7 }
  0x10   :  { %366 = vmatprep.subr.bf16.mxu0 %v406_v8 }
  0x13   :  { %367 = vmatpush3.bf16.msra.mxu0 %v407_v10 }
  0x14   :  { %368 = vmatprep.subr.bf16.mxu0 %v408_v11 }
  0x17   :  { %369 = vmatpush3.bf16.msra.mxu0 %v409_v13 }
  0x18   :  { %370 = vmatprep.subr.bf16.mxu0 %v410_v15 }
  0x1b   :  { %371 = vmatpush3.bf16.msra.mxu0 %v411_v18 }
  0x1c   :  { %372 = vmatprep.subr.bf16.mxu0 %v413_v19 }
  0x1f   :  { %373 = vmatpush3.bf16.msra.mxu0 %v414_v20 }
  0x22   :  { %237 = vmatmul.mubr.bf16.vlgmr.msra.gmra.mxu0 %v416_v22 }
  0x23   :  { %244 = vmatprep.mubr.bf16.mxu0 %v330_v23 }
  0x2a   :  { %245 = vmatmul.mubr.bf16.gmra.mxu0 %v329_v24 }
  0xcc   :  { %v396_v25 = vpop.f32.mrf.mxu1 }
  0xce   :  { %v286_v26 = vpop.f32.mrf.mxu1 }
  0xd0   :  { %v397_v27 = vpop.f32.mrf.mxu1 }
  0xd2   :  { %v289_v40 = vpop.f32.mrf.mxu1 }
  0xe2   :  { %v374_v28 = vpop.f32.mrf.mxu0 }
  0xe4   :  { %v375_v29 = vpop.f32.mrf.mxu0 }
  0xe5   :  { %v376_v31 = vadd.f32 %v375_v29, %v374_v28 }
  0xe6   :  { %v377_v32 = vpop.f32.mrf.mxu0 }
  0xe7   :  { %v239_v33 = vadd.f32 %v376_v31, %v325_v30 }
  0xe8   :  { %v378_v34 = vpop.f32.mrf.mxu0 }
  0xe9   :  { %v287_v35 = vadd.f32 %v286_v26, %v239_v33  ;;  %v379_v36 = vadd.f32 %v378_v34, %v377_v32 }
  0xea   :  { %v380_v37 = vpop.f32.mrf.mxu0 }
  0xeb   :  { %v300_v38 = vmax.f32 %v287_v35, 0.0  ;;  %v242_v39 = vadd.f32 %v379_v36, %v325_v30 }
  0xec   :  { %v381_v41 = vpop.f32.mrf.mxu0 }
  0xed   :  { %v355_v42 = vpack.c.bf16 %v300_v38, %v300_v38  ;;  %v290_v43 = vadd.f32 %v289_v40, %v242_v39  ;;  %v382_v44 = vadd.f32 %v381_v41, %v380_v37 }
  0xee   :  { %v383_v45 = vpop.f32.mrf.mxu0 }
  0xef   :  { %317 = vst.msk [vmem:[%s527_s3] sm:$0xf] %vm316_vm1, %v355_v42  ;;  %v301_v46 = vmax.f32 %v290_v43, 0.0  ;;  %v247_v47 = vadd.f32 %v382_v44, %v325_v30 }
  0xf0   :  { %v384_v48 = vpop.f32.mrf.mxu0 }
  0xf1   :  { %v356_v49 = vpack.c.bf16 %v301_v46, %v301_v46  ;;  %v295_v50 = vadd.f32 %v396_v25, %v247_v47 }
  0xf3   :  { %318 = vst.msk [vmem:[%s527_s3 + $0x4] sm:$0xf] %vm316_vm1, %v356_v49  ;;  %v302_v51 = vmax.f32 %v295_v50, 0.0 }
  0xf5   :  { %v357_v52 = vpack.c.bf16 %v302_v51, %v302_v51 }
  0xf7   :  { %320 = vst.msk [vmem:[%s527_s3 + $0x8] sm:$0x1] %vm319_vm2, %v357_v52 }

// kernel: conformer_forward.16
= control target key start
LH: loop header
LB: loop body
LE: loop exit
PB: predicated region body
PF: predicated region fallthrough
CT: control target
= control target key end

     0   :  { %v160_v0 = vmov 0.0   ;;  %vm161_vm0 = vmmov 0   ;;  %vm71_vm1 = vcmask 785408   ;;  %vm115_vm2 = vcmask 259072   ;;  %s209_s1 = inlined_call_operand.vmem [shape: bf16[96,32], index: 1, kind: input, shape index: {}]   ;;  %s210_s0 = inlined_call_operand.vmem [shape: bf16[6,96], index: 0, kind: input, shape index: {}]   ;;  %s211_s2 = inlined_call_operand.vmem [shape: f32[1,32], index: 2, kind: input, shape index: {}]   ;;  %s212_s3 = inlined_call_operand.vmem [shape: f32[6,32], index: 3, kind: output, shape index: {}]  }
   0x1   :  { %136 = vmatprep.subr.bf16.mxu0 %v160_v0  ;;  %v154_v1 = vld [vmem:[%s209_s1 + $0x28] sm:$0xff]   ;;  %148 = vmatprep.mubr.msk.bf16.mxu0 %vm161_vm0, %v160_v0  ;;  %v155_v2 = vld [vmem:[%s209_s1 + $0x20] sm:$0xff]   ;;  %v156_v3 = vld [vmem:[%s209_s1 + $0x18] sm:$0xff]  }
   0x2   :  { %137 = vmatpush3.bf16.msra.mxu0 %v154_v1  ;;  %v157_v4 = vld [vmem:[%s209_s1 + $0x10] sm:$0xff]   ;;  %v158_v5 = vld [vmem:[%s209_s1 + $0x8] sm:$0xff]   ;;  %v159_v6 = vld [vmem:[%s209_s1] sm:$0xff]  }
   0x3   :  { %138 = vmatprep.subr.bf16.mxu0 %v160_v0  ;;  %v15_v7 = vld [vmem:[%s210_s0] sm:$0x7] }
   0x4   :  { %v121_v8 = vld [vmem:[%s211_s2] ss:$0 sm:$0xff] }
   0x6   :  { %139 = vmatpush3.bf16.msra.mxu0 %v155_v2 }
   0x7   :  { %140 = vmatprep.subr.bf16.mxu0 %v160_v0 }
   0xa   :  { %141 = vmatpush3.bf16.msra.mxu0 %v156_v3 }
   0xb   :  { %142 = vmatprep.subr.bf16.mxu0 %v160_v0 }
   0xe   :  { %143 = vmatpush3.bf16.msra.mxu0 %v157_v4 }
   0xf   :  { %144 = vmatprep.subr.bf16.mxu0 %v160_v0 }
  0x12   :  { %145 = vmatpush3.bf16.msra.mxu0 %v158_v5 }
  0x13   :  { %146 = vmatprep.subr.bf16.mxu0 %v160_v0 }
  0x16   :  { %147 = vmatpush3.bf16.msra.mxu0 %v159_v6 }
  0x19   :  { %149 = vmatmul.mubr.msk.bf16.vlgmr.msra.gmra.mxu0 %vm71_vm1, %v15_v7 }
  0xd9   :  { %v109_v9 = vpop.f32.mrf.mxu0 }
  0xda   :  { %v110_v10 = vadd.f32 %v121_v8, %v109_v9 }
  0xdb   :  { %v150_v11 = vpop.f32.mrf.mxu0 }
  0xdc   :  { %116 = vst.msk [vmem:[%s212_s3] sm:$0x3f] %vm115_vm2, %v110_v10 }
  0xdd   :  { %v112_v12 = vpop.f32.mrf.mxu0 }
  0xdf   :  { %v151_v13 = vpop.f32.mrf.mxu0 }

// kernel: conformer_forward.17
= control target key start
LH: loop header
LB: loop body
LE: loop exit
PB: predicated region body
PF: predicated region fallthrough
CT: control target
= control target key end

     0   :  { %vm36_vm0 = vcmask 259072   ;;  %v332_v7 = vmov 0.0   ;;  %vm333_vm1 = vmmov 0   ;;  %vm89_vm2 = vcmask 261120   ;;  %s440_s0 = inlined_call_operand.vmem [shape: f32[6,32], index: 0, kind: input, shape index: {}]   ;;  %s441_s7 = inlined_call_operand.vmem [shape: f32[1,32], index: 7, kind: input, shape index: {}, may-alias: {1,7}]   ;;  %s442_s8 = inlined_call_operand.vmem [shape: f32[1,32], index: 8, kind: input, shape index: {}, may-alias: {2,8}]   ;;  %s443_s3 = inlined_call_operand.vmem [shape: bf16[32,128], index: 3, kind: input, shape index: {}]   ;;  %s444_s1 = inlined_call_operand.vmem [shape: f32[1,32], index: 1, kind: input, shape index: {}, may-alias: {1,7}]   ;;  %s445_s2 = inlined_call_operand.vmem [shape: f32[1,32], index: 2, kind: input, shape index: {}, may-alias: {2,8}]   ;;  %s446_s5 = inlined_call_operand.vmem [shape: bf16[128,32], index: 5, kind: input, shape index: {}]   ;;  %s447_s4 = inlined_call_operand.vmem [shape: f32[1,128], index: 4, kind: input, shape index: {}]   ;;  %s448_s6 = inlined_call_operand.vmem [shape: f32[1,32], index: 6, kind: input, shape index: {}]   ;;  %s449_s9 = inlined_call_operand.vmem [shape: f32[6,32], index: 9, kind: output, shape index: {}]  }
   0x1   :  { %v387_v0 = vld [vmem:[%s440_s0] sm:$0x3f]  ;;  %286 = vmatprep.subr.bf16.mxu0 %v332_v7  ;;  %v316_v8 = vld [vmem:[%s443_s3 + $0x8] sm:$0xff]   ;;  %290 = vmatprep.mubr.msk.bf16.mxu0 %vm333_vm1, %v332_v7  ;;  %v318_v20 = vld [vmem:[%s446_s5 + $0x38] sm:$0xff]  }
   0x2   :  { %v37_v1 = vsel %vm36_vm0, %v387_v0, 0.0  ;;  %294 = vmatprep.subr.bf16.mxu1 %v332_v7  ;;  %310 = vmatprep.mubr.msk.bf16.mxu1 %vm333_vm1, %v332_v7  ;;  %v317_v9 = vld [vmem:[%s443_s3] sm:$0xff]   ;;  %v319_v21 = vld [vmem:[%s446_s5 + $0x30] sm:$0xff]   ;;  %v320_v22 = vld [vmem:[%s446_s5 + $0x28] sm:$0xff]  }
   0x3   :  { %38 = vadd.xlane.f32.xlu0 %v37_v1  ;;  %287 = vmatpush3.bf16.msra.mxu0 %v316_v8  ;;  %v259_v14 = vld [vmem:[%s444_s1] ss:$0 sm:$0xff]  ;;  %v322_v24 = vld [vmem:[%s446_s5 + $0x18] sm:$0xff]   ;;  %v323_v25 = vld [vmem:[%s446_s5 + $0x10] sm:$0xff]  }
   0x4   :  { %288 = vmatprep.subr.bf16.mxu0 %v332_v7  ;;  %v260_v16 = vld [vmem:[%s445_s2] ss:$0 sm:$0xff]  ;;  %295 = vmatpush3.bf16.msra.mxu1 %v318_v20  ;;  %v324_v26 = vld [vmem:[%s446_s5 + $0x8] sm:$0xff]  }
   0x5   :  { %296 = vmatprep.subr.bf16.mxu1 %v332_v7  ;;  %v321_v23 = vld [vmem:[%s446_s5 + $0x20] sm:$0xff]  }
   0x6   :  { %v325_v27 = vld [vmem:[%s446_s5] sm:$0xff]  }
   0x7   :  { %289 = vmatpush3.bf16.msra.mxu0 %v317_v9  ;;  %v261_v28 = vld [vmem:[%s447_s4] ss:$0 sm:$0xff] }
   0x8   :  { %297 = vmatpush3.bf16.msra.mxu1 %v319_v21  ;;  %v265_v41 = vld [vmem:[%s448_s6] ss:$0 sm:$0xff] }
   0x9   :  { %298 = vmatprep.subr.bf16.mxu1 %v332_v7 }
   0xc   :  { %299 = vmatpush3.bf16.msra.mxu1 %v320_v22 }
   0xd   :  { %300 = vmatprep.subr.bf16.mxu1 %v332_v7 }
  0x10   :  { %301 = vmatpush3.bf16.msra.mxu1 %v321_v23 }
  0x11   :  { %302 = vmatprep.subr.bf16.mxu1 %v332_v7 }
  0x14   :  { %303 = vmatpush3.bf16.msra.mxu1 %v322_v24 }
  0x15   :  { %304 = vmatprep.subr.bf16.mxu1 %v332_v7 }
  0x18   :  { %305 = vmatpush3.bf16.msra.mxu1 %v323_v25 }
  0x19   :  { %306 = vmatprep.subr.bf16.mxu1 %v332_v7 }
  0x1c   :  { %307 = vmatpush3.bf16.msra.mxu1 %v324_v26 }
  0x1d   :  { %308 = vmatprep.subr.bf16.mxu1 %v332_v7 }
  0x20   :  { %309 = vmatpush3.bf16.msra.mxu1 %v325_v27 }
  0x8c   :  { %v39_v2 = vpop.xlane.xlu0 %38 }
  0x8d   :  { %v41_v3 = vmul.f32 0.03125, %v39_v2 }
  0x8f   :  { %v42_v4 = vsub.f32 %v387_v0, %v41_v3 }
  0x91   :  { %v43_v5 = vmul.f32 %v42_v4, %v42_v4 }
  0x93   :  { %v44_v6 = vsel %vm36_vm0, %v43_v5, 0.0 }
  0x94   :  { %45 = vadd.xlane.f32.xlu0 %v44_v6 }
 0x11d   :  { %v46_v10 = vpop.xlane.xlu0 %45 }
 0x11e   :  { %v47_v11 = vmul.f32 0.03125, %v46_v10 }
 0x120   :  { %v48_v12 = vadd.f32 1e-05, %v47_v11 }
 0x122   :  { %326 = vrsqrt.f32 %v48_v12 }
 0x12f   :  { %v327_v13 = vpop.eup %326 }
 0x130   :  { %v50_v15 = vmul.f32 %v327_v13, %v42_v4 }
 0x132   :  { %v57_v17 = vmul.f32 %v259_v14, %v50_v15 }
 0x134   :  { %v64_v18 = vadd.f32 %v260_v16, %v57_v17 }
 0x136   :  { %v65_v19 = vpack.c.bf16 %v64_v18, %v64_v18 }
 0x138   :  { %291 = vmatmul.mubr.msk.bf16.vlgmr.msra.gmra.mxu0 %vm89_vm2, %v65_v19 }
 0x1f8   :  { %v127_v29 = vpop.f32.mrf.mxu0 }
 0x1f9   :  { %v128_v30 = vadd.f32 %v261_v28, %v127_v29 }
 0x1fa   :  { %v292_v31 = vpop.f32.mrf.mxu0 }
 0x1fb   :  { %v133_v32 = vsub.f32 0.0, %v128_v30 }
 0x1fc   :  { %v130_v33 = vpop.f32.mrf.mxu0 }
 0x1fd   :  { %v134_v34 = vmul.f32 1.442695, %v133_v32 }
 0x1fe   :  { %v293_v35 = vpop.f32.mrf.mxu0 }
 0x1ff   :  { %328 = vpow2.f32 %v134_v34 }
 0x20c   :  { %v329_v36 = vpop.eup %328 }
 0x20d   :  { %v136_v37 = vadd.f32 1.0, %v329_v36 }
 0x20f   :  { %330 = vrcp.f32 %v136_v37 }
 0x21c   :  { %v331_v38 = vpop.eup %330 }
 0x21d   :  { %v139_v39 = vmul.f32 %v331_v38, %v128_v30 }
 0x21f   :  { %v140_v40 = vpack.c.bf16 %v139_v39, %v139_v39 }
 0x221   :  { %311 = vmatmul.mubr.bf16.vlgmr.msra.gmra.mxu1 %v140_v40 }
 0x2e1   :  { %v246_v42 = vpop.f32.mrf.mxu1 }
 0x2e2   :  { %v247_v43 = vadd.f32 %v265_v41, %v246_v42 }
 0x2e3   :  { %v312_v44 = vpop.f32.mrf.mxu1 }
 0x2e4   :  { %v252_v45 = vmul.f32 0.5, %v247_v43 }
 0x2e5   :  { %v249_v46 = vpop.f32.mrf.mxu1 }
 0x2e6   :  { %v253_v47 = vadd.f32 %v252_v45, %v387_v0 }
 0x2e7   :  { %v313_v48 = vpop.f32.mrf.mxu1 }
 0x2e8   :  { %254 = vst.msk [vmem:[%s449_s9] sm:$0x3f] %vm36_vm0, %v253_v47 }

// kernel: conformer_forward.18
= control target key start
LH: loop header
LB: loop body
LE: loop exit
PB: predicated region body
PF: predicated region fallthrough
CT: control target
= control target key end

     0   :  { %v113_v0 = vmov 0.0   ;;  %vm114_vm0 = vmmov 0   ;;  %vm39_vm1 = vcmask 261120   ;;  %vm84_vm2 = vcmask 254976   ;;  %s153_s1 = inlined_call_operand.vmem [shape: bf16[32,32], index: 1, kind: input, shape index: {}]   ;;  %s154_s0 = inlined_call_operand.vmem [shape: bf16[3,32], index: 0, kind: input, shape index: {}]   ;;  %s155_s2 = inlined_call_operand.vmem [shape: f32[1,32], index: 2, kind: input, shape index: {}]   ;;  %s156_s3 = inlined_call_operand.vmem [shape: bf16[3,32], index: 3, kind: output, shape index: {}]  }
   0x1   :  { %101 = vmatprep.subr.bf16.mxu0 %v113_v0  ;;  %v111_v1 = vld [vmem:[%s153_s1 + $0x8] sm:$0xff]   ;;  %105 = vmatprep.mubr.msk.bf16.mxu0 %vm114_vm0, %v113_v0  ;;  %v112_v2 = vld [vmem:[%s153_s1] sm:$0xff]   ;;  %vm85_vm3 = vsmask.f32 1280 }
   0x2   :  { %102 = vmatpush3.bf16.msra.mxu0 %v111_v1  ;;  %v15_v3 = vld [vmem:[%s154_s0] sm:$0x3]  ;;  %vm86_vm4 = vmand %vm84_vm2, %vm85_vm3 }
   0x3   :  { %103 = vmatprep.subr.bf16.mxu0 %v113_v0  ;;  %v94_v4 = vld [vmem:[%s155_s2] ss:$0 sm:$0xff] }
   0x4   :  { %v87_v7 = vld [vmem:[%s156_s3] sm:$0x3] }
   0x6   :  { %104 = vmatpush3.bf16.msra.mxu0 %v112_v2 }
   0x9   :  { %106 = vmatmul.mubr.msk.bf16.vlgmr.msra.gmra.mxu0 %vm39_vm1, %v15_v3 }
  0xc9   :  { %v77_v5 = vpop.f32.mrf.mxu0 }
  0xca   :  { %v78_v6 = vadd.f32 %v94_v4, %v77_v5 }
  0xcb   :  { %v107_v8 = vpop.f32.mrf.mxu0 }
  0xcc   :  { %v83_v9 = vpack.c.bf16 %v78_v6, %v78_v6 }
  0xcd   :  { %v80_v10 = vpop.f32.mrf.mxu0 }
  0xce   :  { %v88_v11 = vsel %vm86_vm4, %v83_v9, %v87_v7 }
  0xcf   :  { %89 = vst [vmem:[%s156_s3] sm:$0x3] %v88_v11  ;;  %v108_v12 = vpop.f32.mrf.mxu0 }

// kernel: conformer_forward.21
= control target key start
LH: loop header
LB: loop body
LE: loop exit
PB: predicated region body
PF: predicated region fallthrough
CT: control target
= control target key end

     0   :  { %vm36_vm0 = vcmask 259072   ;;  %v365_v7 = vmov 0.0   ;;  %vm366_vm1 = vmmov 0   ;;  %vm89_vm2 = vcmask 261120   ;;  %s481_s0 = inlined_call_operand.vmem [shape: f32[6,32], index: 0, kind: input, shape index: {}]   ;;  %s482_s3 = inlined_call_operand.vmem [shape: bf16[32,128], index: 3, kind: input, shape index: {}]   ;;  %s483_s1 = inlined_call_operand.vmem [shape: f32[1,32], index: 1, kind: input, shape index: {}]   ;;  %s484_s2 = inlined_call_operand.vmem [shape: f32[1,32], index: 2, kind: input, shape index: {}]   ;;  %s485_s5 = inlined_call_operand.vmem [shape: bf16[128,32], index: 5, kind: input, shape index: {}]   ;;  %s486_s4 = inlined_call_operand.vmem [shape: f32[1,128], index: 4, kind: input, shape index: {}]   ;;  %s487_s6 = inlined_call_operand.vmem [shape: f32[1,32], index: 6, kind: input, shape index: {}]   ;;  %s488_s7 = inlined_call_operand.vmem [shape: f32[1,32], index: 7, kind: input, shape index: {}]   ;;  %s489_s8 = inlined_call_operand.vmem [shape: f32[1,32], index: 8, kind: input, shape index: {}]   ;;  %s490_s9 = inlined_call_operand.vmem [shape: f32[6,32], index: 9, kind: output, shape index: {}]  }
   0x1   :  { %v420_v0 = vld [vmem:[%s481_s0] sm:$0x3f]  ;;  %317 = vmatprep.subr.bf16.mxu0 %v365_v7  ;;  %v347_v8 = vld [vmem:[%s482_s3 + $0x8] sm:$0xff]   ;;  %321 = vmatprep.mubr.msk.bf16.mxu0 %vm366_vm1, %v365_v7  ;;  %v349_v20 = vld [vmem:[%s485_s5 + $0x38] sm:$0xff]  }
   0x2   :  { %v37_v1 = vsel %vm36_vm0, %v420_v0, 0.0  ;;  %325 = vmatprep.subr.bf16.mxu1 %v365_v7  ;;  %341 = vmatprep.mubr.msk.bf16.mxu1 %vm366_vm1, %v365_v7  ;;  %v348_v9 = vld [vmem:[%s482_s3] sm:$0xff]   ;;  %v350_v21 = vld [vmem:[%s485_s5 + $0x30] sm:$0xff]   ;;  %v351_v22 = vld [vmem:[%s485_s5 + $0x28] sm:$0xff]  }
   0x3   :  { %38 = vadd.xlane.f32.xlu0 %v37_v1  ;;  %318 = vmatpush3.bf16.msra.mxu0 %v347_v8  ;;  %v288_v14 = vld [vmem:[%s483_s1] ss:$0 sm:$0xff]  ;;  %v353_v24 = vld [vmem:[%s485_s5 + $0x18] sm:$0xff]   ;;  %v354_v25 = vld [vmem:[%s485_s5 + $0x10] sm:$0xff]  }
   0x4   :  { %319 = vmatprep.subr.bf16.mxu0 %v365_v7  ;;  %v289_v16 = vld [vmem:[%s484_s2] ss:$0 sm:$0xff]  ;;  %326 = vmatpush3.bf16.msra.mxu1 %v349_v20  ;;  %v355_v26 = vld [vmem:[%s485_s5 + $0x8] sm:$0xff]  }
   0x5   :  { %327 = vmatprep.subr.bf16.mxu1 %v365_v7  ;;  %v352_v23 = vld [vmem:[%s485_s5 + $0x20] sm:$0xff]  }
   0x6   :  { %v356_v27 = vld [vmem:[%s485_s5] sm:$0xff]  }
   0x7   :  { %320 = vmatpush3.bf16.msra.mxu0 %v348_v9  ;;  %v290_v28 = vld [vmem:[%s486_s4] ss:$0 sm:$0xff] }
   0x8   :  { %328 = vmatpush3.bf16.msra.mxu1 %v350_v21  ;;  %v294_v41 = vld [vmem:[%s487_s6] ss:$0 sm:$0xff] }
   0x9   :  { %329 = vmatprep.subr.bf16.mxu1 %v365_v7  ;;  %v303_v59 = vld [vmem:[%s488_s7] ss:$0 sm:$0xff] }
   0xa   :  { %v304_v61 = vld [vmem:[%s489_s8] ss:$0 sm:$0xff] }
   0xc   :  { %330 = vmatpush3.bf16.msra.mxu1 %v351_v22 }
   0xd   :  { %331 = vmatprep.subr.bf16.mxu1 %v365_v7 }
  0x10   :  { %332 = vmatpush3.bf16.msra.mxu1 %v352_v23 }
  0x11   :  { %333 = vmatprep.subr.bf16.mxu1 %v365_v7 }
  0x14   :  { %334 = vmatpush3.bf16.msra.mxu1 %v353_v24 }
  0x15   :  { %335 = vmatprep.subr.bf16.mxu1 %v365_v7 }
  0x18   :  { %336 = vmatpush3.bf16.msra.mxu1 %v354_v25 }
  0x19   :  { %337 = vmatprep.subr.bf16.mxu1 %v365_v7 }
  0x1c   :  { %338 = vmatpush3.bf16.msra.mxu1 %v355_v26 }
  0x1d   :  { %339 = vmatprep.subr.bf16.mxu1 %v365_v7 }
  0x20   :  { %340 = vmatpush3.bf16.msra.mxu1 %v356_v27 }
  0x8c   :  { %v39_v2 = vpop.xlane.xlu0 %38 }
  0x8d   :  { %v41_v3 = vmul.f32 0.03125, %v39_v2 }
  0x8f   :  { %v42_v4 = vsub.f32 %v420_v0, %v41_v3 }
  0x91   :  { %v43_v5 = vmul.f32 %v42_v4, %v42_v4 }
  0x93   :  { %v44_v6 = vsel %vm36_vm0, %v43_v5, 0.0 }
  0x94   :  { %45 = vadd.xlane.f32.xlu0 %v44_v6 }
 0x11d   :  { %v46_v10 = vpop.xlane.xlu0 %45 }
 0x11e   :  { %v47_v11 = vmul.f32 0.03125, %v46_v10 }
 0x120   :  { %v48_v12 = vadd.f32 1e-05, %v47_v11 }
 0x122   :  { %357 = vrsqrt.f32 %v48_v12 }
 0x12f   :  { %v358_v13 = vpop.eup %357 }
 0x130   :  { %v50_v15 = vmul.f32 %v358_v13, %v42_v4 }
 0x132   :  { %v57_v17 = vmul.f32 %v288_v14, %v50_v15 }
 0x134   :  { %v64_v18 = vadd.f32 %v289_v16, %v57_v17 }
 0x136   :  { %v65_v19 = vpack.c.bf16 %v64_v18, %v64_v18 }
 0x138   :  { %322 = vmatmul.mubr.msk.bf16.vlgmr.msra.gmra.mxu0 %vm89_vm2, %v65_v19 }
 0x1f8   :  { %v127_v29 = vpop.f32.mrf.mxu0 }
 0x1f9   :  { %v128_v30 = vadd.f32 %v290_v28, %v127_v29 }
 0x1fa   :  { %v323_v31 = vpop.f32.mrf.mxu0 }
 0x1fb   :  { %v133_v32 = vsub.f32 0.0, %v128_v30 }
 0x1fc   :  { %v130_v33 = vpop.f32.mrf.mxu0 }
 0x1fd   :  { %v134_v34 = vmul.f32 1.442695, %v133_v32 }
 0x1fe   :  { %v324_v35 = vpop.f32.mrf.mxu0 }
 0x1ff   :  { %359 = vpow2.f32 %v134_v34 }
 0x20c   :  { %v360_v36 = vpop.eup %359 }
 0x20d   :  { %v136_v37 = vadd.f32 1.0, %v360_v36 }
 0x20f   :  { %361 = vrcp.f32 %v136_v37 }
 0x21c   :  { %v362_v38 = vpop.eup %361 }
 0x21d   :  { %v139_v39 = vmul.f32 %v362_v38, %v128_v30 }
 0x21f   :  { %v140_v40 = vpack.c.bf16 %v139_v39, %v139_v39 }
 0x221   :  { %342 = vmatmul.mubr.bf16.vlgmr.msra.gmra.mxu1 %v140_v40 }
 0x2e1   :  { %v246_v42 = vpop.f32.mrf.mxu1 }
 0x2e2   :  { %v247_v43 = vadd.f32 %v294_v41, %v246_v42 }
 0x2e3   :  { %v343_v44 = vpop.f32.mrf.mxu1 }
 0x2e4   :  { %v252_v45 = vmul.f32 0.5, %v247_v43 }
 0x2e5   :  { %v249_v46 = vpop.f32.mrf.mxu1 }
 0x2e6   :  { %v253_v47 = vadd.f32 %v252_v45, %v420_v0 }
 0x2e7   :  { %v344_v48 = vpop.f32.mrf.mxu1 }
 0x2e8   :  { %v256_v49 = vsel %vm36_vm0, %v253_v47, 0.0 }
 0x2e9   :  { %257 = vadd.xlane.f32.xlu1 %v256_v49 }
 0x372   :  { %v258_v50 = vpop.xlane.xlu1 %257 }
 0x373   :  { %v259_v51 = vmul.f32 0.03125, %v258_v50 }
 0x375   :  { %v260_v52 = vsub.f32 %v253_v47, %v259_v51 }
 0x377   :  { %v261_v53 = vmul.f32 %v260_v52, %v260_v52 }
 0x379   :  { %v262_v54 = vsel %vm36_vm0, %v261_v53, 0.0 }
 0x37a   :  { %263 = vadd.xlane.f32.xlu1 %v262_v54 }
 0x403   :  { %v264_v55 = vpop.xlane.xlu1 %263 }
 0x404   :  { %v265_v56 = vmul.f32 0.03125, %v264_v55 }
 0x406   :  { %v266_v57 = vadd.f32 1e-05, %v265_v56 }
 0x408   :  { %363 = vrsqrt.f32 %v266_v57 }
 0x415   :  { %v364_v58 = vpop.eup %363 }
 0x416   :  { %v268_v60 = vmul.f32 %v364_v58, %v260_v52 }
 0x418   :  { %v275_v62 = vmul.f32 %v303_v59, %v268_v60 }
 0x41a   :  { %v282_v63 = vadd.f32 %v304_v61, %v275_v62 }
 0x41c   :  { %283 = vst.msk [vmem:[%s490_s9] sm:$0x3f] %vm36_vm0, %v282_v63 }

// kernel: conformer_forward.27
= control target key start
LH: loop header
LB: loop body
LE: loop exit
PB: predicated region body
PF: predicated region fallthrough
CT: control target
= control target key end

     0   :  { %v117_v0 = vmov 0.0   ;;  %vm118_vm0 = vmmov 0   ;;  %vm29_vm1 = vcmask 261120   ;;  %v73_v4 = vlaneseq  ;;  %s146_s1 = inlined_call_operand.vmem [shape: bf16[32,128], index: 1, kind: input, shape index: {}]   ;;  %s147_s0 = inlined_call_operand.vmem [shape: bf16[6,32], index: 0, kind: input, shape index: {}]   ;;  %s148_s2 = inlined_call_operand.vmem [shape: f32[6,128], index: 2, kind: output, shape index: {}]  }
   0x1   :  { %101 = vmatprep.subr.bf16.mxu0 %v117_v0  ;;  %v111_v1 = vld [vmem:[%s146_s1 + $0x8] sm:$0xff]   ;;  %105 = vmatprep.mubr.msk.bf16.mxu0 %vm118_vm0, %v117_v0  ;;  %v112_v2 = vld [vmem:[%s146_s1] sm:$0xff]   ;;  %vm77_vm3 = vcmask 1045504  }
   0x2   :  { %102 = vmatpush3.bf16.msra.mxu0 %v111_v1  ;;  %v12_v3 = vld [vmem:[%s147_s0] sm:$0x7]  ;;  %v74_v5 = vand.u32 127, %v73_v4 }
   0x3   :  { %103 = vmatprep.subr.bf16.mxu0 %v117_v0 }
   0x4   :  { %vm75_vm2 = vcmp.lt.s32.totalorder %v74_v5, 10 }
   0x6   :  { %104 = vmatpush3.bf16.msra.mxu0 %v112_v2 }
   0x9   :  { %106 = vmatmul.mubr.msk.bf16.vlgmr.msra.gmra.mxu0 %vm29_vm1, %v12_v3 }
  0xc9   :  { %v67_v6 = vpop.f32.mrf.mxu0 }
  0xca   :  { %v76_v7 = vsel %vm75_vm2, %v67_v6, -1e+30 }
  0xcb   :  { %v107_v8 = vpop.f32.mrf.mxu0  ;;  %v78_v9 = vsel %vm77_vm3, %v76_v7, -inf }
  0xcc   :  { %79 = vmax.xlane.f32.xlu0 %v78_v9 }
  0xcd   :  { %v70_v10 = vpop.f32.mrf.mxu0 }
  0xcf   :  { %v108_v11 = vpop.f32.mrf.mxu0 }
 0x155   :  { %v80_v12 = vpop.xlane.xlu0 %79 }
 0x156   :  { %v81_v13 = vsub.f32 %v76_v7, %v80_v12 }
 0x158   :  { %v82_v14 = vmul.f32 1.442695, %v81_v13 }
 0x15a   :  { %113 = vpow2.f32 %v82_v14 }
 0x167   :  { %v114_v15 = vpop.eup %113 }
 0x168   :  { %v84_v16 = vsel %vm77_vm3, %v114_v15, 0.0 }
 0x169   :  { %85 = vadd.xlane.f32.xlu0 %v84_v16 }
 0x1f2   :  { %v86_v17 = vpop.xlane.xlu0 %85 }
 0x1f3   :  { %115 = vlog2.f32 %v86_v17 }
 0x200   :  { %v116_v18 = vpop.eup %115 }
 0x201   :  { %v88_v19 = vmul.f32 0.6931472, %v116_v18 }
 0x203   :  { %v89_v20 = vsub.f32 %v81_v13, %v88_v19 }
 0x205   :  { %90 = vst [vmem:[%s148_s2] sm:$0x3f] %v89_v20 }

// kernel: conformer_forward.20
= control target key start
LH: loop header
LB: loop body
LE: loop exit
PB: predicated region body
PF: predicated region fallthrough
CT: control target
= control target key end

     0   :  { %s1167_s13 = smov 0   ;;  %s1382_s0 = inlined_call_operand.vmem [shape: f32[2,3,32], index: 0, kind: input, shape index: {}]   ;;  %s1383_s1 = inlined_call_operand.vmem [shape: f32[1,32], index: 1, kind: input, shape index: {}]   ;;  %s1384_s2 = inlined_call_operand.vmem [shape: f32[1,32], index: 2, kind: input, shape index: {}]   ;;  %s1385_s3 = inlined_call_operand.vmem [shape: bf16[32,64], index: 3, kind: input, shape index: {}]   ;;  %s1386_s4 = inlined_call_operand.vmem [shape: f32[1,64], index: 4, kind: input, shape index: {}]   ;;  %s1387_s5 = inlined_call_operand.vmem [shape: f32[31,32], index: 5, kind: input, shape index: {}]   ;;  %s1388_s6 = inlined_call_operand.vmem [shape: f32[1,32], index: 6, kind: input, shape index: {}]   ;;  %s1389_s7 = inlined_call_operand.vmem [shape: f32[1,32], index: 7, kind: input, shape index: {}]   ;;  %s1390_s8 = inlined_call_operand.vmem [shape: bf16[32,32], index: 8, kind: input, shape index: {}]   ;;  %s1391_s9 = inlined_call_operand.vmem [shape: f32[1,32], index: 9, kind: input, shape index: {}]   ;;  %s1392_s10 = inlined_call_operand.vmem [shape: f32[2,3,32], index: 10, kind: output, shape index: {}]  }
   0x1 LB: > { %s1033_s14 = sadd.s32 4294967295, %s1107_s13   ;;  %p1037_p0 = scmp.ge.s32.totalorder %s1107_s13, 1  ;;  %s1107_s13 = sphi %s1167_s13, %s20_s13  }
   0x2   : > { %p311_p1 = scmp.lt.s32.totalorder %s1107_s13, 3 }
   0x4   : > { %p312_p2 = pnand %p1037_p0, %p311_p1 }
   0x5   : > { %p347_p3 = scmp.lt.s32.totalorder (!%p312_p2), %s1033_s14, 1  ;;  %s1111_s29 = smov (!%p312_p2), 96  }
   0x6   : > { %315 = sbr.rel (%p312_p2) target bundleno = 985 (0x3d9), region = 60 }
   0xb   : > { %s1394_s14 = smov (!%p347_p3, %s1033_s14), 1  ;;  %vm359_vm0 = vcmask 256000   ;;  %v1087_v7 = vld [vmem:[%s1385_s3 + $0x8] sm:$0xff]   ;;  %v1109_v8 = vmov 0.0   ;;  %vm1110_vm1 = vmmov 0   ;;  %v1088_v9 = vld [vmem:[%s1385_s3] sm:$0xff]   ;;  %v494_v36 = vlaneseq }
   0xc   : > { %s1038_s15 = sshll.u32 %s1394_s14, 2  ;;  %1060 = vmatprep.subr.bf16.mxu0 %v1109_v8  ;;  %1064 = vmatprep.mubr.msk.bf16.mxu0 %vm1110_vm1, %v1109_v8  ;;  %v1040_v14 = vld [vmem:[%s1383_s1] ss:$0 sm:$0xff]  ;;  %vm412_vm2 = vcmask 261120   ;;  %v1089_v31 = vld [vmem:[%s1390_s8 + $0x8] sm:$0xff]   ;;  %vm476_vm3 = vcmask 1047552  }
   0xd   : > { %s350_s18 = scalar_lea.vmem %s1382_s0, %s1038_s15  ;;  %1061 = vmatpush3.bf16.msra.mxu0 %v1087_v7  ;;  %1068 = vmatprep.subr.bf16.mxu1 %v1109_v8  ;;  %v1041_v16 = vld [vmem:[%s1384_s2] ss:$0 sm:$0xff]  ;;  %v486_v34 = vld [vmem:[%s1387_s5 + $0x8] sm:$0xff]  ;;  %v495_v37 = vshrl.u32 %v494_v36, 7  ;;  %vm477_vm4 = vsmask.f32 7424  ;;  %s354_s16 = scalar_lea.vmem %s1392_s10, %s1038_s15 }
   0xe   : > { %v1183_v0 = vld [vmem:[%s350_s18] sm:$0x7]  ;;  %1062 = vmatprep.subr.bf16.mxu0 %v1109_v8  ;;  %1072 = vmatprep.mubr.msk.bf16.mxu1 %vm1110_vm1, %v1109_v8  ;;  %vm478_vm5 = vmand %vm476_vm3, %vm477_vm4  ;;  %v487_v55 = vld [vmem:[%s1387_s5 + $0x10] sm:$0xff]  ;;  %vm480_vm6 = vcmask 1040384   ;;  %vm563_vm7 = vcmask 1041408   ;;  %vm666_vm8 = vcmask 1043456  }
   0xf   : > { %v360_v1 = vsel %vm359_vm0, %v1183_v0, 0.0  ;;  %v1042_v20 = vld [vmem:[%s1386_s4] ss:$0 sm:$0xff]  ;;  %1069 = vmatpush3.bf16.msra.mxu1 %v1089_v31  ;;  %v1219_v42 = vsub.s32 0, %v495_v37  ;;  %v1223_v44 = vsub.s32 1, %v495_v37  ;;  %v1225_v46 = vsub.s32 2, %v495_v37 }
  0x10   : > { %361 = vadd.xlane.f32.xlu0 %v360_v1  ;;  %v1090_v32 = vld [vmem:[%s1390_s8] sm:$0xff]   ;;  %1070 = vmatprep.subr.bf16.mxu1 %v1109_v8  ;;  %v1227_v47 = vsub.s32 3, %v495_v37  ;;  %v488_v56 = vld [vmem:[%s1387_s5 + $0x18] sm:$0x7f]  ;;  %v1249_v59 = vsub.s32 4, %v495_v37 }
  0x11   : > { %1063 = vmatpush3.bf16.msra.mxu0 %v1088_v9  ;;  %v485_v33 = vld [vmem:[%s1387_s5] sm:$0xff] }
  0x12   : > { %v489_v35 = vpack.c.bf16 %v486_v34, %v485_v33 }
  0x13   : > { %1071 = vmatpush3.bf16.msra.mxu1 %v1090_v32 }
  0x14   : > { %v501_v38 = vshrl.u32 %v489_v35, 16  ;;  %v1217_v41 = vpack.i.b16 %v489_v35, %v489_v35 }
  0x16   : > { %v1221_v43 = vpack.i.b16 %v501_v38, %v501_v38  ;;  %v497_v49 = vrot.slane %v1217_v41, %v1219_v42  ;;  %v517_v51 = vrot.slane %v1217_v41, %v1223_v44  ;;  %v537_v54 = vrot.slane %v1217_v41, %v1225_v46 }
  0x17   : > { %v557_v58 = vrot.slane %v1217_v41, %v1227_v47 }
  0x18   : > { %v507_v50 = vrot.slane %v1221_v43, %v1219_v42  ;;  %v527_v52 = vrot.slane %v1221_v43, %v1223_v44  ;;  %v547_v57 = vrot.slane %v1221_v43, %v1225_v46  ;;  %v596_v9 = vrot.slane %v1221_v43, %v1249_v59 }
  0x99   : > { %v362_v2 = vpop.xlane.xlu0 %361 }
  0x9a   : > { %v364_v3 = vmul.f32 0.03125, %v362_v2  ;;  %v572_v2 = vrot.slane %v1221_v43, %v1227_v47 }
  0x9c   : > { %v365_v4 = vsub.f32 %v1183_v0, %v364_v3  ;;  %v1259_v3 = vsub.s32 5, %v495_v37 }
  0x9e   : > { %v366_v5 = vmul.f32 %v365_v4, %v365_v4 }
  0xa0   : > { %v367_v6 = vsel %vm359_vm0, %v366_v5, 0.0  ;;  %v1261_v5 = vpack.c.bf16 %v488_v56, %v487_v55 }
  0xa1   : > { %368 = vadd.xlane.f32.xlu0 %v367_v6 }
 0x12a   : > { %v369_v10 = vpop.xlane.xlu0 %368 }
 0x12b   : > { %v370_v11 = vmul.f32 0.03125, %v369_v10  ;;  %v1266_v10 = vsub.s32 6, %v495_v37 }
 0x12d   : > { %v371_v12 = vadd.f32 1e-05, %v370_v11 }
 0x12f   : > { %1091 = vrsqrt.f32 %v371_v12 }
 0x13c   : > { %v1092_v13 = vpop.eup %1091 }
 0x13d   : > { %v373_v15 = vmul.f32 %v1092_v13, %v365_v4 }
 0x13f   : > { %v380_v17 = vmul.f32 %v1040_v14, %v373_v15 }
 0x141   : > { %v387_v18 = vadd.f32 %v1041_v16, %v380_v17  ;;  %v586_v17 = vrot.slane %v1217_v41, %v1249_v59 }
 0x143   : > { %v388_v19 = vpack.c.bf16 %v387_v18, %v387_v18  ;;  %v609_v18 = vrot.slane %v1217_v41, %v1259_v3 }
 0x145   : > { %1065 = vmatmul.mubr.msk.bf16.vlgmr.msra.gmra.mxu0 %vm412_vm2, %v388_v19  ;;  %v622_v19 = vrot.slane %v1221_v43, %v1259_v3 }
 0x205   : > { %v450_v21 = vpop.f32.mrf.mxu0 }
 0x206   : > { %v451_v22 = vadd.f32 %v1042_v20, %v450_v21  ;;  %v1277_v21 = vsub.s32 7, %v495_v37  ;;  %v648_v37 = vrot.slane %v1221_v43, %v1266_v10 }
 0x207   : > { %v1066_v23 = vpop.f32.mrf.mxu0 }
 0x208   : > { %v456_v24 = vsub.f32 0.0, %v451_v22  ;;  %v661_v38 = vrot.slane %v1217_v41, %v1277_v21 }
 0x209   : > { %v453_v25 = vpop.f32.mrf.mxu0 }
 0x20a   : > { %v457_v26 = vmul.f32 1.442695, %v456_v24  ;;  %v635_v25 = vrot.slane %v1217_v41, %v1266_v10  ;;  %v711_v41 = vshrl.u32 %v1261_v5, 16 }
 0x20b   : > { %v1067_v27 = vpop.f32.mrf.mxu0 }
 0x20c   : > { %1093 = vpow2.f32 %v457_v26 }
 0x219   : > { %v1094_v28 = vpop.eup %1093 }
 0x21a   : > { %v459_v29 = vadd.f32 1.0, %v1094_v28 }
 0x21c   : > { %1095 = vrcp.f32 %v459_v29 }
 0x229   : > { %v1096_v30 = vpop.eup %1095 }
 0x22a   : > { %463 = vrot.lane.b32.xlu1 %v1096_v30, %s1111_s29 }
 0x29c   : > { %v464_v39 = vpop.permute.xlu1 %463 }
 0x29d   : > { %v466_v40 = vmul.f32 %v464_v39, %v451_v22 }
 0x29f   : > { %v467_v45 = vpack.c.bf16 %v466_v40, %v466_v40 }
 0x2a1   : > { %v469_v48 = vshll.u32 %v467_v45, 16  ;;  %v472_v4 = vshrl.u32 %v467_v45, 16  ;;  %v683_v45 = vrot.slane %v1221_v43, %v1277_v21 }
 0x2a3   : > { %v471_v53 = vrot.slane %v469_v48, 1 }
 0x2a5   : > { %v1251_v60 = vsel %vm478_vm5, 0, %v471_v53  ;;  %v474_v11 = vor.u32 %v472_v4, %v471_v53 }
 0x2a6   : > { %v498_v61 = vmul.bf16 %v497_v49, %v1251_v60  ;;  %v508_v62 = vmul.bf16 %v507_v50, %v1251_v60  ;;  %v518_v63 = vmul.bf16 %v517_v51, %v1251_v60  ;;  %v528_v1 = vmul.bf16 %v527_v52, %v1251_v60 }
 0x2a7   : > { %v538_v8 = vmul.bf16 %v537_v54, %v1251_v60  ;;  %v558_v12 = vmul.bf16 %v557_v58, %v1251_v60  ;;  %v548_v16 = vmul.bf16 %v547_v57, %v1251_v60  ;;  %v573_v20 = vmul.bf16 %v572_v2, %v1251_v60 }
 0x2a8   : > { %v509_v6 = vunpack.c.l.bf16 %v508_v62  ;;  %v519_v7 = vunpack.c.l.bf16 %v518_v63  ;;  %v499_v13 = vunpack.c.l.bf16 %v498_v61  ;;  %v529_v15 = vunpack.c.l.bf16 %v528_v1 }
 0x2a9   : > { %v539_v24 = vunpack.c.l.bf16 %v538_v8  ;;  %v1282_v26 = vsel %vm480_vm6, %v474_v11, 0  ;;  %v559_v27 = vunpack.c.l.bf16 %v558_v12  ;;  %v560_v28 = vunpack.c.h.bf16 %v558_v12 }
 0x2aa   : > { %v511_v14 = vrot.slane %v509_v6, 1  ;;  %v521_v23 = vrot.slane %v519_v7, 2  ;;  %v531_v30 = vrot.slane %v529_v15, 3  ;;  %v549_v31 = vunpack.c.l.bf16 %v548_v16 }
 0x2ab   : > { %v597_v32 = vmul.bf16 %v596_v9, %v1251_v60  ;;  %v574_v33 = vunpack.c.l.bf16 %v573_v20  ;;  %v575_v34 = vunpack.c.h.bf16 %v573_v20  ;;  %v587_v35 = vmul.bf16 %v586_v17, %v1251_v60 }
 0x2ac   : > { %v513_v22 = vadd.f32 %v511_v14, %v499_v13  ;;  %v610_v36 = vmul.bf16 %v609_v18, %v1251_v60  ;;  %v541_v40 = vrot.slane %v539_v24, 4  ;;  %v564_v48 = vrot.slane %v559_v27, 6 }
 0x2ad   : > { %v565_v49 = vrot.slane %v560_v28, 6  ;;  %v623_v50 = vmul.bf16 %v622_v19, %v1251_v60  ;;  %v551_v52 = vrot.slane %v549_v31, 5  ;;  %v599_v53 = vrot.slane %v597_v32, 4 }
 0x2ae   : > { %v523_v29 = vadd.f32 %v521_v23, %v513_v22  ;;  %v663_v54 = vmul.bf16 %v661_v38, %v1282_v26  ;;  %v578_v55 = vrot.slane %v574_v33, 7  ;;  %v579_v56 = vrot.slane %v575_v34, 7 }
 0x2af   : > { %v589_v57 = vrot.slane %v587_v35, 4  ;;  %v612_v58 = vrot.slane %v610_v36, 4  ;;  %v636_v62 = vmul.bf16 %v635_v25, %v1251_v60  ;;  %v662_v43 = vmul.bf16 %v661_v38, %v1251_v60 }
 0x2b0   : > { %v533_v39 = vadd.f32 %v531_v30, %v523_v29  ;;  %v566_v63 = vsel %vm563_vm7, %v564_v48, %v565_v49  ;;  %v625_v1 = vrot.slane %v623_v50, 4  ;;  %v649_v2 = vmul.bf16 %v648_v37, %v1251_v60 }
 0x2b1   : > { %v685_v4 = vmul.bf16 %v683_v45, %v1282_v26  ;;  %v601_v7 = vunpack.c.l.bf16 %v599_v53  ;;  %v668_v8 = vrot.slane %v663_v54, 4  ;;  %v684_v9 = vmul.bf16 %v683_v45, %v1251_v60 }
 0x2b2   : > { %v543_v51 = vadd.f32 %v541_v40, %v533_v39  ;;  %v580_v11 = vsel %vm480_vm6, %v578_v55, %v579_v56  ;;  %v591_v12 = vunpack.c.l.bf16 %v589_v57  ;;  %v614_v13 = vunpack.c.l.bf16 %v612_v58 }
 0x2b3   : > { %v638_v15 = vrot.slane %v636_v62, 4  ;;  %v667_v16 = vrot.slane %v662_v43, 4  ;;  %v689_v17 = vrot.slane %v685_v4, 4  ;;  %v1303_v18 = vpack.i.b16 %v711_v41, %v711_v41 }
 0x2b4   : > { %v553_v61 = vadd.f32 %v551_v52, %v543_v51  ;;  %v627_v19 = vunpack.c.l.bf16 %v625_v1  ;;  %v651_v20 = vrot.slane %v649_v2, 4  ;;  %v603_v23 = vrot.slane %v601_v7, 1 }
 0x2b5   : > { %v669_v24 = vsel %vm666_vm8, %v667_v16, %v668_v8  ;;  %v688_v25 = vrot.slane %v684_v9, 4  ;;  %v1308_v60 = vpack.i.b16 %v1261_v5, %v1261_v5  ;;  %v616_v28 = vrot.slane %v614_v13, 2 }
 0x2b6   : > { %v568_v6 = vadd.f32 %v566_v63, %v553_v61  ;;  %v640_v29 = vunpack.c.l.bf16 %v638_v15  ;;  %v671_v31 = vunpack.c.l.bf16 %v669_v24  ;;  %v672_v32 = vunpack.c.h.bf16 %v669_v24 }
 0x2b7   : > { %v690_v30 = vsel %vm666_vm8, %v688_v25, %v689_v17  ;;  %v717_v33 = vrot.slane %v1303_v18, %v1219_v42  ;;  %v629_v35 = vrot.slane %v627_v19, 3  ;;  %v653_v36 = vunpack.c.l.bf16 %v651_v20 }
 0x2b8   : > { %v582_v14 = vadd.f32 %v580_v11, %v568_v6  ;;  %v692_v37 = vunpack.c.l.bf16 %v690_v30  ;;  %v693_v38 = vunpack.c.h.bf16 %v690_v30  ;;  %v707_v39 = vrot.slane %v1308_v60, %v1219_v42 }
 0x2b9   : > { %v727_v5 = vrot.slane %v1308_v60, %v1223_v44  ;;  %v642_v45 = vrot.slane %v640_v29, 4  ;;  %v675_v48 = vrot.slane %v671_v31, 6  ;;  %v676_v49 = vrot.slane %v672_v32, 6 }
 0x2ba   : > { %v592_v22 = vadd.f32 %v591_v12, %v582_v14  ;;  %v737_v50 = vrot.slane %v1303_v18, %v1223_v44  ;;  %v655_v52 = vrot.slane %v653_v36, 5  ;;  %v718_v53 = vmul.bf16 %v717_v33, %v1282_v26 }
 0x2bb   : > { %v696_v54 = vrot.slane %v692_v37, 7  ;;  %v697_v55 = vrot.slane %v693_v38, 7  ;;  %v747_v56 = vrot.slane %v1308_v60, %v1225_v46  ;;  %v708_v57 = vmul.bf16 %v707_v39, %v1282_v26 }
 0x2bc   : > { %v605_v27 = vadd.f32 %v603_v23, %v592_v22  ;;  %v728_v58 = vmul.bf16 %v727_v5, %v1282_v26  ;;  %v767_v41 = vrot.slane %v1308_v60, %v1227_v47  ;;  %v677_v61 = vsel %vm563_vm7, %v675_v48, %v676_v49 }
 0x2bd   : > { %v757_v44 = vrot.slane %v1303_v18, %v1225_v46  ;;  %v719_v43 = vunpack.c.l.bf16 %v718_v53  ;;  %v738_v63 = vmul.bf16 %v737_v50, %v1282_v26  ;;  %v781_v1 = vrot.slane %v1303_v18, %v1227_v47 }
 0x2be   : > { %v618_v34 = vadd.f32 %v616_v28, %v605_v27  ;;  %v698_v2 = vsel %vm480_vm6, %v696_v54, %v697_v55  ;;  %v709_v6 = vunpack.c.l.bf16 %v708_v57  ;;  %v729_v7 = vunpack.c.l.bf16 %v728_v58 }
 0x2bf   : > { %v748_v8 = vmul.bf16 %v747_v56, %v1282_v26  ;;  %v805_v9 = vrot.slane %v1303_v18, %v1249_v59  ;;  %v768_v11 = vmul.bf16 %v767_v41, %v1282_v26  ;;  %v721_v12 = vrot.slane %v719_v43, 1 }
 0x2c0   : > { %v631_v40 = vadd.f32 %v629_v35, %v618_v34  ;;  %v739_v13 = vunpack.c.l.bf16 %v738_v63  ;;  %v758_v14 = vmul.bf16 %v757_v44, %v1282_v26  ;;  %v795_v47 = vrot.slane %v1308_v60, %v1249_v59 }
 0x2c1   : > { %v782_v15 = vmul.bf16 %v781_v1, %v1282_v26  ;;  %v731_v17 = vrot.slane %v729_v7, 2  ;;  %v749_v19 = vunpack.c.l.bf16 %v748_v8  ;;  %v818_v20 = vrot.slane %v1308_v60, %v1259_v3 }
 0x2c2   : > { %v644_v51 = vadd.f32 %v642_v45, %v631_v40  ;;  %v769_v22 = vunpack.c.l.bf16 %v768_v11  ;;  %v770_v23 = vunpack.c.h.bf16 %v768_v11  ;;  %v806_v24 = vmul.bf16 %v805_v9, %v1282_v26 }
 0x2c3   : > { %v870_v25 = vrot.slane %v1308_v60, %v1277_v21  ;;  %v741_v28 = vrot.slane %v739_v13, 3  ;;  %v759_v29 = vunpack.c.l.bf16 %v758_v14  ;;  %v831_v59 = vrot.slane %v1303_v18, %v1259_v3 }
 0x2c4   : > { %v657_v42 = vadd.f32 %v655_v52, %v644_v51  ;;  %v783_v30 = vunpack.c.l.bf16 %v782_v15  ;;  %v784_v31 = vunpack.c.h.bf16 %v782_v15  ;;  %v844_v32 = vrot.slane %v1308_v60, %v1266_v10 }
 0x2c5   : > { %v857_v33 = vrot.slane %v1303_v18, %v1266_v10  ;;  %v751_v35 = vrot.slane %v749_v19, 4  ;;  %v796_v36 = vmul.bf16 %v795_v47, %v1282_v26  ;;  %v819_v21 = vmul.bf16 %v818_v20, %v1282_v26 }
 0x2c6   : > { %v679_v62 = vadd.f32 %v677_v61, %v657_v42  ;;  %v773_v37 = vrot.slane %v769_v22, 6  ;;  %v774_v38 = vrot.slane %v770_v23, 6  ;;  %v808_v39 = vrot.slane %v806_v24, 4  ;;  %v1046_v22 = vld [vmem:[%s1388_s6] ss:$0 sm:$0xff] }
 0x2c7   : > { %v872_v5 = vmul.bf16 0, %v870_v25  ;;  %v761_v3 = vrot.slane %v759_v29, 5  ;;  %v832_v45 = vmul.bf16 %v831_v59, %v1282_v26  ;;  %v871_v48 = vmul.bf16 %v870_v25, %v1282_v26  ;;  %v1047_v24 = vld [vmem:[%s1389_s7] ss:$0 sm:$0xff] }
 0x2c8   : > { %v700_v4 = vadd.f32 %v698_v2, %v679_v62  ;;  %v787_v60 = vrot.slane %v783_v30, 7  ;;  %v788_v49 = vrot.slane %v784_v31, 7  ;;  %v798_v10 = vrot.slane %v796_v36, 4 }
 0x2c9   : > { %v821_v18 = vrot.slane %v819_v21, 4  ;;  %v845_v51 = vmul.bf16 %v844_v32, %v1282_v26  ;;  %v775_v52 = vsel %vm563_vm7, %v773_v37, %v774_v38  ;;  %v810_v53 = vunpack.c.l.bf16 %v808_v39 }
 0x2ca   : > { %v710_v46 = vadd.f32 %v709_v6, %v700_v4  ;;  %v876_v54 = vrot.slane %v872_v5, 4  ;;  %v834_v56 = vrot.slane %v832_v45, 4  ;;  %v858_v42 = vmul.bf16 %v857_v33, %v1282_v26 }
 0x2cb   : > { %v875_v57 = vrot.slane %v871_v48, 4  ;;  %v789_v58 = vsel %vm480_vm6, %v787_v60, %v788_v49  ;;  %v800_v61 = vunpack.c.l.bf16 %v798_v10  ;;  %v823_v44 = vunpack.c.l.bf16 %v821_v18 }
 0x2cc   : > { %v723_v16 = vadd.f32 %v721_v12, %v710_v46  ;;  %v847_v62 = vrot.slane %v845_v51, 4  ;;  %v812_v43 = vrot.slane %v810_v53, 1  ;;  %v836_v1 = vunpack.c.l.bf16 %v834_v56 }
 0x2cd   : > { %v860_v2 = vrot.slane %v858_v42, 4  ;;  %v877_v4 = vsel %vm666_vm8, %v875_v57, %v876_v54  ;;  %v825_v7 = vrot.slane %v823_v44, 2 }
 0x2ce   : > { %v733_v27 = vadd.f32 %v731_v17, %v723_v16  ;;  %v849_v8 = vunpack.c.l.bf16 %v847_v62  ;;  %v879_v9 = vunpack.c.l.bf16 %v877_v4  ;;  %v880_v11 = vunpack.c.h.bf16 %v877_v4 }
 0x2cf   : > { %v838_v26 = vrot.slane %v836_v1, 3  ;;  %v862_v12 = vunpack.c.l.bf16 %v860_v2 }
 0x2d0   : > { %v743_v34 = vadd.f32 %v741_v28, %v733_v27  ;;  %v851_v14 = vrot.slane %v849_v8, 4  ;;  %v883_v47 = vrot.slane %v879_v9, 6  ;;  %v884_v15 = vrot.slane %v880_v11, 6 }
 0x2d1   : > { %v864_v17 = vrot.slane %v862_v12, 5 }
 0x2d2   : > { %v753_v40 = vadd.f32 %v751_v35, %v743_v34  ;;  %v885_v20 = vsel %vm563_vm7, %v883_v47, %v884_v15  ;;  %v1048_v34 = vld [vmem:[%s1391_s9] ss:$0 sm:$0xff] }
 0x2d4   : > { %v763_v50 = vadd.f32 %v761_v3, %v753_v40 }
 0x2d6   : > { %v777_v55 = vadd.f32 %v775_v52, %v763_v50 }
 0x2d8   : > { %v791_v41 = vadd.f32 %v789_v58, %v777_v55 }
 0x2da   : > { %v801_v63 = vadd.f32 %v800_v61, %v791_v41 }
 0x2dc   : > { %v814_v6 = vadd.f32 %v812_v43, %v801_v63 }
 0x2de   : > { %v827_v46 = vadd.f32 %v825_v7, %v814_v6 }
 0x2e0   : > { %v840_v13 = vadd.f32 %v838_v26, %v827_v46 }
 0x2e2   : > { %v853_v16 = vadd.f32 %v851_v14, %v840_v13 }
 0x2e4   : > { %v866_v19 = vadd.f32 %v864_v17, %v853_v16 }
 0x2e6   : > { %v887_v23 = vadd.f32 %v885_v20, %v866_v19 }
 0x2e8   : > { %v895_v25 = vmul.f32 %v1046_v22, %v887_v23 }
 0x2ea   : > { %v903_v27 = vadd.f32 %v1047_v24, %v895_v25 }
 0x2ec   : > { %v904_v28 = vsub.f32 0.0, %v903_v27 }
 0x2ee   : > { %v905_v29 = vmul.f32 1.442695, %v904_v28 }
 0x2f0   : > { %1097 = vpow2.f32 %v905_v29 }
 0x2fd   : > { %v1098_v59 = vpop.eup %1097 }
 0x2fe   : > { %v907_v30 = vadd.f32 1.0, %v1098_v59 }
 0x300   : > { %1099 = vrcp.f32 %v907_v30 }
 0x30d   : > { %v1100_v31 = vpop.eup %1099 }
 0x30e   : > { %v910_v32 = vmul.f32 %v1100_v31, %v903_v27 }
 0x310   : > { %v911_v33 = vpack.c.bf16 %v910_v32, %v910_v32 }
 0x312   : > { %1073 = vmatmul.mubr.msk.bf16.vlgmr.msra.gmra.mxu1 %vm412_vm2, %v911_v33 }
 0x3d2   : > { %v972_v35 = vpop.f32.mrf.mxu1 }
 0x3d3   : > { %v973_v36 = vadd.f32 %v1048_v34, %v972_v35 }
 0x3d4   : > { %v1074_v21 = vpop.f32.mrf.mxu1 }
 0x3d5   : > { %v978_v37 = vadd.f32 %v973_v36, %v1183_v0 }
 0x3d6   : > { %v975_v38 = vpop.f32.mrf.mxu1 }
 0x3d7   : > { %979 = vst.msk [vmem:[%s354_s16] sm:$0x7] %vm359_vm0, %v978_v37 }
 0x3d8   : > { %v1075_v39 = vpop.f32.mrf.mxu1 }
 0x3d9 PF: > { %s20_s13 = sadd.s32 1, %s1107_s13  }
 0x3da   : > { %p17_p4 = scmp.ge.s32.totalorder %s20_s13, 4  }
 0x3dc   :  { %19 = sbr.rel (!%p17_p4) target bundleno = 1 (0x1), region = 90 }

// kernel: conformer_forward.19
= control target key start
LH: loop header
LB: loop body
LE: loop exit
PB: predicated region body
PF: predicated region fallthrough
CT: control target
= control target key end

     0   :  { %s1668_s13 = smov 0   ;;  %s1946_s0 = inlined_call_operand.vmem [shape: f32[2,3,32], index: 0, kind: input, shape index: {}]   ;;  %s1947_s1 = inlined_call_operand.vmem [shape: bf16[3,32], index: 1, kind: input, shape index: {}]   ;;  %s1948_s2 = inlined_call_operand.vmem [shape: f32[1,32], index: 2, kind: input, shape index: {}]   ;;  %s1949_s3 = inlined_call_operand.vmem [shape: f32[1,32], index: 3, kind: input, shape index: {}]   ;;  %s1950_s4 = inlined_call_operand.vmem [shape: bf16[32,96], index: 4, kind: input, shape index: {}]   ;;  %s1951_s5 = inlined_call_operand.vmem [shape: f32[1,96], index: 5, kind: input, shape index: {}]   ;;  %s1952_s6 = inlined_call_operand.vmem [shape: f32[1,32], index: 6, kind: input, shape index: {}]   ;;  %s1953_s7 = inlined_call_operand.vmem [shape: f32[1,32], index: 7, kind: input, shape index: {}]   ;;  %s1954_s8 = inlined_call_operand.vmem [shape: bf16[32,32], index: 8, kind: input, shape index: {}]   ;;  %s1955_s9 = inlined_call_operand.vmem [shape: f32[1,32], index: 9, kind: input, shape index: {}]   ;;  %s1956_s10 = inlined_call_operand.vmem [shape: f32[2,3,32], index: 10, kind: output, shape index: {}]  }
   0x1 LB: > { %s1380_s14 = sadd.s32 4294967295, %s1589_s13   ;;  %p1384_p0 = scmp.ge.s32.totalorder %s1589_s13, 1  ;;  %s1589_s13 = sphi %s1668_s13, %s20_s13  }
   0x2   : > { %p311_p1 = scmp.lt.s32.totalorder %s1589_s13, 3 }
   0x4   : > { %p312_p2 = pnand %p1384_p0, %p311_p1 }
   0x5   : > { %p347_p3 = scmp.lt.s32.totalorder (!%p312_p2), %s1380_s14, 1  ;;  %s1593_s16 = smov (!%p312_p2), 96  }
   0x6   : > { %315 = sbr.rel (%p312_p2) target bundleno = 3339 (0xd0b), region = 60  ;;  %s1594_s19 = smov (!%p312_p2), 1  }
   0x7   : > { %s1595_s20 = smov (!%p312_p2), 126   ;;  %s1596_s21 = smov (!%p312_p2), 120  }
   0x8   : > { %s1598_s22 = smov (!%p312_p2), 127   ;;  %s1599_s23 = smov (!%p312_p2), 2  }
   0x9   : > { %s1600_s24 = smov (!%p312_p2), 64   ;;  %s1602_s25 = smov (!%p312_p2), 88  }
   0xa   : > { %s1603_s26 = smov (!%p312_p2), 112   ;;  %s1604_s27 = smov (!%p312_p2), 56  }
   0xb   : > { %s1960_s14 = smov (!%p347_p3, %s1380_s14), 1  ;;  %vm359_vm0 = vcmask 256000   ;;  %v1561_v7 = vld [vmem:[%s1950_s4 + $0x8] sm:$0xff]   ;;  %v1591_v8 = vmov 0.0   ;;  %vm1592_vm1 = vmmov 0   ;;  %v1562_v9 = vld [vmem:[%s1950_s4] sm:$0xff]   ;;  %v478_v43 = vlaneseq }
   0xc   : > { %s1385_s15 = sshll.u32 %s1960_s14, 2  ;;  %1443 = vmatprep.subr.bf16.mxu0 %v1591_v8  ;;  %1447 = vmatprep.mubr.msk.bf16.mxu0 %vm1592_vm1, %v1591_v8  ;;  %v1387_v14 = vld [vmem:[%s1948_s2] ss:$0 sm:$0xff]  ;;  %vm412_vm2 = vcmask 261120   ;;  %vm483_vm3 = vcmask 64512   ;;  %vm537_vm4 = vcmask 7168  }
   0xd   : > { %s350_s18 = scalar_lea.vmem %s1946_s0, %s1385_s15  ;;  %1444 = vmatpush3.bf16.msra.mxu0 %v1561_v7  ;;  %1451 = vmatprep.subr.bf16.mxu1 %v1591_v8  ;;  %v1388_v16 = vld [vmem:[%s1949_s3] ss:$0 sm:$0xff]  ;;  %v1748_v44 = vshrl.u32 %v478_v43, 7  ;;  %v1597_v46 = vmov 1983009808   ;;  %vm549_vm6 = vcmask 15360  }
   0xe   : > { %v1684_v0 = vld [vmem:[%s350_s18] sm:$0x7]  ;;  %1445 = vmatprep.subr.bf16.mxu0 %v1591_v8  ;;  %1453 = vmatprep.mubr.msk.bf16.mxu1 %vm1592_vm1, %v1591_v8  ;;  %v683_v47 = vunpack.c.l.s4 %v1597_v46  ;;  %vm558_vm8 = vcmask 1041408   ;;  %vm613_vm11 = vcmask 18432   ;;  %vm632_vm12 = vcmask 1040384   ;;  %s1605_s28 = smov 80  }
   0xf   : > { %v360_v1 = vsel %vm359_vm0, %v1684_v0, 0.0  ;;  %v457_v20 = vld [vmem:[%s1947_s1] sm:$0x3]  ;;  %v1751_v45 = vadd.s32 1, %v1748_v44  ;;  %vm628_vm13 = vcmask 23552   ;;  %s1606_s29 = smov 104  }
  0x10   : > { %361 = vadd.xlane.f32.xlu0 %v360_v1  ;;  %v488_v21 = vsel %vm483_vm3, %v457_v20, 0  ;;  %v1389_v22 = vld [vmem:[%s1951_s5] ss:$0 sm:$0xff]  ;;  %v684_v49 = vunpack.c.0.s8 %v683_v47  ;;  %v1772_v1 = vand.u32 127, %v478_v43  ;;  %s1607_s30 = smov 48   ;;  %s1608_s11 = smov 72  }
  0x11   : > { %1446 = vmatpush3.bf16.msra.mxu0 %v1562_v9  ;;  %1452 = vmatpush3.bf16.xpose.msra.mxu1 %v488_v21  ;;  %v1394_v24 = vld [vmem:[%s1953_s7] ss:$0 sm:$0xff]  ;;  %v539_v48 = vand.u32 1, %v1751_v45  ;;  %v551_v61 = vshra.s32 %v1751_v45, 1  ;;  %s1609_s12 = smov 8   ;;  %s1611_s17 = smov 40  }
  0x12   : > { %1457 = vmatprep.subr.bf16.mxu0 %v1591_v8  ;;  %1463 = vmatprep.subr.bf16.mxu1 %v1591_v8  ;;  %v1393_v33 = vld [vmem:[%s1952_s6] ss:$0 sm:$0xff]  ;;  %v687_v55 = vsub.s32 %v684_v49, %v1748_v44  ;;  %vm561_vm9 = vcmp.eq.s32.totalorder %v1772_v1, %v1751_v45  ;;  %vm560_vm10 = vcmp.le.s32.totalorder %v1772_v1, %v1748_v44  ;;  %vm1253_vm14 = vcmask 130048  }
  0x13   : > { %vm1754_vm5 = vcmp.eq.s32.totalorder %v539_v48, 1  ;;  %v1769_v62 = vand.u32 1, %v551_v61  ;;  %vm1255_vm15 = vcmask 195584  }
  0x14   : > { %v1763_v58 = vrot.slane %v457_v20, %v687_v55 }
  0x15   : > { %vm553_vm7 = vcmp.eq.s32.totalorder %v1769_v62, 1 }
  0x99   : > { %v362_v2 = vpop.xlane.xlu0 %361 }
  0x9a   : > { %v364_v3 = vmul.f32 0.03125, %v362_v2 }
  0x9c   : > { %v365_v4 = vsub.f32 %v1684_v0, %v364_v3 }
  0x9e   : > { %v366_v5 = vmul.f32 %v365_v4, %v365_v4 }
  0xa0   : > { %v367_v6 = vsel %vm359_vm0, %v366_v5, 0.0 }
  0xa1   : > { %368 = vadd.xlane.f32.xlu0 %v367_v6 }
 0x12a   : > { %v369_v10 = vpop.xlane.xlu0 %368 }
 0x12b   : > { %v370_v11 = vmul.f32 0.03125, %v369_v10 }
 0x12d   : > { %v371_v12 = vadd.f32 1e-05, %v370_v11 }
 0x12f   : > { %1565 = vrsqrt.f32 %v371_v12 }
 0x13c   : > { %v1566_v13 = vpop.eup %1565 }
 0x13d   : > { %v373_v15 = vmul.f32 %v1566_v13, %v365_v4 }
 0x13f   : > { %v380_v17 = vmul.f32 %v1387_v14, %v373_v15  ;;  %v1601_v15 = vmov 65535  }
 0x141   : > { %v387_v18 = vadd.f32 %v1388_v16, %v380_v17  ;;  %v633_v16 = vsel %vm632_vm12, 4294967295, %v1601_v15 }
 0x143   : > { %v388_v19 = vpack.c.bf16 %v387_v18, %v387_v18 }
 0x145   : > { %1448 = vmatmul.mubr.msk.bf16.vlgmr.msra.gmra.mxu0 %vm412_vm2, %v388_v19  ;;  %v1798_v19 = vsel %vm558_vm8, %v633_v16, 0 }
 0x146   : > { %1459 = vmatprep.mubr.msk.bf16.mxu0 %vm1592_vm1, %v1591_v8 }
 0x205   : > { %v450_v23 = vpop.f32.mrf.mxu0 }
 0x206   : > { %v451_v25 = vadd.f32 %v1389_v22, %v450_v23 }
 0x207   : > { %v1449_v26 = vpop.f32.mrf.mxu0 }
 0x208   : > { %v1724_v27 = vpack.c.bf16 %v451_v25, %v451_v25  ;;  %v475_v28 = vadd.f32 %v1394_v24, %v451_v25  ;;  %v465_v34 = vadd.f32 %v1393_v33, %v451_v25 }
 0x209   : > { %v453_v29 = vpop.f32.mrf.mxu0 }
 0x20a   : > { %v476_v30 = vmul.f32 0.17677669, %v475_v28  ;;  %565 = vrot.lane.b32.xlu1 %v1724_v27, %s1593_s16  ;;  %v466_v37 = vmul.f32 0.17677669, %v465_v34  ;;  %s1610_s16 = smov 16  }
 0x20b   : > { %v1450_v31 = vpop.f32.mrf.mxu0 }
 0x20c   : > { %v1727_v32 = vpack.c.bf16 %v476_v30, %v476_v30  ;;  %v1738_v38 = vpack.c.bf16 %v466_v37, %v466_v37 }
 0x20e   : > { %1454 = vmatmul.mubr.msk.bf16.vlgmr.msra.gmra.mxu1 %vm483_vm3, %v1727_v32 }
 0x20f   : > { %1465 = vmatprep.mubr.msk.bf16.mxu1 %vm1592_vm1, %v1591_v8 }
 0x27c   : > { %v566_v35 = vpop.permute.xlu1 %565 }
 0x27d   : > { %v571_v36 = vsel %vm483_vm3, %v566_v35, 0 }
 0x27e   : > { %1458 = vmatpush3.bf16.xpose.msra.mxu0 %v571_v36 }
 0x27f   : > { %1469 = vmatprep.subr.bf16.mxu0 %v1591_v8 }
 0x285   : > { %1460 = vmatmul.mubr.msk.bf16.vlgmr.msra.gmra.mxu0 %vm483_vm3, %v1738_v38 }
 0x286   : > { %1471 = vmatprep.mubr.msk.bf16.mxu0 %vm1592_vm1, %v1591_v8 }
 0x2ce   : > { %v524_v39 = vpop.f32.mrf.mxu1 }
 0x2cf   : > { %534 = vrot.lane.b32.xlu0 %v524_v39, %s1594_s19  ;;  %531 = vrot.lane.b32.xlu1 %v524_v39, %s1595_s20 }
 0x2d0   : > { %v1455_v40 = vpop.f32.mrf.mxu1 }
 0x2d2   : > { %v527_v41 = vpop.f32.mrf.mxu1 }
 0x2d3   : > { %679 = vrot.lane.b32.xlu0 %v1727_v32, %s1596_s21 }
 0x2d4   : > { %v1456_v42 = vpop.f32.mrf.mxu1 }
 0x341   : > { %v535_v51 = vpop.permute.xlu0 %534  ;;  %v532_v52 = vpop.permute.xlu1 %531 }
 0x342   : > { %v538_v53 = vsel %vm537_vm4, %v532_v52, %v535_v51 }
 0x343   : > { %v541_v54 = vsel %vm1754_vm5, %v538_v53, %v524_v39 }
 0x344   : > { %543 = vrot.lane.b32.xlu1 %v541_v54, %s1598_s22 }
 0x345   : > { %v607_v56 = vpop.f32.mrf.mxu0  ;;  %v680_v14 = vpop.permute.xlu0 %679 }
 0x347   : > { %v1461_v57 = vpop.f32.mrf.mxu0 }
 0x348   : > { %546 = vrot.lane.b32.xlu1 %v541_v54, %s1599_s23 }
 0x349   : > { %v610_v59 = vpop.f32.mrf.mxu0 }
 0x34b   : > { %v1462_v60 = vpop.f32.mrf.mxu0 }
 0x34c   : > { %689 = vrot.lane.b32.xlu1 %v1763_v58, %s1596_s21 }
 0x3b6   : > { %v544_v63 = vpop.permute.xlu1 %543 }
 0x3ba   : > { %v547_v2 = vpop.permute.xlu1 %546 }
 0x3bb   : > { %v550_v3 = vsel %vm549_vm6, %v544_v63, %v547_v2 }
 0x3bc   : > { %v554_v4 = vsel %vm553_vm7, %v550_v3, %v541_v54 }
 0x3bd   : > { %v556_v5 = vrot.slane %v554_v4, 1 }
 0x3be   : > { %v690_v6 = vpop.permute.xlu1 %689 }
 0x3bf   : > { %v695_v7 = vsel %vm483_vm3, %v690_v6, 0  ;;  %v559_v9 = vsel %vm558_vm8, %v556_v5, 0.0 }
 0x3c0   : > { %1470 = vmatpush3.bf16.xpose.msra.mxu0 %v695_v7  ;;  %v562_v10 = vsel %vm561_vm9, 0.0, %v559_v9 }
 0x3c1   : > { %v563_v11 = vsel %vm560_vm10, %v554_v4, %v562_v10  ;;  %1481 = vmatprep.subr.bf16.mxu0 %v1591_v8 }
 0x3c2   : > { %v608_v12 = vadd.f32 %v607_v56, %v563_v11 }
 0x3c4   : > { %v614_v13 = vsel %vm613_vm11, %v608_v12, -inf }
 0x3c5   : > { %615 = vmax.xlane.f32.xlu1 %v614_v13 }
 0x3c7   : > { %1472 = vmatmul.mubr.msk.bf16.vlgmr.msra.gmra.mxu0 %vm483_vm3, %v680_v14 }
 0x3c8   : > { %1483 = vmatprep.mubr.msk.bf16.mxu0 %vm1592_vm1, %v1591_v8 }
 0x3d6   : > { %626 = vrot.lane.b32.xlu1 %v1724_v27, %s1600_s24 }
 0x3da   : > { %762 = vrot.lane.b32.xlu1 %v1738_v38, %s1596_s21 }
 0x44e   : > { %v616_v17 = vpop.xlane.xlu1 %615 }
 0x44f   : > { %v617_v18 = vsub.f32 %v608_v12, %v616_v17 }
 0x451   : > { %v618_v20 = vmul.f32 1.442695, %v617_v18 }
 0x452   : > { %v627_v21 = vpop.permute.xlu1 %626 }
 0x453   : > { %1567 = vpow2.f32 %v618_v20  ;;  %v636_v22 = vand.u32 %v1798_v19, %v627_v21 }
 0x455   : > { %1464 = vmatpush3.bf16.msra.mxu1 %v636_v22 }
 0x456   : > { %1475 = vmatprep.subr.bf16.mxu1 %v1591_v8  ;;  %v763_v31 = vpop.permute.xlu1 %762 }
 0x460   : > { %v1568_v23 = vpop.eup %1567 }
 0x461   : > { %v620_v24 = vsel %vm613_vm11, %v1568_v23, 0.0 }
 0x462   : > { %621 = vadd.xlane.f32.xlu0 %v620_v24 }
 0x478   : > { %764 = vrot.lane.b32.xlu0 %v1724_v27, %s1602_s25 }
 0x487   : > { %v731_v25 = vpop.f32.mrf.mxu0 }
 0x488   : > { %738 = vrot.lane.b32.xlu1 %v731_v25, %s1595_s20 }
 0x489   : > { %v1473_v26 = vpop.f32.mrf.mxu0 }
 0x48b   : > { %v734_v28 = vpop.f32.mrf.mxu0 }
 0x48c   : > { %741 = vrot.lane.b32.xlu1 %v731_v25, %s1594_s19 }
 0x48d   : > { %v1474_v29 = vpop.f32.mrf.mxu0 }
 0x4eb   : > { %v622_v30 = vpop.xlane.xlu0 %621 }
 0x4ec   : > { %1569 = vrcp.f32 %v622_v30 }
 0x4ef   : > { %v765_v36 = vpop.permute.xlu0 %764 }
 0x4f0   : > { %v770_v39 = vsel %vm483_vm3, %v765_v36, 0 }
 0x4f9   : > { %v1570_v33 = vpop.eup %1569 }
 0x4fa   : > { %v739_v34 = vpop.permute.xlu1 %738  ;;  %v624_v35 = vmul.f32 %v1570_v33, %v1568_v23 }
 0x4fc   : > { %v625_v37 = vpack.c.bf16 %v624_v35, %v624_v35 }
 0x4fe   : > { %1466 = vmatmul.mubr.msk.bf16.vlgmr.msra.gmra.mxu1 %vm628_vm13, %v625_v37  ;;  %v742_v40 = vpop.permute.xlu1 %741 }
 0x4ff   : > { %1476 = vmatpush3.bf16.xpose.msra.mxu1 %v770_v39  ;;  %v744_v41 = vsel %vm537_vm4, %v739_v34, %v742_v40  ;;  %1477 = vmatprep.mubr.msk.bf16.mxu1 %vm1592_vm1, %v1591_v8 }
 0x500   : > { %v745_v42 = vsel %vm1754_vm5, %v744_v41, %v731_v25  ;;  %1487 = vmatprep.subr.bf16.mxu1 %v1591_v8 }
 0x501   : > { %750 = vrot.lane.b32.xlu0 %v745_v42, %s1599_s23  ;;  %747 = vrot.lane.b32.xlu1 %v745_v42, %s1598_s22 }
 0x505   : > { %874 = vrot.lane.b32.xlu1 %v1763_v58, %s1603_s26 }
 0x506   : > { %1478 = vmatmul.mubr.msk.bf16.vlgmr.msra.gmra.mxu1 %vm483_vm3, %v763_v31 }
 0x507   : > { %1489 = vmatprep.mubr.msk.bf16.mxu1 %vm1592_vm1, %v1591_v8 }
 0x509   : > { %872 = vrot.lane.b32.xlu1 %v1727_v32, %s1603_s26 }
 0x573   : > { %v748_v43 = vpop.permute.xlu1 %747  ;;  %v751_v49 = vpop.permute.xlu0 %750 }
 0x574   : > { %v753_v51 = vsel %vm549_vm6, %v748_v43, %v751_v49 }
 0x575   : > { %v754_v52 = vsel %vm553_vm7, %v753_v51, %v745_v42 }
 0x576   : > { %v756_v53 = vrot.slane %v754_v52, 1 }
 0x577   : > { %v875_v46 = vpop.permute.xlu1 %874 }
 0x578   : > { %v880_v47 = vsel %vm483_vm3, %v875_v46, 0  ;;  %v758_v56 = vsel %vm558_vm8, %v756_v53, 0.0 }
 0x579   : > { %1488 = vmatpush3.bf16.xpose.msra.mxu1 %v880_v47  ;;  %v759_v59 = vsel %vm561_vm9, 0.0, %v758_v56 }
 0x57a   : > { %1499 = vmatprep.subr.bf16.mxu1 %v1591_v8  ;;  %v760_v61 = vsel %vm560_vm10, %v754_v52, %v759_v59 }
 0x57b   : > { %v873_v48 = vpop.permute.xlu1 %872 }
 0x580   : > { %1490 = vmatmul.mubr.msk.bf16.vlgmr.msra.gmra.mxu1 %vm483_vm3, %v873_v48 }
 0x581   : > { %1501 = vmatprep.mubr.msk.bf16.mxu1 %vm1592_vm1, %v1591_v8 }
 0x5be   : > { %v1831_v54 = vpop.f32.mrf.mxu1 }
 0x5c0   : > { %v1467_v55 = vpop.f32.mrf.mxu1 }
 0x5c2   : > { %v675_v57 = vpop.f32.mrf.mxu1 }
 0x5c4   : > { %v1468_v60 = vpop.f32.mrf.mxu1 }
 0x5c6   : > { %v806_v63 = vpop.f32.mrf.mxu1 }
 0x5c7   : > { %v807_v2 = vadd.f32 %v806_v63, %v760_v61 }
 0x5c8   : > { %v1479_v3 = vpop.f32.mrf.mxu1 }
 0x5c9   : > { %v812_v4 = vsel %vm613_vm11, %v807_v2, -inf }
 0x5ca   : > { %v809_v5 = vpop.f32.mrf.mxu1  ;;  %813 = vmax.xlane.f32.xlu0 %v812_v4 }
 0x5cc   : > { %v1480_v6 = vpop.f32.mrf.mxu1 }
 0x5e0   : > { %824 = vrot.lane.b32.xlu0 %v1724_v27, %s1604_s27  ;;  %s354_s27 = scalar_lea.vmem %s1956_s10, %s1385_s15 }
 0x5e4   : > { %946 = vrot.lane.b32.xlu0 %v1738_v38, %s1603_s26 }
 0x640   : > { %v916_v7 = vpop.f32.mrf.mxu1 }
 0x641   : > { %923 = vrot.lane.b32.xlu0 %v916_v7, %s1595_s20 }
 0x642   : > { %v1491_v9 = vpop.f32.mrf.mxu1 }
 0x644   : > { %v919_v10 = vpop.f32.mrf.mxu1 }
 0x646   : > { %v1492_v11 = vpop.f32.mrf.mxu1 }
 0x653   : > { %v814_v12 = vpop.xlane.xlu0 %813 }
 0x654   : > { %v815_v13 = vsub.f32 %v807_v2, %v814_v12 }
 0x656   : > { %v816_v14 = vmul.f32 1.442695, %v815_v13 }
 0x657   : > { %v825_v15 = vpop.permute.xlu0 %824 }
 0x658   : > { %1571 = vpow2.f32 %v816_v14  ;;  %v830_v16 = vand.u32 %v825_v15, %v1798_v19 }
 0x65a   : > { %1482 = vmatpush3.bf16.msra.mxu0 %v830_v16 }
 0x65b   : > { %1493 = vmatprep.subr.bf16.mxu0 %v1591_v8  ;;  %v947_v21 = vpop.permute.xlu0 %946 }
 0x665   : > { %v1572_v17 = vpop.eup %1571 }
 0x666   : > { %v818_v18 = vsel %vm613_vm11, %v1572_v17, 0.0 }
 0x667   : > { %819 = vadd.xlane.f32.xlu1 %v818_v18 }
 0x678   : > { %948 = vrot.lane.b32.xlu1 %v1724_v27, %s1605_s28 }
 0x67c   : > { %926 = vrot.lane.b32.xlu1 %v916_v7, %s1594_s19 }
 0x6b3   : > { %v924_v23 = vpop.permute.xlu0 %923 }
 0x6f0   : > { %v820_v20 = vpop.xlane.xlu1 %819 }
 0x6f1   : > { %1573 = vrcp.f32 %v820_v20 }
 0x6f4   : > { %v949_v22 = vpop.permute.xlu1 %948 }
 0x6f5   : > { %v954_v31 = vsel %vm483_vm3, %v949_v22, 0 }
 0x6f8   : > { %v927_v24 = vpop.permute.xlu1 %926 }
 0x6f9   : > { %v929_v25 = vsel %vm537_vm4, %v924_v23, %v927_v24 }
 0x6fa   : > { %v930_v26 = vsel %vm1754_vm5, %v929_v25, %v916_v7 }
 0x6fb   : > { %935 = vrot.lane.b32.xlu1 %v930_v26, %s1599_s23  ;;  %932 = vrot.lane.b32.xlu0 %v930_v26, %s1598_s22 }
 0x6fe   : > { %v1574_v28 = vpop.eup %1573 }
 0x6ff   : > { %1058 = vrot.lane.b32.xlu0 %v1763_v58, %s1606_s29  ;;  %v822_v29 = vmul.f32 %v1574_v28, %v1572_v17 }
 0x701   : > { %v823_v30 = vpack.c.bf16 %v822_v29, %v822_v29 }
 0x703   : > { %1484 = vmatmul.mubr.msk.bf16.vlgmr.msra.gmra.mxu0 %vm628_vm13, %v823_v30  ;;  %1056 = vrot.lane.b32.xlu0 %v1727_v32, %s1606_s29 }
 0x704   : > { %1494 = vmatpush3.bf16.xpose.msra.mxu0 %v954_v31  ;;  %1495 = vmatprep.mubr.msk.bf16.mxu0 %vm1592_vm1, %v1591_v8 }
 0x705   : > { %1505 = vmatprep.subr.bf16.mxu0 %v1591_v8 }
 0x70b   : > { %1496 = vmatmul.mubr.msk.bf16.vlgmr.msra.gmra.mxu0 %vm483_vm3, %v947_v21 }
 0x70c   : > { %1507 = vmatprep.mubr.msk.bf16.mxu0 %vm1592_vm1, %v1591_v8 }
 0x76d   : > { %v933_v58 = vpop.permute.xlu0 %932  ;;  %v936_v32 = vpop.permute.xlu1 %935 }
 0x76e   : > { %v938_v36 = vsel %vm549_vm6, %v933_v58, %v936_v32 }
 0x76f   : > { %v939_v37 = vsel %vm553_vm7, %v938_v36, %v930_v26 }
 0x770   : > { %v941_v39 = vrot.slane %v939_v37, 1 }
 0x771   : > { %v1059_v33 = vpop.permute.xlu0 %1058 }
 0x772   : > { %v1064_v34 = vsel %vm483_vm3, %v1059_v33, 0  ;;  %v943_v42 = vsel %vm558_vm8, %v941_v39, 0.0 }
 0x773   : > { %1506 = vmatpush3.bf16.xpose.msra.mxu0 %v1064_v34  ;;  %v944_v46 = vsel %vm561_vm9, 0.0, %v943_v42 }
 0x774   : > { %1517 = vmatprep.subr.bf16.mxu0 %v1591_v8  ;;  %v945_v48 = vsel %vm560_vm10, %v939_v37, %v944_v46 }
 0x775   : > { %v1057_v35 = vpop.permute.xlu0 %1056 }
 0x77a   : > { %1508 = vmatmul.mubr.msk.bf16.vlgmr.msra.gmra.mxu0 %vm483_vm3, %v1057_v35 }
 0x77b   : > { %1519 = vmatprep.mubr.msk.bf16.mxu0 %vm1592_vm1, %v1591_v8 }
 0x7c3   : > { %v1875_v40 = vpop.f32.mrf.mxu0 }
 0x7c5   : > { %v1485_v41 = vpop.f32.mrf.mxu0 }
 0x7c7   : > { %v869_v43 = vpop.f32.mrf.mxu0 }
 0x7c9   : > { %v1486_v47 = vpop.f32.mrf.mxu0 }
 0x7ca   : > { %v1563_v47 = vld [vmem:[%s1954_s8 + $0x8] sm:$0xff]  }
 0x7cb   : > { %v990_v49 = vpop.f32.mrf.mxu0 }
 0x7cc   : > { %v991_v51 = vadd.f32 %v990_v49, %v945_v48 }
 0x7cd   : > { %v1497_v52 = vpop.f32.mrf.mxu0 }
 0x7ce   : > { %v996_v53 = vsel %vm613_vm11, %v991_v51, -inf }
 0x7cf   : > { %997 = vmax.xlane.f32.xlu1 %v996_v53  ;;  %v993_v55 = vpop.f32.mrf.mxu0 }
 0x7d1   : > { %v1498_v56 = vpop.f32.mrf.mxu0 }
 0x7e0   : > { %1008 = vrot.lane.b32.xlu1 %v1724_v27, %s1607_s30 }
 0x7e4   : > { %1130 = vrot.lane.b32.xlu1 %v1738_v38, %s1606_s29 }
 0x83a   : > { %v1100_v57 = vpop.f32.mrf.mxu0 }
 0x83b   : > { %1107 = vrot.lane.b32.xlu1 %v1100_v57, %s1595_s20 }
 0x83c   : > { %v1509_v59 = vpop.f32.mrf.mxu0 }
 0x83e   : > { %v1103_v60 = vpop.f32.mrf.mxu0 }
 0x840   : > { %v1510_v61 = vpop.f32.mrf.mxu0 }
 0x841   : > { %v1410_v61 = vld [vmem:[%s1955_s9] ss:$0 sm:$0xff] }
 0x858   : > { %v998_v63 = vpop.xlane.xlu1 %997 }
 0x859   : > { %v999_v2 = vsub.f32 %v991_v51, %v998_v63 }
 0x85b   : > { %v1000_v3 = vmul.f32 1.442695, %v999_v2 }
 0x85c   : > { %v1009_v4 = vpop.permute.xlu1 %1008 }
 0x85d   : > { %1575 = vpow2.f32 %v1000_v3  ;;  %v1014_v5 = vand.u32 %v1009_v4, %v1798_v19 }
 0x85f   : > { %1500 = vmatpush3.bf16.msra.mxu1 %v1014_v5 }
 0x860   : > { %1511 = vmatprep.subr.bf16.mxu1 %v1591_v8  ;;  %v1131_v9 = vpop.permute.xlu1 %1130 }
 0x86a   : > { %v1576_v6 = vpop.eup %1575 }
 0x86b   : > { %v1002_v7 = vsel %vm613_vm11, %v1576_v6, 0.0 }
 0x86c   : > { %1003 = vadd.xlane.f32.xlu0 %v1002_v7 }
 0x882   : > { %1132 = vrot.lane.b32.xlu0 %v1724_v27, %s1608_s11 }
 0x886   : > { %1110 = vrot.lane.b32.xlu0 %v1100_v57, %s1594_s19 }
 0x8ad   : > { %v1108_v11 = vpop.permute.xlu1 %1107 }
 0x8f5   : > { %v1004_v38 = vpop.xlane.xlu0 %1003 }
 0x8f6   : > { %1577 = vrcp.f32 %v1004_v38 }
 0x8f9   : > { %v1133_v10 = vpop.permute.xlu0 %1132 }
 0x8fa   : > { %v1138_v18 = vsel %vm483_vm3, %v1133_v10, 0 }
 0x8fd   : > { %v1111_v12 = vpop.permute.xlu0 %1110 }
 0x8fe   : > { %v1113_v13 = vsel %vm537_vm4, %v1108_v11, %v1111_v12 }
 0x8ff   : > { %v1114_v14 = vsel %vm1754_vm5, %v1113_v13, %v1100_v57 }
 0x900   : > { %1119 = vrot.lane.b32.xlu0 %v1114_v14, %s1599_s23  ;;  %1116 = vrot.lane.b32.xlu1 %v1114_v14, %s1598_s22  ;;  %s1612_s22 = smov 24  }
 0x903   : > { %v1578_v15 = vpop.eup %1577 }
 0x904   : > { %v1006_v16 = vmul.f32 %v1578_v15, %v1576_v6 }
 0x906   : > { %v1007_v17 = vpack.c.bf16 %v1006_v16, %v1006_v16 }
 0x908   : > { %1502 = vmatmul.mubr.msk.bf16.vlgmr.msra.gmra.mxu1 %vm628_vm13, %v1007_v17 }
 0x909   : > { %1512 = vmatpush3.bf16.xpose.msra.mxu1 %v1138_v18  ;;  %1513 = vmatprep.mubr.msk.bf16.mxu1 %vm1592_vm1, %v1591_v8 }
 0x90a   : > { %1523 = vmatprep.subr.bf16.mxu1 %v1591_v8 }
 0x910   : > { %1514 = vmatmul.mubr.msk.bf16.vlgmr.msra.gmra.mxu1 %vm483_vm3, %v1131_v9 }
 0x911   : > { %1527 = vmatprep.mubr.msk.bf16.mxu1 %vm1592_vm1, %v1591_v8  ;;  %1524 = vmatpush3.bf16.msra.mxu1 %v1563_v47 }
 0x912   : > { %1525 = vmatprep.subr.bf16.mxu1 %v1591_v8 }
 0x972   : > { %v1120_v50 = vpop.permute.xlu0 %1119  ;;  %v1117_v20 = vpop.permute.xlu1 %1116 }
 0x973   : > { %v1122_v21 = vsel %vm549_vm6, %v1117_v20, %v1120_v50 }
 0x974   : > { %v1123_v22 = vsel %vm553_vm7, %v1122_v21, %v1114_v14 }
 0x975   : > { %v1125_v23 = vrot.slane %v1123_v22, 1 }
 0x977   : > { %v1127_v26 = vsel %vm558_vm8, %v1125_v23, 0.0 }
 0x978   : > { %v1128_v29 = vsel %vm561_vm9, 0.0, %v1127_v26 }
 0x979   : > { %v1129_v31 = vsel %vm560_vm10, %v1123_v22, %v1128_v29 }
 0x9c8   : > { %v1050_v24 = vpop.f32.mrf.mxu1 }
 0x9ca   : > { %v1503_v25 = vpop.f32.mrf.mxu1 }
 0x9cc   : > { %v1053_v28 = vpop.f32.mrf.mxu1 }
 0x9ce   : > { %v1504_v30 = vpop.f32.mrf.mxu1 }
 0x9d0   : > { %v1174_v58 = vpop.f32.mrf.mxu1 }
 0x9d1   : > { %v1175_v33 = vadd.f32 %v1174_v58, %v1129_v31 }
 0x9d2   : > { %v1515_v34 = vpop.f32.mrf.mxu1 }
 0x9d3   : > { %v1180_v62 = vsel %vm613_vm11, %v1175_v33, -inf }
 0x9d4   : > { %v1177_v35 = vpop.f32.mrf.mxu1  ;;  %1181 = vmax.xlane.f32.xlu1 %v1180_v62 }
 0x9d6   : > { %v1516_v32 = vpop.f32.mrf.mxu1 }
 0x9e5   : > { %1241 = vrot.lane.b32.xlu1 %v1875_v40, %s1609_s12 }
 0x9e9   : > { %1245 = vrot.lane.b32.xlu1 %v1050_v24, %s1610_s16 }
 0xa5d   : > { %v1182_v45 = vpop.xlane.xlu1 %1181 }
 0xa5e   : > { %v1183_v36 = vsub.f32 %v1175_v33, %v1182_v45 }
 0xa60   : > { %v1184_v37 = vmul.f32 1.442695, %v1183_v36 }
 0xa61   : > { %v1242_v52 = vpop.permute.xlu1 %1241 }
 0xa62   : > { %1579 = vpow2.f32 %v1184_v37  ;;  %v1252_v55 = vsel %vm483_vm3, %v1831_v54, %v1242_v52 }
 0xa65   : > { %v1246_v53 = vpop.permute.xlu1 %1245 }
 0xa66   : > { %v1254_v56 = vsel %vm1253_vm14, %v1252_v55, %v1246_v53 }
 0xa6f   : > { %v1580_v39 = vpop.eup %1579 }
 0xa70   : > { %v1186_v44 = vsel %vm613_vm11, %v1580_v39, 0.0 }
 0xa71   : > { %1187 = vadd.xlane.f32.xlu0 %v1186_v44 }
 0xa87   : > { %1192 = vrot.lane.b32.xlu0 %v1724_v27, %s1611_s17  ;;  %v1564_v27 = vld [vmem:[%s1954_s8] sm:$0xff]  }
 0xa88   : > { %1526 = vmatpush3.bf16.msra.mxu1 %v1564_v27 }
 0xafa   : > { %v1188_v1 = vpop.xlane.xlu0 %1187 }
 0xafb   : > { %1581 = vrcp.f32 %v1188_v1 }
 0xafe   : > { %v1193_v41 = vpop.permute.xlu0 %1192 }
 0xaff   : > { %v1198_v42 = vand.u32 %v1193_v41, %v1798_v19 }
 0xb01   : > { %1518 = vmatpush3.bf16.msra.mxu0 %v1198_v42 }
 0xb08   : > { %v1582_v40 = vpop.eup %1581 }
 0xb09   : > { %v1190_v43 = vmul.f32 %v1582_v40, %v1580_v39 }
 0xb0b   : > { %v1191_v46 = vpack.c.bf16 %v1190_v43, %v1190_v43 }
 0xb0d   : > { %1520 = vmatmul.mubr.msk.bf16.vlgmr.msra.gmra.mxu0 %vm628_vm13, %v1191_v46 }
 0xbcd   : > { %v1234_v48 = vpop.f32.mrf.mxu0 }
 0xbce   : > { %1249 = vrot.lane.b32.xlu0 %v1234_v48, %s1612_s22 }
 0xbcf   : > { %v1521_v19 = vpop.f32.mrf.mxu0 }
 0xbd1   : > { %v1237_v49 = vpop.f32.mrf.mxu0 }
 0xbd3   : > { %v1522_v51 = vpop.f32.mrf.mxu0 }
 0xc40   : > { %v1250_v57 = vpop.permute.xlu0 %1249 }
 0xc41   : > { %v1256_v59 = vsel %vm1255_vm15, %v1254_v56, %v1250_v57 }
 0xc42   : > { %v1257_v60 = vpack.c.bf16 %v1256_v59, %v1256_v59 }
 0xc44   : > { %1528 = vmatmul.mubr.msk.bf16.vlgmr.msra.gmra.mxu1 %vm412_vm2, %v1257_v60 }
 0xd04   : > { %v1311_v8 = vpop.f32.mrf.mxu1 }
 0xd05   : > { %v1317_v63 = vadd.f32 %v1311_v8, %v1684_v0 }
 0xd06   : > { %v1529_v2 = vpop.f32.mrf.mxu1 }
 0xd07   : > { %v1325_v54 = vadd.f32 %v1410_v61, %v1317_v63 }
 0xd08   : > { %v1314_v3 = vpop.f32.mrf.mxu1 }
 0xd09   : > { %1326 = vst.msk [vmem:[%s354_s27] sm:$0x7] %vm359_vm0, %v1325_v54 }
 0xd0a   : > { %v1530_v4 = vpop.f32.mrf.mxu1 }
 0xd0b PF: > { %s20_s13 = sadd.s32 1, %s1589_s13  }
 0xd0c   : > { %p17_p4 = scmp.ge.s32.totalorder %s20_s13, 4  }
 0xd0e   :  { %19 = sbr.rel (!%p17_p4) target bundleno = 1 (0x1), region = 90 }

</bundles_post_ra>
